<compile_context>
chip_gen: v7x
topology: tpu7x:2x2x1
jax: 0.10.0
libtpu: 0.0.40
codegen_flags: <defaults>
</compile_context>

<pallas_src>
import functools
import math

import jax
import jax.numpy as jnp
from jax.experimental import pallas as pl
from jax.experimental.pallas import tpu as pltpu


# ----------------------------------------------------------------------------
# In-kernel math helpers
# ----------------------------------------------------------------------------
def _erf(x):
    # Abramowitz & Stegun 7.1.26 rational approximation (|err| < 1.5e-7, i.e.
    # float32 precision), using only exp / mul / add / where (VPU + EUP).
    a1, a2, a3, a4, a5 = (0.254829592, -0.284496736, 1.421413741,
                          -1.453152027, 1.061405429)
    p = 0.3275911
    ax = jnp.abs(x)
    t = 1.0 / (1.0 + p * ax)
    poly = ((((a5 * t + a4) * t + a3) * t + a2) * t + a1) * t
    y = 1.0 - poly * jnp.exp(-ax * ax)
    return jnp.where(x >= 0, y, -y)


def _gelu_exact(x):
    return 0.5 * x * (1.0 + _erf(x * (1.0 / math.sqrt(2.0))))


def _layer_norm(x, gamma, beta, eps=1e-5):
    # Matches torch.nn.LayerNorm (biased variance, eps inside sqrt).
    mu = jnp.mean(x, axis=-1, keepdims=True)
    var = jnp.mean(jnp.square(x - mu), axis=-1, keepdims=True)
    return (x - mu) * jax.lax.rsqrt(var + eps) * gamma + beta


# ----------------------------------------------------------------------------
# Fused TemporalEnc kernel (one grid step = one part: real or imag)
# ----------------------------------------------------------------------------
_PARAM_ORDER = ("w_in", "b_in",
                "wq", "bq", "wk", "bk", "wv", "bv", "wo", "bo",
                "w1", "b1", "w2", "b2", "g1", "t1", "g2", "t2",
                "w_out", "b_out")


def _temporal_enc_kernel(x_ref, w_in_ref, b_in_ref,
                         wq_ref, bq_ref, wk_ref, bk_ref, wv_ref, bv_ref,
                         wo_ref, bo_ref, w1_ref, b1_ref, w2_ref, b2_ref,
                         g1_ref, t1_ref, g2_ref, t2_ref,
                         w_out_ref, b_out_ref, o_ref,
                         *, n_blocks, nheads, n_seq, seq_len):
    rows = n_seq * seq_len

    x = x_ref[0]                                                   # (R, F+1)

    # ComplexLinear (in): this grid step handles real (p=0) or imag (p=1)
    h = jnp.dot(x, w_in_ref[0], preferred_element_type=jnp.float32) + b_in_ref[0]

    for l in range(n_blocks):                                      # static unroll
        # --- self-attention sub-block (pre-norm) ---
        xn = _layer_norm(h, g1_ref[0, l], t1_ref[0, l])
        attn = None
        for hd in range(nheads):                                   # static unroll
            q = jnp.dot(xn, wq_ref[0, l, hd],
                        preferred_element_type=jnp.float32) + bq_ref[0, l, hd]
            k = jnp.dot(xn, wk_ref[0, l, hd],
                        preferred_element_type=jnp.float32) + bk_ref[0, l, hd]
            v = jnp.dot(xn, wv_ref[0, l, hd],
                        preferred_element_type=jnp.float32) + bv_ref[0, l, hd]
            dh = q.shape[-1]
            qb = q.reshape(n_seq, seq_len, dh)
            kb = k.reshape(n_seq, seq_len, dh)
            vb = v.reshape(n_seq, seq_len, dh)
            # scores via contraction on the last dim (no explicit K transpose)
            s = jnp.einsum("bqd,bkd->bqk", qb, kb,
                           preferred_element_type=jnp.float32)     # (BN, T, T)
            s = s - jnp.max(s, axis=-1, keepdims=True)
            p = jnp.exp(s)
            p = p * pl.reciprocal(jnp.sum(p, axis=-1, keepdims=True), approx=True)
            o = jnp.einsum("bqk,bkd->bqd", p, vb,
                           preferred_element_type=jnp.float32)     # (BN, T, dh)
            contrib = jnp.dot(o.reshape(rows, dh), wo_ref[0, l, hd],
                              preferred_element_type=jnp.float32)
            attn = contrib if attn is None else attn + contrib
        h = h + attn + bo_ref[0, l]                                # residual (dropout = id)

        # --- feed-forward sub-block (pre-norm) ---
        xn2 = _layer_norm(h, g2_ref[0, l], t2_ref[0, l])
        f = jnp.dot(xn2, w1_ref[0, l], preferred_element_type=jnp.float32) + b1_ref[0, l]
        f = _gelu_exact(f)
        h = h + jnp.dot(f, w2_ref[0, l], preferred_element_type=jnp.float32) + b2_ref[0, l]

    # ComplexLinear (out)
    o_ref[0] = (jnp.dot(h, w_out_ref[0], preferred_element_type=jnp.float32)
                + b_out_ref[0])


# ----------------------------------------------------------------------------
# Deterministic parameter initialization (shapes follow TemporalEnc.__init__,
# stacked as [part=2, layer, ...] with QKV / out-proj pre-split per head)
# ----------------------------------------------------------------------------
def init_params(key, *, f_plus_1, d_model, dim_ff, n_blocks, nheads):
    assert d_model % nheads == 0, "d_model must be divisible by nheads"
    dh = d_model // nheads
    P = 2  # real / imag

    def uni(k, shape, fan_in):
        bound = 1.0 / math.sqrt(fan_in)
        return jax.random.uniform(k, shape, jnp.float32, -bound, bound)

    keys = iter(jax.random.split(key, 16))
    return {
        # ComplexLinear in:  F+1 -> d_model (independent real / imag linears)
        "w_in": uni(next(keys), (P, f_plus_1, d_model), f_plus_1),
        "b_in": uni(next(keys), (P, 1, d_model), f_plus_1),
        # ComplexLinear out: d_model -> F+1
        "w_out": uni(next(keys), (P, d_model, f_plus_1), d_model),
        "b_out": uni(next(keys), (P, 1, f_plus_1), d_model),
        # Self-attention: Q/K/V pre-split per head, out-proj split along dh
        "wq": uni(next(keys), (P, n_blocks, nheads, d_model, dh), d_model),
        "bq": jnp.zeros((P, n_blocks, nheads, 1, dh), jnp.float32),
        "wk": uni(next(keys), (P, n_blocks, nheads, d_model, dh), d_model),
        "bk": jnp.zeros((P, n_blocks, nheads, 1, dh), jnp.float32),
        "wv": uni(next(keys), (P, n_blocks, nheads, d_model, dh), d_model),
        "bv": jnp.zeros((P, n_blocks, nheads, 1, dh), jnp.float32),
        "wo": uni(next(keys), (P, n_blocks, nheads, dh, d_model), d_model),
        "bo": jnp.zeros((P, n_blocks, 1, d_model), jnp.float32),
        # Feed-forward
        "w1": uni(next(keys), (P, n_blocks, d_model, dim_ff), d_model),
        "b1": uni(next(keys), (P, n_blocks, 1, dim_ff), d_model),
        "w2": uni(next(keys), (P, n_blocks, dim_ff, d_model), dim_ff),
        "b2": uni(next(keys), (P, n_blocks, 1, d_model), dim_ff),
        # LayerNorms
        "g1": jnp.ones((P, n_blocks, 1, d_model), jnp.float32),
        "t1": jnp.zeros((P, n_blocks, 1, d_model), jnp.float32),
        "g2": jnp.ones((P, n_blocks, 1, d_model), jnp.float32),
        "t2": jnp.zeros((P, n_blocks, 1, d_model), jnp.float32),
    }


# ----------------------------------------------------------------------------
# TemporalEnc forward
# ----------------------------------------------------------------------------
def temporal_enc_forward(temp_in, params, *, nheads):
    """temp_in: complex64 [B, N, F+1, T] -> complex64 [B, N, F+1, T]."""
    B, N, Fp1, T = temp_in.shape
    D = params["w_in"].shape[2]
    L = params["w1"].shape[1]
    assert D % nheads == 0, "d_model must be divisible by nheads"
    dh = D // nheads
    BN = B * N
    R = BN * T

    # flatten(0,1).transpose(1,2) + real/imag split, fused by XLA into one copy:
    # [B, N, F+1, T] complex -> [2(part), B*N*T, F+1] float32
    x = jnp.stack([jnp.real(temp_in), jnp.imag(temp_in)], axis=0).astype(jnp.float32)
    x = x.reshape(2, BN, Fp1, T).transpose(0, 1, 3, 2).reshape(2, R, Fp1)

    # Fold the 1/sqrt(dh) attention scale into Wq / bq at trace time (free).
    scale = 1.0 / math.sqrt(dh)
    params = dict(params)
    params["wq"] = params["wq"] * scale
    params["bq"] = params["bq"] * scale

    weight_args = [params[name] for name in _PARAM_ORDER]

    def part_spec(arr):
        nd = arr.ndim
        return pl.BlockSpec((1,) + arr.shape[1:],
                            lambda p, _nd=nd: (p,) + (0,) * (_nd - 1))

    kern = functools.partial(_temporal_enc_kernel, n_blocks=L, nheads=nheads,
                             n_seq=BN, seq_len=T)

    out = pl.pallas_call(
        kern,
        out_shape=jax.ShapeDtypeStruct((2, R, Fp1), jnp.float32),
        grid=(2,),  # part axis (real / imag); "parallel" -> both TCs on v7x
        in_specs=[part_spec(x)] + [part_spec(a) for a in weight_args],
        out_specs=pl.BlockSpec((1, R, Fp1), lambda p: (p, 0, 0)),
        compiler_params=pltpu.CompilerParams(
            dimension_semantics=("parallel",)),
    )(x, *weight_args)

    # [2, B*N*T, F+1] -> complex [B, N, F+1, T]  (view + transpose(2,3) of the spec)
    out = out.reshape(2, B, N, T, Fp1).transpose(0, 1, 2, 4, 3)
    return jax.lax.complex(out[0], out[1])


if __name__ == "__main__":
    # Small config consistent with the module's cfg fields.
    B = 2
    n_channels = 3           # cfg.dataset.n_channels  -> N = n_channels + 1 = 4
    N = n_channels + 1
    n_frequencies = 15       # cfg.dataset.n_frequencies -> F + 1 = 16
    Fp1 = n_frequencies + 1
    T = 8                    # cfg.dataset.n_times
    d_model = 32             # cfg.model.temporal_dmodel
    nheads = 2               # cfg.model.temporal_nheads
    dim_factor = 2           # cfg.model.temporal_dim_factor -> dim_ff = 64
    n_blocks = 2             # cfg.model.n_temporal_blocks
    # cfg.model.dropout -> 0.0 (inference): all dropout layers are identity

    key = jax.random.PRNGKey(0)
    k_param, k_real, k_imag = jax.random.split(key, 3)
    params = init_params(k_param, f_plus_1=Fp1, d_model=d_model,
                         dim_ff=d_model * dim_factor, n_blocks=n_blocks,
                         nheads=nheads)

    temp_real = jax.random.normal(k_real, (B, N, Fp1, T), jnp.float32)
    temp_imag = jax.random.normal(k_imag, (B, N, Fp1, T), jnp.float32)
    temp_in = jax.lax.complex(temp_real, temp_imag)   # complex64 [B, N, F+1, T]

    fwd = jax.jit(functools.partial(temporal_enc_forward, nheads=nheads))
    temp_out = fwd(temp_in, params)
    temp_out = jax.block_until_ready(temp_out)

    assert temp_out.shape == (B, N, Fp1, T), temp_out.shape
    assert temp_out.dtype == jnp.complex64, temp_out.dtype
    assert bool(jnp.all(jnp.isfinite(jnp.real(temp_out)))), "non-finite real part"
    assert bool(jnp.all(jnp.isfinite(jnp.imag(temp_out)))), "non-finite imag part"
    print("KERNEL_OK")
</pallas_src>

<mosaic_0001>
module attributes {stable_mosaic.version = 11 : i64} {
  func.func @_temporal_enc_kernel(%arg0: i32, %arg1: memref<1x64x16xf32, #tpu.memory_space<vmem>>, %arg2: memref<1x16x32xf32, #tpu.memory_space<vmem>>, %arg3: memref<1x1x32xf32, #tpu.memory_space<vmem>>, %arg4: memref<1x2x2x32x16xf32, #tpu.memory_space<vmem>>, %arg5: memref<1x2x2x1x16xf32, #tpu.memory_space<vmem>>, %arg6: memref<1x2x2x32x16xf32, #tpu.memory_space<vmem>>, %arg7: memref<1x2x2x1x16xf32, #tpu.memory_space<vmem>>, %arg8: memref<1x2x2x32x16xf32, #tpu.memory_space<vmem>>, %arg9: memref<1x2x2x1x16xf32, #tpu.memory_space<vmem>>, %arg10: memref<1x2x2x16x32xf32, #tpu.memory_space<vmem>>, %arg11: memref<1x2x1x32xf32, #tpu.memory_space<vmem>>, %arg12: memref<1x2x32x64xf32, #tpu.memory_space<vmem>>, %arg13: memref<1x2x1x64xf32, #tpu.memory_space<vmem>>, %arg14: memref<1x2x64x32xf32, #tpu.memory_space<vmem>>, %arg15: memref<1x2x1x32xf32, #tpu.memory_space<vmem>>, %arg16: memref<1x2x1x32xf32, #tpu.memory_space<vmem>>, %arg17: memref<1x2x1x32xf32, #tpu.memory_space<vmem>>, %arg18: memref<1x2x1x32xf32, #tpu.memory_space<vmem>>, %arg19: memref<1x2x1x32xf32, #tpu.memory_space<vmem>>, %arg20: memref<1x32x16xf32, #tpu.memory_space<vmem>>, %arg21: memref<1x1x16xf32, #tpu.memory_space<vmem>>, %arg22: memref<1x64x16xf32, #tpu.memory_space<vmem>>) attributes {dimension_semantics = [#tpu.dimension_semantics<parallel>], iteration_bounds = array<i64: 2>, scalar_prefetch = 0 : i64, scratch_operands = 0 : i64, tpu.core_type = #tpu.core_type<tc>, window_params = [{transform_indices = @transform_0, window_bounds = array<i64: 1, 64, 16>}, {transform_indices = @transform_1, window_bounds = array<i64: 1, 16, 32>}, {transform_indices = @transform_2, window_bounds = array<i64: 1, 1, 32>}, {transform_indices = @transform_3, window_bounds = array<i64: 1, 2, 2, 32, 16>}, {transform_indices = @transform_4, window_bounds = array<i64: 1, 2, 2, 1, 16>}, {transform_indices = @transform_5, window_bounds = array<i64: 1, 2, 2, 32, 16>}, {transform_indices = @transform_6, window_bounds = array<i64: 1, 2, 2, 1, 16>}, {transform_indices = @transform_7, window_bounds = array<i64: 1, 2, 2, 32, 16>}, {transform_indices = @transform_8, window_bounds = array<i64: 1, 2, 2, 1, 16>}, {transform_indices = @transform_9, window_bounds = array<i64: 1, 2, 2, 16, 32>}, {transform_indices = @transform_10, window_bounds = array<i64: 1, 2, 1, 32>}, {transform_indices = @transform_11, window_bounds = array<i64: 1, 2, 32, 64>}, {transform_indices = @transform_12, window_bounds = array<i64: 1, 2, 1, 64>}, {transform_indices = @transform_13, window_bounds = array<i64: 1, 2, 64, 32>}, {transform_indices = @transform_14, window_bounds = array<i64: 1, 2, 1, 32>}, {transform_indices = @transform_15, window_bounds = array<i64: 1, 2, 1, 32>}, {transform_indices = @transform_16, window_bounds = array<i64: 1, 2, 1, 32>}, {transform_indices = @transform_17, window_bounds = array<i64: 1, 2, 1, 32>}, {transform_indices = @transform_18, window_bounds = array<i64: 1, 2, 1, 32>}, {transform_indices = @transform_19, window_bounds = array<i64: 1, 32, 16>}, {transform_indices = @transform_20, window_bounds = array<i64: 1, 1, 16>}, {transform_indices = @transform_21, window_bounds = array<i64: 1, 64, 16>}]} {
    %c0 = arith.constant 0 : index
    %c0_0 = arith.constant 0 : index
    %c0_1 = arith.constant 0 : index
    %0 = vector.load %arg1[%c0, %c0_0, %c0_1] : memref<1x64x16xf32, #tpu.memory_space<vmem>>, vector<1x64x16xf32>
    %1 = vector.shape_cast %0 : vector<1x64x16xf32> to vector<64x16xf32>
    %c0_2 = arith.constant 0 : index
    %c0_3 = arith.constant 0 : index
    %c0_4 = arith.constant 0 : index
    %2 = vector.load %arg2[%c0_2, %c0_3, %c0_4] : memref<1x16x32xf32, #tpu.memory_space<vmem>>, vector<1x16x32xf32>
    %3 = vector.shape_cast %2 : vector<1x16x32xf32> to vector<16x32xf32>
    %cst = arith.constant dense<0.000000e+00> : vector<64x32xf32>
    %4 = tpu.matmul %1, %3, %cst {dimension_numbers = #tpu.dot_dimension_numbers<[1], [0], [0], [1], [0, 0, 1, 1], [], []>} : vector<64x16xf32>, vector<16x32xf32>, vector<64x32xf32> -> vector<64x32xf32>
    %c0_5 = arith.constant 0 : index
    %c0_6 = arith.constant 0 : index
    %c0_7 = arith.constant 0 : index
    %5 = vector.load %arg3[%c0_5, %c0_6, %c0_7] : memref<1x1x32xf32, #tpu.memory_space<vmem>>, vector<1x1x32xf32>
    %6 = vector.shape_cast %5 : vector<1x1x32xf32> to vector<1x32xf32>
    %7 = vector.broadcast %6 : vector<1x32xf32> to vector<64x32xf32>
    %8 = arith.addf %4, %7 : vector<64x32xf32>
    %c0_8 = arith.constant 0 : index
    %c0_9 = arith.constant 0 : index
    %c0_10 = arith.constant 0 : index
    %c0_11 = arith.constant 0 : index
    %9 = vector.load %arg16[%c0_8, %c0_9, %c0_10, %c0_11] : memref<1x2x1x32xf32, #tpu.memory_space<vmem>>, vector<1x1x1x32xf32>
    %10 = vector.shape_cast %9 : vector<1x1x1x32xf32> to vector<1x32xf32>
    %c0_12 = arith.constant 0 : index
    %c0_13 = arith.constant 0 : index
    %c0_14 = arith.constant 0 : index
    %c0_15 = arith.constant 0 : index
    %11 = vector.load %arg17[%c0_12, %c0_13, %c0_14, %c0_15] : memref<1x2x1x32xf32, #tpu.memory_space<vmem>>, vector<1x1x1x32xf32>
    %12 = vector.shape_cast %11 : vector<1x1x1x32xf32> to vector<1x32xf32>
    %cst_16 = arith.constant dense<0.000000e+00> : vector<64xf32>
    %13 = vector.multi_reduction <add>, %8, %cst_16 [1] : vector<64x32xf32> to vector<64xf32>
    %14 = vector.shape_cast %13 : vector<64xf32> to vector<64x1xf32>
    %cst_17 = arith.constant 3.200000e+01 : f32
    %15 = vector.broadcast %cst_17 : f32 to vector<64x1xf32>
    %16 = arith.divf %14, %15 : vector<64x1xf32>
    %17 = vector.broadcast %16 : vector<64x1xf32> to vector<64x32xf32>
    %18 = arith.subf %8, %17 : vector<64x32xf32>
    %19 = arith.mulf %18, %18 : vector<64x32xf32>
    %cst_18 = arith.constant dense<0.000000e+00> : vector<64xf32>
    %20 = vector.multi_reduction <add>, %19, %cst_18 [1] : vector<64x32xf32> to vector<64xf32>
    %21 = vector.shape_cast %20 : vector<64xf32> to vector<64x1xf32>
    %cst_19 = arith.constant 3.200000e+01 : f32
    %22 = vector.broadcast %cst_19 : f32 to vector<64x1xf32>
    %23 = arith.divf %21, %22 : vector<64x1xf32>
    %24 = vector.broadcast %16 : vector<64x1xf32> to vector<64x32xf32>
    %25 = arith.subf %8, %24 : vector<64x32xf32>
    %cst_20 = arith.constant 9.99999974E-6 : f32
    %26 = vector.broadcast %cst_20 : f32 to vector<64x1xf32>
    %27 = arith.addf %23, %26 : vector<64x1xf32>
    %28 = math.rsqrt %27 : vector<64x1xf32>
    %29 = vector.broadcast %28 : vector<64x1xf32> to vector<64x32xf32>
    %30 = arith.mulf %25, %29 : vector<64x32xf32>
    %31 = vector.broadcast %10 : vector<1x32xf32> to vector<64x32xf32>
    %32 = arith.mulf %30, %31 : vector<64x32xf32>
    %33 = vector.broadcast %12 : vector<1x32xf32> to vector<64x32xf32>
    %34 = arith.addf %32, %33 : vector<64x32xf32>
    %c0_21 = arith.constant 0 : index
    %c0_22 = arith.constant 0 : index
    %c0_23 = arith.constant 0 : index
    %c0_24 = arith.constant 0 : index
    %c0_25 = arith.constant 0 : index
    %35 = vector.load %arg4[%c0_21, %c0_22, %c0_23, %c0_24, %c0_25] : memref<1x2x2x32x16xf32, #tpu.memory_space<vmem>>, vector<1x1x1x32x16xf32>
    %36 = vector.shape_cast %35 : vector<1x1x1x32x16xf32> to vector<32x16xf32>
    %cst_26 = arith.constant dense<0.000000e+00> : vector<64x16xf32>
    %37 = tpu.matmul %34, %36, %cst_26 {dimension_numbers = #tpu.dot_dimension_numbers<[1], [0], [0], [1], [0, 0, 1, 1], [], []>} : vector<64x32xf32>, vector<32x16xf32>, vector<64x16xf32> -> vector<64x16xf32>
    %c0_27 = arith.constant 0 : index
    %c0_28 = arith.constant 0 : index
    %c0_29 = arith.constant 0 : index
    %c0_30 = arith.constant 0 : index
    %c0_31 = arith.constant 0 : index
    %38 = vector.load %arg5[%c0_27, %c0_28, %c0_29, %c0_30, %c0_31] : memref<1x2x2x1x16xf32, #tpu.memory_space<vmem>>, vector<1x1x1x1x16xf32>
    %39 = vector.shape_cast %38 : vector<1x1x1x1x16xf32> to vector<1x16xf32>
    %40 = vector.broadcast %39 : vector<1x16xf32> to vector<64x16xf32>
    %41 = arith.addf %37, %40 : vector<64x16xf32>
    %c0_32 = arith.constant 0 : index
    %c0_33 = arith.constant 0 : index
    %c0_34 = arith.constant 0 : index
    %c0_35 = arith.constant 0 : index
    %c0_36 = arith.constant 0 : index
    %42 = vector.load %arg6[%c0_32, %c0_33, %c0_34, %c0_35, %c0_36] : memref<1x2x2x32x16xf32, #tpu.memory_space<vmem>>, vector<1x1x1x32x16xf32>
    %43 = vector.shape_cast %42 : vector<1x1x1x32x16xf32> to vector<32x16xf32>
    %cst_37 = arith.constant dense<0.000000e+00> : vector<64x16xf32>
    %44 = tpu.matmul %34, %43, %cst_37 {dimension_numbers = #tpu.dot_dimension_numbers<[1], [0], [0], [1], [0, 0, 1, 1], [], []>} : vector<64x32xf32>, vector<32x16xf32>, vector<64x16xf32> -> vector<64x16xf32>
    %c0_38 = arith.constant 0 : index
    %c0_39 = arith.constant 0 : index
    %c0_40 = arith.constant 0 : index
    %c0_41 = arith.constant 0 : index
    %c0_42 = arith.constant 0 : index
    %45 = vector.load %arg7[%c0_38, %c0_39, %c0_40, %c0_41, %c0_42] : memref<1x2x2x1x16xf32, #tpu.memory_space<vmem>>, vector<1x1x1x1x16xf32>
    %46 = vector.shape_cast %45 : vector<1x1x1x1x16xf32> to vector<1x16xf32>
    %47 = vector.broadcast %46 : vector<1x16xf32> to vector<64x16xf32>
    %48 = arith.addf %44, %47 : vector<64x16xf32>
    %c0_43 = arith.constant 0 : index
    %c0_44 = arith.constant 0 : index
    %c0_45 = arith.constant 0 : index
    %c0_46 = arith.constant 0 : index
    %c0_47 = arith.constant 0 : index
    %49 = vector.load %arg8[%c0_43, %c0_44, %c0_45, %c0_46, %c0_47] : memref<1x2x2x32x16xf32, #tpu.memory_space<vmem>>, vector<1x1x1x32x16xf32>
    %50 = vector.shape_cast %49 : vector<1x1x1x32x16xf32> to vector<32x16xf32>
    %cst_48 = arith.constant dense<0.000000e+00> : vector<64x16xf32>
    %51 = tpu.matmul %34, %50, %cst_48 {dimension_numbers = #tpu.dot_dimension_numbers<[1], [0], [0], [1], [0, 0, 1, 1], [], []>} : vector<64x32xf32>, vector<32x16xf32>, vector<64x16xf32> -> vector<64x16xf32>
    %c0_49 = arith.constant 0 : index
    %c0_50 = arith.constant 0 : index
    %c0_51 = arith.constant 0 : index
    %c0_52 = arith.constant 0 : index
    %c0_53 = arith.constant 0 : index
    %52 = vector.load %arg9[%c0_49, %c0_50, %c0_51, %c0_52, %c0_53] : memref<1x2x2x1x16xf32, #tpu.memory_space<vmem>>, vector<1x1x1x1x16xf32>
    %53 = vector.shape_cast %52 : vector<1x1x1x1x16xf32> to vector<1x16xf32>
    %54 = vector.broadcast %53 : vector<1x16xf32> to vector<64x16xf32>
    %55 = arith.addf %51, %54 : vector<64x16xf32>
    %56 = vector.shape_cast %41 : vector<64x16xf32> to vector<8x8x16xf32>
    %57 = vector.shape_cast %48 : vector<64x16xf32> to vector<8x8x16xf32>
    %58 = vector.shape_cast %55 : vector<64x16xf32> to vector<8x8x16xf32>
    "tpu.trace_start"() <{level = 10 : i32, message = "bqd,bkd->bqk"}> : () -> ()
    %cst_54 = arith.constant dense<0.000000e+00> : vector<8x8x8xf32>
    %59 = tpu.matmul %56, %57, %cst_54 {dimension_numbers = #tpu.dot_dimension_numbers<[2], [2], [1], [1], [0, 0, 0, 1, 1, 1], [0], [0]>} : vector<8x8x16xf32>, vector<8x8x16xf32>, vector<8x8x8xf32> -> vector<8x8x8xf32>
    "tpu.trace_stop"() : () -> ()
    %cst_55 = arith.constant dense<0xFF800000> : vector<8x8xf32>
    %60 = vector.multi_reduction <maximumf>, %59, %cst_55 [2] : vector<8x8x8xf32> to vector<8x8xf32>
    %61 = vector.shape_cast %60 : vector<8x8xf32> to vector<8x8x1xf32>
    %62 = vector.broadcast %61 : vector<8x8x1xf32> to vector<8x8x8xf32>
    %63 = arith.subf %59, %62 : vector<8x8x8xf32>
    %64 = math.exp %63 : vector<8x8x8xf32>
    %cst_56 = arith.constant dense<0.000000e+00> : vector<8x8xf32>
    %65 = vector.multi_reduction <add>, %64, %cst_56 [2] : vector<8x8x8xf32> to vector<8x8xf32>
    %66 = vector.shape_cast %65 : vector<8x8xf32> to vector<8x8x1xf32>
    %67 = tpu.reciprocal %66 {approx = true} : vector<8x8x1xf32> -> vector<8x8x1xf32>
    %68 = vector.broadcast %67 : vector<8x8x1xf32> to vector<8x8x8xf32>
    %69 = arith.mulf %64, %68 : vector<8x8x8xf32>
    "tpu.trace_start"() <{level = 10 : i32, message = "bqk,bkd->bqd"}> : () -> ()
    %cst_57 = arith.constant dense<0.000000e+00> : vector<8x8x16xf32>
    %70 = tpu.matmul %69, %58, %cst_57 {dimension_numbers = #tpu.dot_dimension_numbers<[2], [1], [1], [2], [0, 0, 0, 1, 1, 2], [0], [0]>} : vector<8x8x8xf32>, vector<8x8x16xf32>, vector<8x8x16xf32> -> vector<8x8x16xf32>
    "tpu.trace_stop"() : () -> ()
    %71 = vector.shape_cast %70 : vector<8x8x16xf32> to vector<64x16xf32>
    %c0_58 = arith.constant 0 : index
    %c0_59 = arith.constant 0 : index
    %c0_60 = arith.constant 0 : index
    %c0_61 = arith.constant 0 : index
    %c0_62 = arith.constant 0 : index
    %72 = vector.load %arg10[%c0_58, %c0_59, %c0_60, %c0_61, %c0_62] : memref<1x2x2x16x32xf32, #tpu.memory_space<vmem>>, vector<1x1x1x16x32xf32>
    %73 = vector.shape_cast %72 : vector<1x1x1x16x32xf32> to vector<16x32xf32>
    %cst_63 = arith.constant dense<0.000000e+00> : vector<64x32xf32>
    %74 = tpu.matmul %71, %73, %cst_63 {dimension_numbers = #tpu.dot_dimension_numbers<[1], [0], [0], [1], [0, 0, 1, 1], [], []>} : vector<64x16xf32>, vector<16x32xf32>, vector<64x32xf32> -> vector<64x32xf32>
    %c0_64 = arith.constant 0 : index
    %c0_65 = arith.constant 0 : index
    %c1 = arith.constant 1 : index
    %c0_66 = arith.constant 0 : index
    %c0_67 = arith.constant 0 : index
    %75 = vector.load %arg4[%c0_64, %c0_65, %c1, %c0_66, %c0_67] : memref<1x2x2x32x16xf32, #tpu.memory_space<vmem>>, vector<1x1x1x32x16xf32>
    %76 = vector.shape_cast %75 : vector<1x1x1x32x16xf32> to vector<32x16xf32>
    %cst_68 = arith.constant dense<0.000000e+00> : vector<64x16xf32>
    %77 = tpu.matmul %34, %76, %cst_68 {dimension_numbers = #tpu.dot_dimension_numbers<[1], [0], [0], [1], [0, 0, 1, 1], [], []>} : vector<64x32xf32>, vector<32x16xf32>, vector<64x16xf32> -> vector<64x16xf32>
    %c0_69 = arith.constant 0 : index
    %c0_70 = arith.constant 0 : index
    %c1_71 = arith.constant 1 : index
    %c0_72 = arith.constant 0 : index
    %c0_73 = arith.constant 0 : index
    %78 = vector.load %arg5[%c0_69, %c0_70, %c1_71, %c0_72, %c0_73] : memref<1x2x2x1x16xf32, #tpu.memory_space<vmem>>, vector<1x1x1x1x16xf32>
    %79 = vector.shape_cast %78 : vector<1x1x1x1x16xf32> to vector<1x16xf32>
    %80 = vector.broadcast %79 : vector<1x16xf32> to vector<64x16xf32>
    %81 = arith.addf %77, %80 : vector<64x16xf32>
    %c0_74 = arith.constant 0 : index
    %c0_75 = arith.constant 0 : index
    %c1_76 = arith.constant 1 : index
    %c0_77 = arith.constant 0 : index
    %c0_78 = arith.constant 0 : index
    %82 = vector.load %arg6[%c0_74, %c0_75, %c1_76, %c0_77, %c0_78] : memref<1x2x2x32x16xf32, #tpu.memory_space<vmem>>, vector<1x1x1x32x16xf32>
    %83 = vector.shape_cast %82 : vector<1x1x1x32x16xf32> to vector<32x16xf32>
    %cst_79 = arith.constant dense<0.000000e+00> : vector<64x16xf32>
    %84 = tpu.matmul %34, %83, %cst_79 {dimension_numbers = #tpu.dot_dimension_numbers<[1], [0], [0], [1], [0, 0, 1, 1], [], []>} : vector<64x32xf32>, vector<32x16xf32>, vector<64x16xf32> -> vector<64x16xf32>
    %c0_80 = arith.constant 0 : index
    %c0_81 = arith.constant 0 : index
    %c1_82 = arith.constant 1 : index
    %c0_83 = arith.constant 0 : index
    %c0_84 = arith.constant 0 : index
    %85 = vector.load %arg7[%c0_80, %c0_81, %c1_82, %c0_83, %c0_84] : memref<1x2x2x1x16xf32, #tpu.memory_space<vmem>>, vector<1x1x1x1x16xf32>
    %86 = vector.shape_cast %85 : vector<1x1x1x1x16xf32> to vector<1x16xf32>
    %87 = vector.broadcast %86 : vector<1x16xf32> to vector<64x16xf32>
    %88 = arith.addf %84, %87 : vector<64x16xf32>
    %c0_85 = arith.constant 0 : index
    %c0_86 = arith.constant 0 : index
    %c1_87 = arith.constant 1 : index
    %c0_88 = arith.constant 0 : index
    %c0_89 = arith.constant 0 : index
    %89 = vector.load %arg8[%c0_85, %c0_86, %c1_87, %c0_88, %c0_89] : memref<1x2x2x32x16xf32, #tpu.memory_space<vmem>>, vector<1x1x1x32x16xf32>
    %90 = vector.shape_cast %89 : vector<1x1x1x32x16xf32> to vector<32x16xf32>
    %cst_90 = arith.constant dense<0.000000e+00> : vector<64x16xf32>
    %91 = tpu.matmul %34, %90, %cst_90 {dimension_numbers = #tpu.dot_dimension_numbers<[1], [0], [0], [1], [0, 0, 1, 1], [], []>} : vector<64x32xf32>, vector<32x16xf32>, vector<64x16xf32> -> vector<64x16xf32>
    %c0_91 = arith.constant 0 : index
    %c0_92 = arith.constant 0 : index
    %c1_93 = arith.constant 1 : index
    %c0_94 = arith.constant 0 : index
    %c0_95 = arith.constant 0 : index
    %92 = vector.load %arg9[%c0_91, %c0_92, %c1_93, %c0_94, %c0_95] : memref<1x2x2x1x16xf32, #tpu.memory_space<vmem>>, vector<1x1x1x1x16xf32>
    %93 = vector.shape_cast %92 : vector<1x1x1x1x16xf32> to vector<1x16xf32>
    %94 = vector.broadcast %93 : vector<1x16xf32> to vector<64x16xf32>
    %95 = arith.addf %91, %94 : vector<64x16xf32>
    %96 = vector.shape_cast %81 : vector<64x16xf32> to vector<8x8x16xf32>
    %97 = vector.shape_cast %88 : vector<64x16xf32> to vector<8x8x16xf32>
    %98 = vector.shape_cast %95 : vector<64x16xf32> to vector<8x8x16xf32>
    "tpu.trace_start"() <{level = 10 : i32, message = "bqd,bkd->bqk"}> : () -> ()
    %cst_96 = arith.constant dense<0.000000e+00> : vector<8x8x8xf32>
    %99 = tpu.matmul %96, %97, %cst_96 {dimension_numbers = #tpu.dot_dimension_numbers<[2], [2], [1], [1], [0, 0, 0, 1, 1, 1], [0], [0]>} : vector<8x8x16xf32>, vector<8x8x16xf32>, vector<8x8x8xf32> -> vector<8x8x8xf32>
    "tpu.trace_stop"() : () -> ()
    %cst_97 = arith.constant dense<0xFF800000> : vector<8x8xf32>
    %100 = vector.multi_reduction <maximumf>, %99, %cst_97 [2] : vector<8x8x8xf32> to vector<8x8xf32>
    %101 = vector.shape_cast %100 : vector<8x8xf32> to vector<8x8x1xf32>
    %102 = vector.broadcast %101 : vector<8x8x1xf32> to vector<8x8x8xf32>
    %103 = arith.subf %99, %102 : vector<8x8x8xf32>
    %104 = math.exp %103 : vector<8x8x8xf32>
    %cst_98 = arith.constant dense<0.000000e+00> : vector<8x8xf32>
    %105 = vector.multi_reduction <add>, %104, %cst_98 [2] : vector<8x8x8xf32> to vector<8x8xf32>
    %106 = vector.shape_cast %105 : vector<8x8xf32> to vector<8x8x1xf32>
    %107 = tpu.reciprocal %106 {approx = true} : vector<8x8x1xf32> -> vector<8x8x1xf32>
    %108 = vector.broadcast %107 : vector<8x8x1xf32> to vector<8x8x8xf32>
    %109 = arith.mulf %104, %108 : vector<8x8x8xf32>
    "tpu.trace_start"() <{level = 10 : i32, message = "bqk,bkd->bqd"}> : () -> ()
    %cst_99 = arith.constant dense<0.000000e+00> : vector<8x8x16xf32>
    %110 = tpu.matmul %109, %98, %cst_99 {dimension_numbers = #tpu.dot_dimension_numbers<[2], [1], [1], [2], [0, 0, 0, 1, 1, 2], [0], [0]>} : vector<8x8x8xf32>, vector<8x8x16xf32>, vector<8x8x16xf32> -> vector<8x8x16xf32>
    "tpu.trace_stop"() : () -> ()
    %111 = vector.shape_cast %110 : vector<8x8x16xf32> to vector<64x16xf32>
    %c0_100 = arith.constant 0 : index
    %c0_101 = arith.constant 0 : index
    %c1_102 = arith.constant 1 : index
    %c0_103 = arith.constant 0 : index
    %c0_104 = arith.constant 0 : index
    %112 = vector.load %arg10[%c0_100, %c0_101, %c1_102, %c0_103, %c0_104] : memref<1x2x2x16x32xf32, #tpu.memory_space<vmem>>, vector<1x1x1x16x32xf32>
    %113 = vector.shape_cast %112 : vector<1x1x1x16x32xf32> to vector<16x32xf32>
    %cst_105 = arith.constant dense<0.000000e+00> : vector<64x32xf32>
    %114 = tpu.matmul %111, %113, %cst_105 {dimension_numbers = #tpu.dot_dimension_numbers<[1], [0], [0], [1], [0, 0, 1, 1], [], []>} : vector<64x16xf32>, vector<16x32xf32>, vector<64x32xf32> -> vector<64x32xf32>
    %115 = arith.addf %74, %114 : vector<64x32xf32>
    %116 = arith.addf %8, %115 : vector<64x32xf32>
    %c0_106 = arith.constant 0 : index
    %c0_107 = arith.constant 0 : index
    %c0_108 = arith.constant 0 : index
    %c0_109 = arith.constant 0 : index
    %117 = vector.load %arg11[%c0_106, %c0_107, %c0_108, %c0_109] : memref<1x2x1x32xf32, #tpu.memory_space<vmem>>, vector<1x1x1x32xf32>
    %118 = vector.shape_cast %117 : vector<1x1x1x32xf32> to vector<1x32xf32>
    %119 = vector.broadcast %118 : vector<1x32xf32> to vector<64x32xf32>
    %120 = arith.addf %116, %119 : vector<64x32xf32>
    %c0_110 = arith.constant 0 : index
    %c0_111 = arith.constant 0 : index
    %c0_112 = arith.constant 0 : index
    %c0_113 = arith.constant 0 : index
    %121 = vector.load %arg18[%c0_110, %c0_111, %c0_112, %c0_113] : memref<1x2x1x32xf32, #tpu.memory_space<vmem>>, vector<1x1x1x32xf32>
    %122 = vector.shape_cast %121 : vector<1x1x1x32xf32> to vector<1x32xf32>
    %c0_114 = arith.constant 0 : index
    %c0_115 = arith.constant 0 : index
    %c0_116 = arith.constant 0 : index
    %c0_117 = arith.constant 0 : index
    %123 = vector.load %arg19[%c0_114, %c0_115, %c0_116, %c0_117] : memref<1x2x1x32xf32, #tpu.memory_space<vmem>>, vector<1x1x1x32xf32>
    %124 = vector.shape_cast %123 : vector<1x1x1x32xf32> to vector<1x32xf32>
    %cst_118 = arith.constant dense<0.000000e+00> : vector<64xf32>
    %125 = vector.multi_reduction <add>, %120, %cst_118 [1] : vector<64x32xf32> to vector<64xf32>
    %126 = vector.shape_cast %125 : vector<64xf32> to vector<64x1xf32>
    %cst_119 = arith.constant 3.200000e+01 : f32
    %127 = vector.broadcast %cst_119 : f32 to vector<64x1xf32>
    %128 = arith.divf %126, %127 : vector<64x1xf32>
    %129 = vector.broadcast %128 : vector<64x1xf32> to vector<64x32xf32>
    %130 = arith.subf %120, %129 : vector<64x32xf32>
    %131 = arith.mulf %130, %130 : vector<64x32xf32>
    %cst_120 = arith.constant dense<0.000000e+00> : vector<64xf32>
    %132 = vector.multi_reduction <add>, %131, %cst_120 [1] : vector<64x32xf32> to vector<64xf32>
    %133 = vector.shape_cast %132 : vector<64xf32> to vector<64x1xf32>
    %cst_121 = arith.constant 3.200000e+01 : f32
    %134 = vector.broadcast %cst_121 : f32 to vector<64x1xf32>
    %135 = arith.divf %133, %134 : vector<64x1xf32>
    %136 = vector.broadcast %128 : vector<64x1xf32> to vector<64x32xf32>
    %137 = arith.subf %120, %136 : vector<64x32xf32>
    %cst_122 = arith.constant 9.99999974E-6 : f32
    %138 = vector.broadcast %cst_122 : f32 to vector<64x1xf32>
    %139 = arith.addf %135, %138 : vector<64x1xf32>
    %140 = math.rsqrt %139 : vector<64x1xf32>
    %141 = vector.broadcast %140 : vector<64x1xf32> to vector<64x32xf32>
    %142 = arith.mulf %137, %141 : vector<64x32xf32>
    %143 = vector.broadcast %122 : vector<1x32xf32> to vector<64x32xf32>
    %144 = arith.mulf %142, %143 : vector<64x32xf32>
    %145 = vector.broadcast %124 : vector<1x32xf32> to vector<64x32xf32>
    %146 = arith.addf %144, %145 : vector<64x32xf32>
    %c0_123 = arith.constant 0 : index
    %c0_124 = arith.constant 0 : index
    %c0_125 = arith.constant 0 : index
    %c0_126 = arith.constant 0 : index
    %147 = vector.load %arg12[%c0_123, %c0_124, %c0_125, %c0_126] : memref<1x2x32x64xf32, #tpu.memory_space<vmem>>, vector<1x1x32x64xf32>
    %148 = vector.shape_cast %147 : vector<1x1x32x64xf32> to vector<32x64xf32>
    %cst_127 = arith.constant dense<0.000000e+00> : vector<64x64xf32>
    %149 = tpu.matmul %146, %148, %cst_127 {dimension_numbers = #tpu.dot_dimension_numbers<[1], [0], [0], [1], [0, 0, 1, 1], [], []>} : vector<64x32xf32>, vector<32x64xf32>, vector<64x64xf32> -> vector<64x64xf32>
    %c0_128 = arith.constant 0 : index
    %c0_129 = arith.constant 0 : index
    %c0_130 = arith.constant 0 : index
    %c0_131 = arith.constant 0 : index
    %150 = vector.load %arg13[%c0_128, %c0_129, %c0_130, %c0_131] : memref<1x2x1x64xf32, #tpu.memory_space<vmem>>, vector<1x1x1x64xf32>
    %151 = vector.shape_cast %150 : vector<1x1x1x64xf32> to vector<1x64xf32>
    %152 = vector.broadcast %151 : vector<1x64xf32> to vector<64x64xf32>
    %153 = arith.addf %149, %152 : vector<64x64xf32>
    %cst_132 = arith.constant 5.000000e-01 : f32
    %154 = vector.broadcast %cst_132 : f32 to vector<64x64xf32>
    %155 = arith.mulf %154, %153 : vector<64x64xf32>
    %cst_133 = arith.constant 0.707106769 : f32
    %156 = vector.broadcast %cst_133 : f32 to vector<64x64xf32>
    %157 = arith.mulf %153, %156 : vector<64x64xf32>
    %158 = math.absf %157 : vector<64x64xf32>
    %cst_134 = arith.constant 0.327591091 : f32
    %159 = vector.broadcast %cst_134 : f32 to vector<64x64xf32>
    %160 = arith.mulf %159, %158 : vector<64x64xf32>
    %cst_135 = arith.constant 1.000000e+00 : f32
    %161 = vector.broadcast %cst_135 : f32 to vector<64x64xf32>
    %162 = arith.addf %161, %160 : vector<64x64xf32>
    %cst_136 = arith.constant 1.000000e+00 : f32
    %163 = vector.broadcast %cst_136 : f32 to vector<64x64xf32>
    %164 = arith.divf %163, %162 : vector<64x64xf32>
    %cst_137 = arith.constant 1.06140542 : f32
    %165 = vector.broadcast %cst_137 : f32 to vector<64x64xf32>
    %166 = arith.mulf %165, %164 : vector<64x64xf32>
    %cst_138 = arith.constant -1.45315206 : f32
    %167 = vector.broadcast %cst_138 : f32 to vector<64x64xf32>
    %168 = arith.addf %166, %167 : vector<64x64xf32>
    %169 = arith.mulf %168, %164 : vector<64x64xf32>
    %cst_139 = arith.constant 1.42141378 : f32
    %170 = vector.broadcast %cst_139 : f32 to vector<64x64xf32>
    %171 = arith.addf %169, %170 : vector<64x64xf32>
    %172 = arith.mulf %171, %164 : vector<64x64xf32>
    %cst_140 = arith.constant -0.284496725 : f32
    %173 = vector.broadcast %cst_140 : f32 to vector<64x64xf32>
    %174 = arith.addf %172, %173 : vector<64x64xf32>
    %175 = arith.mulf %174, %164 : vector<64x64xf32>
    %cst_141 = arith.constant 0.254829586 : f32
    %176 = vector.broadcast %cst_141 : f32 to vector<64x64xf32>
    %177 = arith.addf %175, %176 : vector<64x64xf32>
    %178 = arith.mulf %177, %164 : vector<64x64xf32>
    %cst_142 = arith.constant 0.000000e+00 : f32
    %179 = vector.broadcast %cst_142 : f32 to vector<64x64xf32>
    %180 = arith.subf %179, %158 : vector<64x64xf32>
    %181 = arith.mulf %180, %158 : vector<64x64xf32>
    %182 = math.exp %181 : vector<64x64xf32>
    %183 = arith.mulf %178, %182 : vector<64x64xf32>
    %cst_143 = arith.constant 1.000000e+00 : f32
    %184 = vector.broadcast %cst_143 : f32 to vector<64x64xf32>
    %185 = arith.subf %184, %183 : vector<64x64xf32>
    %cst_144 = arith.constant 0.000000e+00 : f32
    %186 = vector.broadcast %cst_144 : f32 to vector<64x64xf32>
    %187 = arith.cmpf oge, %157, %186 : vector<64x64xf32>
    %cst_145 = arith.constant 0.000000e+00 : f32
    %188 = vector.broadcast %cst_145 : f32 to vector<64x64xf32>
    %189 = arith.subf %188, %185 : vector<64x64xf32>
    %190 = arith.select %187, %185, %189 : vector<64x64xi1>, vector<64x64xf32>
    %cst_146 = arith.constant 1.000000e+00 : f32
    %191 = vector.broadcast %cst_146 : f32 to vector<64x64xf32>
    %192 = arith.addf %191, %190 : vector<64x64xf32>
    %193 = arith.mulf %155, %192 : vector<64x64xf32>
    %c0_147 = arith.constant 0 : index
    %c0_148 = arith.constant 0 : index
    %c0_149 = arith.constant 0 : index
    %c0_150 = arith.constant 0 : index
    %194 = vector.load %arg14[%c0_147, %c0_148, %c0_149, %c0_150] : memref<1x2x64x32xf32, #tpu.memory_space<vmem>>, vector<1x1x64x32xf32>
    %195 = vector.shape_cast %194 : vector<1x1x64x32xf32> to vector<64x32xf32>
    %cst_151 = arith.constant dense<0.000000e+00> : vector<64x32xf32>
    %196 = tpu.matmul %193, %195, %cst_151 {dimension_numbers = #tpu.dot_dimension_numbers<[1], [0], [0], [1], [0, 0, 1, 1], [], []>} : vector<64x64xf32>, vector<64x32xf32>, vector<64x32xf32> -> vector<64x32xf32>
    %197 = arith.addf %120, %196 : vector<64x32xf32>
    %c0_152 = arith.constant 0 : index
    %c0_153 = arith.constant 0 : index
    %c0_154 = arith.constant 0 : index
    %c0_155 = arith.constant 0 : index
    %198 = vector.load %arg15[%c0_152, %c0_153, %c0_154, %c0_155] : memref<1x2x1x32xf32, #tpu.memory_space<vmem>>, vector<1x1x1x32xf32>
    %199 = vector.shape_cast %198 : vector<1x1x1x32xf32> to vector<1x32xf32>
    %200 = vector.broadcast %199 : vector<1x32xf32> to vector<64x32xf32>
    %201 = arith.addf %197, %200 : vector<64x32xf32>
    %c0_156 = arith.constant 0 : index
    %c1_157 = arith.constant 1 : index
    %c0_158 = arith.constant 0 : index
    %c0_159 = arith.constant 0 : index
    %202 = vector.load %arg16[%c0_156, %c1_157, %c0_158, %c0_159] : memref<1x2x1x32xf32, #tpu.memory_space<vmem>>, vector<1x1x1x32xf32>
    %203 = vector.shape_cast %202 : vector<1x1x1x32xf32> to vector<1x32xf32>
    %c0_160 = arith.constant 0 : index
    %c1_161 = arith.constant 1 : index
    %c0_162 = arith.constant 0 : index
    %c0_163 = arith.constant 0 : index
    %204 = vector.load %arg17[%c0_160, %c1_161, %c0_162, %c0_163] : memref<1x2x1x32xf32, #tpu.memory_space<vmem>>, vector<1x1x1x32xf32>
    %205 = vector.shape_cast %204 : vector<1x1x1x32xf32> to vector<1x32xf32>
    %cst_164 = arith.constant dense<0.000000e+00> : vector<64xf32>
    %206 = vector.multi_reduction <add>, %201, %cst_164 [1] : vector<64x32xf32> to vector<64xf32>
    %207 = vector.shape_cast %206 : vector<64xf32> to vector<64x1xf32>
    %cst_165 = arith.constant 3.200000e+01 : f32
    %208 = vector.broadcast %cst_165 : f32 to vector<64x1xf32>
    %209 = arith.divf %207, %208 : vector<64x1xf32>
    %210 = vector.broadcast %209 : vector<64x1xf32> to vector<64x32xf32>
    %211 = arith.subf %201, %210 : vector<64x32xf32>
    %212 = arith.mulf %211, %211 : vector<64x32xf32>
    %cst_166 = arith.constant dense<0.000000e+00> : vector<64xf32>
    %213 = vector.multi_reduction <add>, %212, %cst_166 [1] : vector<64x32xf32> to vector<64xf32>
    %214 = vector.shape_cast %213 : vector<64xf32> to vector<64x1xf32>
    %cst_167 = arith.constant 3.200000e+01 : f32
    %215 = vector.broadcast %cst_167 : f32 to vector<64x1xf32>
    %216 = arith.divf %214, %215 : vector<64x1xf32>
    %217 = vector.broadcast %209 : vector<64x1xf32> to vector<64x32xf32>
    %218 = arith.subf %201, %217 : vector<64x32xf32>
    %cst_168 = arith.constant 9.99999974E-6 : f32
    %219 = vector.broadcast %cst_168 : f32 to vector<64x1xf32>
    %220 = arith.addf %216, %219 : vector<64x1xf32>
    %221 = math.rsqrt %220 : vector<64x1xf32>
    %222 = vector.broadcast %221 : vector<64x1xf32> to vector<64x32xf32>
    %223 = arith.mulf %218, %222 : vector<64x32xf32>
    %224 = vector.broadcast %203 : vector<1x32xf32> to vector<64x32xf32>
    %225 = arith.mulf %223, %224 : vector<64x32xf32>
    %226 = vector.broadcast %205 : vector<1x32xf32> to vector<64x32xf32>
    %227 = arith.addf %225, %226 : vector<64x32xf32>
    %c0_169 = arith.constant 0 : index
    %c1_170 = arith.constant 1 : index
    %c0_171 = arith.constant 0 : index
    %c0_172 = arith.constant 0 : index
    %c0_173 = arith.constant 0 : index
    %228 = vector.load %arg4[%c0_169, %c1_170, %c0_171, %c0_172, %c0_173] : memref<1x2x2x32x16xf32, #tpu.memory_space<vmem>>, vector<1x1x1x32x16xf32>
    %229 = vector.shape_cast %228 : vector<1x1x1x32x16xf32> to vector<32x16xf32>
    %cst_174 = arith.constant dense<0.000000e+00> : vector<64x16xf32>
    %230 = tpu.matmul %227, %229, %cst_174 {dimension_numbers = #tpu.dot_dimension_numbers<[1], [0], [0], [1], [0, 0, 1, 1], [], []>} : vector<64x32xf32>, vector<32x16xf32>, vector<64x16xf32> -> vector<64x16xf32>
    %c0_175 = arith.constant 0 : index
    %c1_176 = arith.constant 1 : index
    %c0_177 = arith.constant 0 : index
    %c0_178 = arith.constant 0 : index
    %c0_179 = arith.constant 0 : index
    %231 = vector.load %arg5[%c0_175, %c1_176, %c0_177, %c0_178, %c0_179] : memref<1x2x2x1x16xf32, #tpu.memory_space<vmem>>, vector<1x1x1x1x16xf32>
    %232 = vector.shape_cast %231 : vector<1x1x1x1x16xf32> to vector<1x16xf32>
    %233 = vector.broadcast %232 : vector<1x16xf32> to vector<64x16xf32>
    %234 = arith.addf %230, %233 : vector<64x16xf32>
    %c0_180 = arith.constant 0 : index
    %c1_181 = arith.constant 1 : index
    %c0_182 = arith.constant 0 : index
    %c0_183 = arith.constant 0 : index
    %c0_184 = arith.constant 0 : index
    %235 = vector.load %arg6[%c0_180, %c1_181, %c0_182, %c0_183, %c0_184] : memref<1x2x2x32x16xf32, #tpu.memory_space<vmem>>, vector<1x1x1x32x16xf32>
    %236 = vector.shape_cast %235 : vector<1x1x1x32x16xf32> to vector<32x16xf32>
    %cst_185 = arith.constant dense<0.000000e+00> : vector<64x16xf32>
    %237 = tpu.matmul %227, %236, %cst_185 {dimension_numbers = #tpu.dot_dimension_numbers<[1], [0], [0], [1], [0, 0, 1, 1], [], []>} : vector<64x32xf32>, vector<32x16xf32>, vector<64x16xf32> -> vector<64x16xf32>
    %c0_186 = arith.constant 0 : index
    %c1_187 = arith.constant 1 : index
    %c0_188 = arith.constant 0 : index
    %c0_189 = arith.constant 0 : index
    %c0_190 = arith.constant 0 : index
    %238 = vector.load %arg7[%c0_186, %c1_187, %c0_188, %c0_189, %c0_190] : memref<1x2x2x1x16xf32, #tpu.memory_space<vmem>>, vector<1x1x1x1x16xf32>
    %239 = vector.shape_cast %238 : vector<1x1x1x1x16xf32> to vector<1x16xf32>
    %240 = vector.broadcast %239 : vector<1x16xf32> to vector<64x16xf32>
    %241 = arith.addf %237, %240 : vector<64x16xf32>
    %c0_191 = arith.constant 0 : index
    %c1_192 = arith.constant 1 : index
    %c0_193 = arith.constant 0 : index
    %c0_194 = arith.constant 0 : index
    %c0_195 = arith.constant 0 : index
    %242 = vector.load %arg8[%c0_191, %c1_192, %c0_193, %c0_194, %c0_195] : memref<1x2x2x32x16xf32, #tpu.memory_space<vmem>>, vector<1x1x1x32x16xf32>
    %243 = vector.shape_cast %242 : vector<1x1x1x32x16xf32> to vector<32x16xf32>
    %cst_196 = arith.constant dense<0.000000e+00> : vector<64x16xf32>
    %244 = tpu.matmul %227, %243, %cst_196 {dimension_numbers = #tpu.dot_dimension_numbers<[1], [0], [0], [1], [0, 0, 1, 1], [], []>} : vector<64x32xf32>, vector<32x16xf32>, vector<64x16xf32> -> vector<64x16xf32>
    %c0_197 = arith.constant 0 : index
    %c1_198 = arith.constant 1 : index
    %c0_199 = arith.constant 0 : index
    %c0_200 = arith.constant 0 : index
    %c0_201 = arith.constant 0 : index
    %245 = vector.load %arg9[%c0_197, %c1_198, %c0_199, %c0_200, %c0_201] : memref<1x2x2x1x16xf32, #tpu.memory_space<vmem>>, vector<1x1x1x1x16xf32>
    %246 = vector.shape_cast %245 : vector<1x1x1x1x16xf32> to vector<1x16xf32>
    %247 = vector.broadcast %246 : vector<1x16xf32> to vector<64x16xf32>
    %248 = arith.addf %244, %247 : vector<64x16xf32>
    %249 = vector.shape_cast %234 : vector<64x16xf32> to vector<8x8x16xf32>
    %250 = vector.shape_cast %241 : vector<64x16xf32> to vector<8x8x16xf32>
    %251 = vector.shape_cast %248 : vector<64x16xf32> to vector<8x8x16xf32>
    "tpu.trace_start"() <{level = 10 : i32, message = "bqd,bkd->bqk"}> : () -> ()
    %cst_202 = arith.constant dense<0.000000e+00> : vector<8x8x8xf32>
    %252 = tpu.matmul %249, %250, %cst_202 {dimension_numbers = #tpu.dot_dimension_numbers<[2], [2], [1], [1], [0, 0, 0, 1, 1, 1], [0], [0]>} : vector<8x8x16xf32>, vector<8x8x16xf32>, vector<8x8x8xf32> -> vector<8x8x8xf32>
    "tpu.trace_stop"() : () -> ()
    %cst_203 = arith.constant dense<0xFF800000> : vector<8x8xf32>
    %253 = vector.multi_reduction <maximumf>, %252, %cst_203 [2] : vector<8x8x8xf32> to vector<8x8xf32>
    %254 = vector.shape_cast %253 : vector<8x8xf32> to vector<8x8x1xf32>
    %255 = vector.broadcast %254 : vector<8x8x1xf32> to vector<8x8x8xf32>
    %256 = arith.subf %252, %255 : vector<8x8x8xf32>
    %257 = math.exp %256 : vector<8x8x8xf32>
    %cst_204 = arith.constant dense<0.000000e+00> : vector<8x8xf32>
    %258 = vector.multi_reduction <add>, %257, %cst_204 [2] : vector<8x8x8xf32> to vector<8x8xf32>
    %259 = vector.shape_cast %258 : vector<8x8xf32> to vector<8x8x1xf32>
    %260 = tpu.reciprocal %259 {approx = true} : vector<8x8x1xf32> -> vector<8x8x1xf32>
    %261 = vector.broadcast %260 : vector<8x8x1xf32> to vector<8x8x8xf32>
    %262 = arith.mulf %257, %261 : vector<8x8x8xf32>
    "tpu.trace_start"() <{level = 10 : i32, message = "bqk,bkd->bqd"}> : () -> ()
    %cst_205 = arith.constant dense<0.000000e+00> : vector<8x8x16xf32>
    %263 = tpu.matmul %262, %251, %cst_205 {dimension_numbers = #tpu.dot_dimension_numbers<[2], [1], [1], [2], [0, 0, 0, 1, 1, 2], [0], [0]>} : vector<8x8x8xf32>, vector<8x8x16xf32>, vector<8x8x16xf32> -> vector<8x8x16xf32>
    "tpu.trace_stop"() : () -> ()
    %264 = vector.shape_cast %263 : vector<8x8x16xf32> to vector<64x16xf32>
    %c0_206 = arith.constant 0 : index
    %c1_207 = arith.constant 1 : index
    %c0_208 = arith.constant 0 : index
    %c0_209 = arith.constant 0 : index
    %c0_210 = arith.constant 0 : index
    %265 = vector.load %arg10[%c0_206, %c1_207, %c0_208, %c0_209, %c0_210] : memref<1x2x2x16x32xf32, #tpu.memory_space<vmem>>, vector<1x1x1x16x32xf32>
    %266 = vector.shape_cast %265 : vector<1x1x1x16x32xf32> to vector<16x32xf32>
    %cst_211 = arith.constant dense<0.000000e+00> : vector<64x32xf32>
    %267 = tpu.matmul %264, %266, %cst_211 {dimension_numbers = #tpu.dot_dimension_numbers<[1], [0], [0], [1], [0, 0, 1, 1], [], []>} : vector<64x16xf32>, vector<16x32xf32>, vector<64x32xf32> -> vector<64x32xf32>
    %c0_212 = arith.constant 0 : index
    %c1_213 = arith.constant 1 : index
    %c1_214 = arith.constant 1 : index
    %c0_215 = arith.constant 0 : index
    %c0_216 = arith.constant 0 : index
    %268 = vector.load %arg4[%c0_212, %c1_213, %c1_214, %c0_215, %c0_216] : memref<1x2x2x32x16xf32, #tpu.memory_space<vmem>>, vector<1x1x1x32x16xf32>
    %269 = vector.shape_cast %268 : vector<1x1x1x32x16xf32> to vector<32x16xf32>
    %cst_217 = arith.constant dense<0.000000e+00> : vector<64x16xf32>
    %270 = tpu.matmul %227, %269, %cst_217 {dimension_numbers = #tpu.dot_dimension_numbers<[1], [0], [0], [1], [0, 0, 1, 1], [], []>} : vector<64x32xf32>, vector<32x16xf32>, vector<64x16xf32> -> vector<64x16xf32>
    %c0_218 = arith.constant 0 : index
    %c1_219 = arith.constant 1 : index
    %c1_220 = arith.constant 1 : index
    %c0_221 = arith.constant 0 : index
    %c0_222 = arith.constant 0 : index
    %271 = vector.load %arg5[%c0_218, %c1_219, %c1_220, %c0_221, %c0_222] : memref<1x2x2x1x16xf32, #tpu.memory_space<vmem>>, vector<1x1x1x1x16xf32>
    %272 = vector.shape_cast %271 : vector<1x1x1x1x16xf32> to vector<1x16xf32>
    %273 = vector.broadcast %272 : vector<1x16xf32> to vector<64x16xf32>
    %274 = arith.addf %270, %273 : vector<64x16xf32>
    %c0_223 = arith.constant 0 : index
    %c1_224 = arith.constant 1 : index
    %c1_225 = arith.constant 1 : index
    %c0_226 = arith.constant 0 : index
    %c0_227 = arith.constant 0 : index
    %275 = vector.load %arg6[%c0_223, %c1_224, %c1_225, %c0_226, %c0_227] : memref<1x2x2x32x16xf32, #tpu.memory_space<vmem>>, vector<1x1x1x32x16xf32>
    %276 = vector.shape_cast %275 : vector<1x1x1x32x16xf32> to vector<32x16xf32>
    %cst_228 = arith.constant dense<0.000000e+00> : vector<64x16xf32>
    %277 = tpu.matmul %227, %276, %cst_228 {dimension_numbers = #tpu.dot_dimension_numbers<[1], [0], [0], [1], [0, 0, 1, 1], [], []>} : vector<64x32xf32>, vector<32x16xf32>, vector<64x16xf32> -> vector<64x16xf32>
    %c0_229 = arith.constant 0 : index
    %c1_230 = arith.constant 1 : index
    %c1_231 = arith.constant 1 : index
    %c0_232 = arith.constant 0 : index
    %c0_233 = arith.constant 0 : index
    %278 = vector.load %arg7[%c0_229, %c1_230, %c1_231, %c0_232, %c0_233] : memref<1x2x2x1x16xf32, #tpu.memory_space<vmem>>, vector<1x1x1x1x16xf32>
    %279 = vector.shape_cast %278 : vector<1x1x1x1x16xf32> to vector<1x16xf32>
    %280 = vector.broadcast %279 : vector<1x16xf32> to vector<64x16xf32>
    %281 = arith.addf %277, %280 : vector<64x16xf32>
    %c0_234 = arith.constant 0 : index
    %c1_235 = arith.constant 1 : index
    %c1_236 = arith.constant 1 : index
    %c0_237 = arith.constant 0 : index
    %c0_238 = arith.constant 0 : index
    %282 = vector.load %arg8[%c0_234, %c1_235, %c1_236, %c0_237, %c0_238] : memref<1x2x2x32x16xf32, #tpu.memory_space<vmem>>, vector<1x1x1x32x16xf32>
    %283 = vector.shape_cast %282 : vector<1x1x1x32x16xf32> to vector<32x16xf32>
    %cst_239 = arith.constant dense<0.000000e+00> : vector<64x16xf32>
    %284 = tpu.matmul %227, %283, %cst_239 {dimension_numbers = #tpu.dot_dimension_numbers<[1], [0], [0], [1], [0, 0, 1, 1], [], []>} : vector<64x32xf32>, vector<32x16xf32>, vector<64x16xf32> -> vector<64x16xf32>
    %c0_240 = arith.constant 0 : index
    %c1_241 = arith.constant 1 : index
    %c1_242 = arith.constant 1 : index
    %c0_243 = arith.constant 0 : index
    %c0_244 = arith.constant 0 : index
    %285 = vector.load %arg9[%c0_240, %c1_241, %c1_242, %c0_243, %c0_244] : memref<1x2x2x1x16xf32, #tpu.memory_space<vmem>>, vector<1x1x1x1x16xf32>
    %286 = vector.shape_cast %285 : vector<1x1x1x1x16xf32> to vector<1x16xf32>
    %287 = vector.broadcast %286 : vector<1x16xf32> to vector<64x16xf32>
    %288 = arith.addf %284, %287 : vector<64x16xf32>
    %289 = vector.shape_cast %274 : vector<64x16xf32> to vector<8x8x16xf32>
    %290 = vector.shape_cast %281 : vector<64x16xf32> to vector<8x8x16xf32>
    %291 = vector.shape_cast %288 : vector<64x16xf32> to vector<8x8x16xf32>
    "tpu.trace_start"() <{level = 10 : i32, message = "bqd,bkd->bqk"}> : () -> ()
    %cst_245 = arith.constant dense<0.000000e+00> : vector<8x8x8xf32>
    %292 = tpu.matmul %289, %290, %cst_245 {dimension_numbers = #tpu.dot_dimension_numbers<[2], [2], [1], [1], [0, 0, 0, 1, 1, 1], [0], [0]>} : vector<8x8x16xf32>, vector<8x8x16xf32>, vector<8x8x8xf32> -> vector<8x8x8xf32>
    "tpu.trace_stop"() : () -> ()
    %cst_246 = arith.constant dense<0xFF800000> : vector<8x8xf32>
    %293 = vector.multi_reduction <maximumf>, %292, %cst_246 [2] : vector<8x8x8xf32> to vector<8x8xf32>
    %294 = vector.shape_cast %293 : vector<8x8xf32> to vector<8x8x1xf32>
    %295 = vector.broadcast %294 : vector<8x8x1xf32> to vector<8x8x8xf32>
    %296 = arith.subf %292, %295 : vector<8x8x8xf32>
    %297 = math.exp %296 : vector<8x8x8xf32>
    %cst_247 = arith.constant dense<0.000000e+00> : vector<8x8xf32>
    %298 = vector.multi_reduction <add>, %297, %cst_247 [2] : vector<8x8x8xf32> to vector<8x8xf32>
    %299 = vector.shape_cast %298 : vector<8x8xf32> to vector<8x8x1xf32>
    %300 = tpu.reciprocal %299 {approx = true} : vector<8x8x1xf32> -> vector<8x8x1xf32>
    %301 = vector.broadcast %300 : vector<8x8x1xf32> to vector<8x8x8xf32>
    %302 = arith.mulf %297, %301 : vector<8x8x8xf32>
    "tpu.trace_start"() <{level = 10 : i32, message = "bqk,bkd->bqd"}> : () -> ()
    %cst_248 = arith.constant dense<0.000000e+00> : vector<8x8x16xf32>
    %303 = tpu.matmul %302, %291, %cst_248 {dimension_numbers = #tpu.dot_dimension_numbers<[2], [1], [1], [2], [0, 0, 0, 1, 1, 2], [0], [0]>} : vector<8x8x8xf32>, vector<8x8x16xf32>, vector<8x8x16xf32> -> vector<8x8x16xf32>
    "tpu.trace_stop"() : () -> ()
    %304 = vector.shape_cast %303 : vector<8x8x16xf32> to vector<64x16xf32>
    %c0_249 = arith.constant 0 : index
    %c1_250 = arith.constant 1 : index
    %c1_251 = arith.constant 1 : index
    %c0_252 = arith.constant 0 : index
    %c0_253 = arith.constant 0 : index
    %305 = vector.load %arg10[%c0_249, %c1_250, %c1_251, %c0_252, %c0_253] : memref<1x2x2x16x32xf32, #tpu.memory_space<vmem>>, vector<1x1x1x16x32xf32>
    %306 = vector.shape_cast %305 : vector<1x1x1x16x32xf32> to vector<16x32xf32>
    %cst_254 = arith.constant dense<0.000000e+00> : vector<64x32xf32>
    %307 = tpu.matmul %304, %306, %cst_254 {dimension_numbers = #tpu.dot_dimension_numbers<[1], [0], [0], [1], [0, 0, 1, 1], [], []>} : vector<64x16xf32>, vector<16x32xf32>, vector<64x32xf32> -> vector<64x32xf32>
    %308 = arith.addf %267, %307 : vector<64x32xf32>
    %309 = arith.addf %201, %308 : vector<64x32xf32>
    %c0_255 = arith.constant 0 : index
    %c1_256 = arith.constant 1 : index
    %c0_257 = arith.constant 0 : index
    %c0_258 = arith.constant 0 : index
    %310 = vector.load %arg11[%c0_255, %c1_256, %c0_257, %c0_258] : memref<1x2x1x32xf32, #tpu.memory_space<vmem>>, vector<1x1x1x32xf32>
    %311 = vector.shape_cast %310 : vector<1x1x1x32xf32> to vector<1x32xf32>
    %312 = vector.broadcast %311 : vector<1x32xf32> to vector<64x32xf32>
    %313 = arith.addf %309, %312 : vector<64x32xf32>
    %c0_259 = arith.constant 0 : index
    %c1_260 = arith.constant 1 : index
    %c0_261 = arith.constant 0 : index
    %c0_262 = arith.constant 0 : index
    %314 = vector.load %arg18[%c0_259, %c1_260, %c0_261, %c0_262] : memref<1x2x1x32xf32, #tpu.memory_space<vmem>>, vector<1x1x1x32xf32>
    %315 = vector.shape_cast %314 : vector<1x1x1x32xf32> to vector<1x32xf32>
    %c0_263 = arith.constant 0 : index
    %c1_264 = arith.constant 1 : index
    %c0_265 = arith.constant 0 : index
    %c0_266 = arith.constant 0 : index
    %316 = vector.load %arg19[%c0_263, %c1_264, %c0_265, %c0_266] : memref<1x2x1x32xf32, #tpu.memory_space<vmem>>, vector<1x1x1x32xf32>
    %317 = vector.shape_cast %316 : vector<1x1x1x32xf32> to vector<1x32xf32>
    %cst_267 = arith.constant dense<0.000000e+00> : vector<64xf32>
    %318 = vector.multi_reduction <add>, %313, %cst_267 [1] : vector<64x32xf32> to vector<64xf32>
    %319 = vector.shape_cast %318 : vector<64xf32> to vector<64x1xf32>
    %cst_268 = arith.constant 3.200000e+01 : f32
    %320 = vector.broadcast %cst_268 : f32 to vector<64x1xf32>
    %321 = arith.divf %319, %320 : vector<64x1xf32>
    %322 = vector.broadcast %321 : vector<64x1xf32> to vector<64x32xf32>
    %323 = arith.subf %313, %322 : vector<64x32xf32>
    %324 = arith.mulf %323, %323 : vector<64x32xf32>
    %cst_269 = arith.constant dense<0.000000e+00> : vector<64xf32>
    %325 = vector.multi_reduction <add>, %324, %cst_269 [1] : vector<64x32xf32> to vector<64xf32>
    %326 = vector.shape_cast %325 : vector<64xf32> to vector<64x1xf32>
    %cst_270 = arith.constant 3.200000e+01 : f32
    %327 = vector.broadcast %cst_270 : f32 to vector<64x1xf32>
    %328 = arith.divf %326, %327 : vector<64x1xf32>
    %329 = vector.broadcast %321 : vector<64x1xf32> to vector<64x32xf32>
    %330 = arith.subf %313, %329 : vector<64x32xf32>
    %cst_271 = arith.constant 9.99999974E-6 : f32
    %331 = vector.broadcast %cst_271 : f32 to vector<64x1xf32>
    %332 = arith.addf %328, %331 : vector<64x1xf32>
    %333 = math.rsqrt %332 : vector<64x1xf32>
    %334 = vector.broadcast %333 : vector<64x1xf32> to vector<64x32xf32>
    %335 = arith.mulf %330, %334 : vector<64x32xf32>
    %336 = vector.broadcast %315 : vector<1x32xf32> to vector<64x32xf32>
    %337 = arith.mulf %335, %336 : vector<64x32xf32>
    %338 = vector.broadcast %317 : vector<1x32xf32> to vector<64x32xf32>
    %339 = arith.addf %337, %338 : vector<64x32xf32>
    %c0_272 = arith.constant 0 : index
    %c1_273 = arith.constant 1 : index
    %c0_274 = arith.constant 0 : index
    %c0_275 = arith.constant 0 : index
    %340 = vector.load %arg12[%c0_272, %c1_273, %c0_274, %c0_275] : memref<1x2x32x64xf32, #tpu.memory_space<vmem>>, vector<1x1x32x64xf32>
    %341 = vector.shape_cast %340 : vector<1x1x32x64xf32> to vector<32x64xf32>
    %cst_276 = arith.constant dense<0.000000e+00> : vector<64x64xf32>
    %342 = tpu.matmul %339, %341, %cst_276 {dimension_numbers = #tpu.dot_dimension_numbers<[1], [0], [0], [1], [0, 0, 1, 1], [], []>} : vector<64x32xf32>, vector<32x64xf32>, vector<64x64xf32> -> vector<64x64xf32>
    %c0_277 = arith.constant 0 : index
    %c1_278 = arith.constant 1 : index
    %c0_279 = arith.constant 0 : index
    %c0_280 = arith.constant 0 : index
    %343 = vector.load %arg13[%c0_277, %c1_278, %c0_279, %c0_280] : memref<1x2x1x64xf32, #tpu.memory_space<vmem>>, vector<1x1x1x64xf32>
    %344 = vector.shape_cast %343 : vector<1x1x1x64xf32> to vector<1x64xf32>
    %345 = vector.broadcast %344 : vector<1x64xf32> to vector<64x64xf32>
    %346 = arith.addf %342, %345 : vector<64x64xf32>
    %cst_281 = arith.constant 5.000000e-01 : f32
    %347 = vector.broadcast %cst_281 : f32 to vector<64x64xf32>
    %348 = arith.mulf %347, %346 : vector<64x64xf32>
    %cst_282 = arith.constant 0.707106769 : f32
    %349 = vector.broadcast %cst_282 : f32 to vector<64x64xf32>
    %350 = arith.mulf %346, %349 : vector<64x64xf32>
    %351 = math.absf %350 : vector<64x64xf32>
    %cst_283 = arith.constant 0.327591091 : f32
    %352 = vector.broadcast %cst_283 : f32 to vector<64x64xf32>
    %353 = arith.mulf %352, %351 : vector<64x64xf32>
    %cst_284 = arith.constant 1.000000e+00 : f32
    %354 = vector.broadcast %cst_284 : f32 to vector<64x64xf32>
    %355 = arith.addf %354, %353 : vector<64x64xf32>
    %cst_285 = arith.constant 1.000000e+00 : f32
    %356 = vector.broadcast %cst_285 : f32 to vector<64x64xf32>
    %357 = arith.divf %356, %355 : vector<64x64xf32>
    %cst_286 = arith.constant 1.06140542 : f32
    %358 = vector.broadcast %cst_286 : f32 to vector<64x64xf32>
    %359 = arith.mulf %358, %357 : vector<64x64xf32>
    %cst_287 = arith.constant -1.45315206 : f32
    %360 = vector.broadcast %cst_287 : f32 to vector<64x64xf32>
    %361 = arith.addf %359, %360 : vector<64x64xf32>
    %362 = arith.mulf %361, %357 : vector<64x64xf32>
    %cst_288 = arith.constant 1.42141378 : f32
    %363 = vector.broadcast %cst_288 : f32 to vector<64x64xf32>
    %364 = arith.addf %362, %363 : vector<64x64xf32>
    %365 = arith.mulf %364, %357 : vector<64x64xf32>
    %cst_289 = arith.constant -0.284496725 : f32
    %366 = vector.broadcast %cst_289 : f32 to vector<64x64xf32>
    %367 = arith.addf %365, %366 : vector<64x64xf32>
    %368 = arith.mulf %367, %357 : vector<64x64xf32>
    %cst_290 = arith.constant 0.254829586 : f32
    %369 = vector.broadcast %cst_290 : f32 to vector<64x64xf32>
    %370 = arith.addf %368, %369 : vector<64x64xf32>
    %371 = arith.mulf %370, %357 : vector<64x64xf32>
    %cst_291 = arith.constant 0.000000e+00 : f32
    %372 = vector.broadcast %cst_291 : f32 to vector<64x64xf32>
    %373 = arith.subf %372, %351 : vector<64x64xf32>
    %374 = arith.mulf %373, %351 : vector<64x64xf32>
    %375 = math.exp %374 : vector<64x64xf32>
    %376 = arith.mulf %371, %375 : vector<64x64xf32>
    %cst_292 = arith.constant 1.000000e+00 : f32
    %377 = vector.broadcast %cst_292 : f32 to vector<64x64xf32>
    %378 = arith.subf %377, %376 : vector<64x64xf32>
    %cst_293 = arith.constant 0.000000e+00 : f32
    %379 = vector.broadcast %cst_293 : f32 to vector<64x64xf32>
    %380 = arith.cmpf oge, %350, %379 : vector<64x64xf32>
    %cst_294 = arith.constant 0.000000e+00 : f32
    %381 = vector.broadcast %cst_294 : f32 to vector<64x64xf32>
    %382 = arith.subf %381, %378 : vector<64x64xf32>
    %383 = arith.select %380, %378, %382 : vector<64x64xi1>, vector<64x64xf32>
    %cst_295 = arith.constant 1.000000e+00 : f32
    %384 = vector.broadcast %cst_295 : f32 to vector<64x64xf32>
    %385 = arith.addf %384, %383 : vector<64x64xf32>
    %386 = arith.mulf %348, %385 : vector<64x64xf32>
    %c0_296 = arith.constant 0 : index
    %c1_297 = arith.constant 1 : index
    %c0_298 = arith.constant 0 : index
    %c0_299 = arith.constant 0 : index
    %387 = vector.load %arg14[%c0_296, %c1_297, %c0_298, %c0_299] : memref<1x2x64x32xf32, #tpu.memory_space<vmem>>, vector<1x1x64x32xf32>
    %388 = vector.shape_cast %387 : vector<1x1x64x32xf32> to vector<64x32xf32>
    %cst_300 = arith.constant dense<0.000000e+00> : vector<64x32xf32>
    %389 = tpu.matmul %386, %388, %cst_300 {dimension_numbers = #tpu.dot_dimension_numbers<[1], [0], [0], [1], [0, 0, 1, 1], [], []>} : vector<64x64xf32>, vector<64x32xf32>, vector<64x32xf32> -> vector<64x32xf32>
    %390 = arith.addf %313, %389 : vector<64x32xf32>
    %c0_301 = arith.constant 0 : index
    %c1_302 = arith.constant 1 : index
    %c0_303 = arith.constant 0 : index
    %c0_304 = arith.constant 0 : index
    %391 = vector.load %arg15[%c0_301, %c1_302, %c0_303, %c0_304] : memref<1x2x1x32xf32, #tpu.memory_space<vmem>>, vector<1x1x1x32xf32>
    %392 = vector.shape_cast %391 : vector<1x1x1x32xf32> to vector<1x32xf32>
    %393 = vector.broadcast %392 : vector<1x32xf32> to vector<64x32xf32>
    %394 = arith.addf %390, %393 : vector<64x32xf32>
    %c0_305 = arith.constant 0 : index
    %c0_306 = arith.constant 0 : index
    %c0_307 = arith.constant 0 : index
    %395 = vector.load %arg20[%c0_305, %c0_306, %c0_307] : memref<1x32x16xf32, #tpu.memory_space<vmem>>, vector<1x32x16xf32>
    %396 = vector.shape_cast %395 : vector<1x32x16xf32> to vector<32x16xf32>
    %cst_308 = arith.constant dense<0.000000e+00> : vector<64x16xf32>
    %397 = tpu.matmul %394, %396, %cst_308 {dimension_numbers = #tpu.dot_dimension_numbers<[1], [0], [0], [1], [0, 0, 1, 1], [], []>} : vector<64x32xf32>, vector<32x16xf32>, vector<64x16xf32> -> vector<64x16xf32>
    %c0_309 = arith.constant 0 : index
    %c0_310 = arith.constant 0 : index
    %c0_311 = arith.constant 0 : index
    %398 = vector.load %arg21[%c0_309, %c0_310, %c0_311] : memref<1x1x16xf32, #tpu.memory_space<vmem>>, vector<1x1x16xf32>
    %399 = vector.shape_cast %398 : vector<1x1x16xf32> to vector<1x16xf32>
    %400 = vector.broadcast %399 : vector<1x16xf32> to vector<64x16xf32>
    %401 = arith.addf %397, %400 : vector<64x16xf32>
    %c0_312 = arith.constant 0 : index
    %c0_313 = arith.constant 0 : index
    %c0_314 = arith.constant 0 : index
    %402 = vector.load %arg22[%c0_312, %c0_313, %c0_314] : memref<1x64x16xf32, #tpu.memory_space<vmem>>, vector<1x64x16xf32>
    %403 = vector.shape_cast %402 : vector<1x64x16xf32> to vector<64x16xf32>
    %404 = vector.shape_cast %401 : vector<64x16xf32> to vector<1x64x16xf32>
    tpu.vector_store %arg22[%c0_312, %c0_313, %c0_314], %404 {strides = array<i32>} : memref<1x64x16xf32, #tpu.memory_space<vmem>>, vector<1x64x16xf32>,
    return
  }
  func.func @transform_0(%arg0: i32) -> (i32, i32, i32) {
    %c0_i32 = arith.constant 0 : i32
    %c0_i32_0 = arith.constant 0 : i32
    %c0_i32_1 = arith.constant 0 : i32
    return %arg0, %c0_i32, %c0_i32_0 : i32, i32, i32
  }
  func.func @transform_1(%arg0: i32) -> (i32, i32, i32) {
    %c0_i32 = arith.constant 0 : i32
    %c0_i32_0 = arith.constant 0 : i32
    %c0_i32_1 = arith.constant 0 : i32
    return %arg0, %c0_i32, %c0_i32_0 : i32, i32, i32
  }
  func.func @transform_2(%arg0: i32) -> (i32, i32, i32) {
    %c0_i32 = arith.constant 0 : i32
    %c0_i32_0 = arith.constant 0 : i32
    %c0_i32_1 = arith.constant 0 : i32
    return %arg0, %c0_i32, %c0_i32_0 : i32, i32, i32
  }
  func.func @transform_3(%arg0: i32) -> (i32, i32, i32, i32, i32) {
    %c0_i32 = arith.constant 0 : i32
    %c0_i32_0 = arith.constant 0 : i32
    %c0_i32_1 = arith.constant 0 : i32
    %c0_i32_2 = arith.constant 0 : i32
    %c0_i32_3 = arith.constant 0 : i32
    return %arg0, %c0_i32, %c0_i32_0, %c0_i32_1, %c0_i32_2 : i32, i32, i32, i32, i32
  }
  func.func @transform_4(%arg0: i32) -> (i32, i32, i32, i32, i32) {
    %c0_i32 = arith.constant 0 : i32
    %c0_i32_0 = arith.constant 0 : i32
    %c0_i32_1 = arith.constant 0 : i32
    %c0_i32_2 = arith.constant 0 : i32
    %c0_i32_3 = arith.constant 0 : i32
    return %arg0, %c0_i32, %c0_i32_0, %c0_i32_1, %c0_i32_2 : i32, i32, i32, i32, i32
  }
  func.func @transform_5(%arg0: i32) -> (i32, i32, i32, i32, i32) {
    %c0_i32 = arith.constant 0 : i32
    %c0_i32_0 = arith.constant 0 : i32
    %c0_i32_1 = arith.constant 0 : i32
    %c0_i32_2 = arith.constant 0 : i32
    %c0_i32_3 = arith.constant 0 : i32
    return %arg0, %c0_i32, %c0_i32_0, %c0_i32_1, %c0_i32_2 : i32, i32, i32, i32, i32
  }
  func.func @transform_6(%arg0: i32) -> (i32, i32, i32, i32, i32) {
    %c0_i32 = arith.constant 0 : i32
    %c0_i32_0 = arith.constant 0 : i32
    %c0_i32_1 = arith.constant 0 : i32
    %c0_i32_2 = arith.constant 0 : i32
    %c0_i32_3 = arith.constant 0 : i32
    return %arg0, %c0_i32, %c0_i32_0, %c0_i32_1, %c0_i32_2 : i32, i32, i32, i32, i32
  }
  func.func @transform_7(%arg0: i32) -> (i32, i32, i32, i32, i32) {
    %c0_i32 = arith.constant 0 : i32
    %c0_i32_0 = arith.constant 0 : i32
    %c0_i32_1 = arith.constant 0 : i32
    %c0_i32_2 = arith.constant 0 : i32
    %c0_i32_3 = arith.constant 0 : i32
    return %arg0, %c0_i32, %c0_i32_0, %c0_i32_1, %c0_i32_2 : i32, i32, i32, i32, i32
  }
  func.func @transform_8(%arg0: i32) -> (i32, i32, i32, i32, i32) {
    %c0_i32 = arith.constant 0 : i32
    %c0_i32_0 = arith.constant 0 : i32
    %c0_i32_1 = arith.constant 0 : i32
    %c0_i32_2 = arith.constant 0 : i32
    %c0_i32_3 = arith.constant 0 : i32
    return %arg0, %c0_i32, %c0_i32_0, %c0_i32_1, %c0_i32_2 : i32, i32, i32, i32, i32
  }
  func.func @transform_9(%arg0: i32) -> (i32, i32, i32, i32, i32) {
    %c0_i32 = arith.constant 0 : i32
    %c0_i32_0 = arith.constant 0 : i32
    %c0_i32_1 = arith.constant 0 : i32
    %c0_i32_2 = arith.constant 0 : i32
    %c0_i32_3 = arith.constant 0 : i32
    return %arg0, %c0_i32, %c0_i32_0, %c0_i32_1, %c0_i32_2 : i32, i32, i32, i32, i32
  }
  func.func @transform_10(%arg0: i32) -> (i32, i32, i32, i32) {
    %c0_i32 = arith.constant 0 : i32
    %c0_i32_0 = arith.constant 0 : i32
    %c0_i32_1 = arith.constant 0 : i32
    %c0_i32_2 = arith.constant 0 : i32
    return %arg0, %c0_i32, %c0_i32_0, %c0_i32_1 : i32, i32, i32, i32
  }
  func.func @transform_11(%arg0: i32) -> (i32, i32, i32, i32) {
    %c0_i32 = arith.constant 0 : i32
    %c0_i32_0 = arith.constant 0 : i32
    %c0_i32_1 = arith.constant 0 : i32
    %c0_i32_2 = arith.constant 0 : i32
    return %arg0, %c0_i32, %c0_i32_0, %c0_i32_1 : i32, i32, i32, i32
  }
  func.func @transform_12(%arg0: i32) -> (i32, i32, i32, i32) {
    %c0_i32 = arith.constant 0 : i32
    %c0_i32_0 = arith.constant 0 : i32
    %c0_i32_1 = arith.constant 0 : i32
    %c0_i32_2 = arith.constant 0 : i32
    return %arg0, %c0_i32, %c0_i32_0, %c0_i32_1 : i32, i32, i32, i32
  }
  func.func @transform_13(%arg0: i32) -> (i32, i32, i32, i32) {
    %c0_i32 = arith.constant 0 : i32
    %c0_i32_0 = arith.constant 0 : i32
    %c0_i32_1 = arith.constant 0 : i32
    %c0_i32_2 = arith.constant 0 : i32
    return %arg0, %c0_i32, %c0_i32_0, %c0_i32_1 : i32, i32, i32, i32
  }
  func.func @transform_14(%arg0: i32) -> (i32, i32, i32, i32) {
    %c0_i32 = arith.constant 0 : i32
    %c0_i32_0 = arith.constant 0 : i32
    %c0_i32_1 = arith.constant 0 : i32
    %c0_i32_2 = arith.constant 0 : i32
    return %arg0, %c0_i32, %c0_i32_0, %c0_i32_1 : i32, i32, i32, i32
  }
  func.func @transform_15(%arg0: i32) -> (i32, i32, i32, i32) {
    %c0_i32 = arith.constant 0 : i32
    %c0_i32_0 = arith.constant 0 : i32
    %c0_i32_1 = arith.constant 0 : i32
    %c0_i32_2 = arith.constant 0 : i32
    return %arg0, %c0_i32, %c0_i32_0, %c0_i32_1 : i32, i32, i32, i32
  }
  func.func @transform_16(%arg0: i32) -> (i32, i32, i32, i32) {
    %c0_i32 = arith.constant 0 : i32
    %c0_i32_0 = arith.constant 0 : i32
    %c0_i32_1 = arith.constant 0 : i32
    %c0_i32_2 = arith.constant 0 : i32
    return %arg0, %c0_i32, %c0_i32_0, %c0_i32_1 : i32, i32, i32, i32
  }
  func.func @transform_17(%arg0: i32) -> (i32, i32, i32, i32) {
    %c0_i32 = arith.constant 0 : i32
    %c0_i32_0 = arith.constant 0 : i32
    %c0_i32_1 = arith.constant 0 : i32
    %c0_i32_2 = arith.constant 0 : i32
    return %arg0, %c0_i32, %c0_i32_0, %c0_i32_1 : i32, i32, i32, i32
  }
  func.func @transform_18(%arg0: i32) -> (i32, i32, i32, i32) {
    %c0_i32 = arith.constant 0 : i32
    %c0_i32_0 = arith.constant 0 : i32
    %c0_i32_1 = arith.constant 0 : i32
    %c0_i32_2 = arith.constant 0 : i32
    return %arg0, %c0_i32, %c0_i32_0, %c0_i32_1 : i32, i32, i32, i32
  }
  func.func @transform_19(%arg0: i32) -> (i32, i32, i32) {
    %c0_i32 = arith.constant 0 : i32
    %c0_i32_0 = arith.constant 0 : i32
    %c0_i32_1 = arith.constant 0 : i32
    return %arg0, %c0_i32, %c0_i32_0 : i32, i32, i32
  }
  func.func @transform_20(%arg0: i32) -> (i32, i32, i32) {
    %c0_i32 = arith.constant 0 : i32
    %c0_i32_0 = arith.constant 0 : i32
    %c0_i32_1 = arith.constant 0 : i32
    return %arg0, %c0_i32, %c0_i32_0 : i32, i32, i32
  }
  func.func @transform_21(%arg0: i32) -> (i32, i32, i32) {
    %c0_i32 = arith.constant 0 : i32
    %c0_i32_0 = arith.constant 0 : i32
    %c0_i32_1 = arith.constant 0 : i32
    return %arg0, %c0_i32, %c0_i32_0 : i32, i32, i32
  }
}

</mosaic_0001>

<bundles_post_ra>
// kernel: custom-call.1
= control target key start
LH: loop header
LB: loop body
LE: loop exit
PB: predicated region body
PF: predicated region fallthrough
CT: control target
= control target key end

     0   :  { %s59_s0 = inlined_call_operand.hbm [shape: c64[2,4,16,8], index: 0, kind: input, shape index: {}]   ;;  %s60_s1 = inlined_call_operand.vmem [shape: f32[2,4,16,8], index: 1, kind: output, shape index: {}]  }
   0x1   :  { %s2_s8 = scalar_lea.hbm %s59_s0, 1024 }
   0x2   :  { %3 = vsyncpa [#allocation0], 0  ;;  %s4_s11 = sshll.u32 %s60_s1, 4  ;;  %s34_s14 = scalar_lea.hbm %s59_s0, 2048  ;;  %s5_s11 = int_to_ptr.vmem [resolvable:$true] %s4_s11 }
   0x3   :  { %p11_p0 = scmp.ne.s32.totalorder %s2_s8, %s34_s14  ;;  %p13_p1 = scmp.lt.u32.totalorder %s2_s8, %s59_s0 }
   0x4   :  { %p14_p2 = scmp.lt.u32.totalorder %s34_s14, %s34_s14  ;;  %p16_p4 = scmp.lt.u32.totalorder %s34_s14, %s2_s8 }
   0x6   :  { %p15_p3 = por %p14_p2, %p13_p1 }
   0x8   :  { %p17_p5 = por %p16_p4, %p15_p3 }
   0xa   :  { %p18_p6 = pnand %p17_p5, %p11_p0 }
   0xc   :  { %21 = shalt.err (!%p18_p6)  }
   0xd   :  { %s22_s17 = scalar_lea.vmem %s5_s11, 1024  ;;  %p27_p8 = scmp.lt.s32.totalorder %s5_s11, %s5_s11 }
   0xe   :  { %p23_p7 = scmp.ne.s32.totalorder %s5_s11, %s22_s17  ;;  %p28_p9 = scmp.lt.s32.totalorder %s22_s17, %s22_s17 }
  0x10   :  { %p29_p10 = por %p28_p9, %p27_p8 }
  0x12   :  { %p30_p11 = pnand %p29_p10, %p23_p7 }
  0x14   :  { %33 = shalt.err (!%p30_p11)  }
  0x15   :  { %7 = dma.hbm_to_vmem [thread:$0]  %s2_s8, 1024, %s5_s11, [#allocation0] }
  0x16   :  { %35 = dma.done.wait [#allocation0], 1024  }
  0x17   :  { %36 = vsyncadd [#allocation0], 4294966272 }
  0x18   :  { %9 = vsyncpa [#allocation0], 1 }

// kernel: custom-call
= control target key start
LH: loop header
LB: loop body
LE: loop exit
PB: predicated region body
PF: predicated region fallthrough
CT: control target
= control target key end

     0   :  { %2 = vsyncpa [#allocation0], 0  ;;  %s61_s0 = inlined_call_operand.hbm [shape: c64[2,4,16,8], index: 0, kind: input, shape index: {}]   ;;  %s62_s1 = inlined_call_operand.vmem [shape: f32[2,4,16,8], index: 1, kind: output, shape index: {}]  }
   0x1   :  { %s3_s8 = sshll.u32 %s62_s1, 4  ;;  %s9_s11 = scalar_lea.hbm %s61_s0, 1024  ;;  %s4_s8 = int_to_ptr.vmem [resolvable:$true] %s3_s8 }
   0x2   :  { %p10_p0 = scmp.ne.s32.totalorder %s61_s0, %s9_s11  ;;  %s11_s16 = scalar_lea.hbm %s61_s0, 2048 }
   0x3   :  { %p12_p1 = scmp.lt.u32.totalorder %s11_s16, %s9_s11  ;;  %p13_p2 = scmp.lt.u32.totalorder %s9_s11, %s61_s0 }
   0x5   :  { %p14_p3 = por %p13_p2, %p12_p1 }
   0x7   :  { %p15_p4 = pnand %p14_p3, %p10_p0 }
   0x9   :  { %18 = shalt.err (!%p15_p4)  }
   0xa   :  { %s19_s1 = scalar_lea.vmem %s4_s8, 1024  ;;  %p24_p6 = scmp.lt.s32.totalorder %s4_s8, %s4_s8 }
   0xb   :  { %p20_p5 = scmp.ne.s32.totalorder %s4_s8, %s19_s1  ;;  %p25_p7 = scmp.lt.s32.totalorder %s19_s1, %s19_s1 }
   0xd   :  { %p26_p8 = por %p25_p7, %p24_p6 }
   0xf   :  { %p27_p9 = pnand %p26_p8, %p20_p5 }
  0x11   :  { %30 = shalt.err (!%p27_p9)  }
  0x12   :  { %6 = dma.hbm_to_vmem [thread:$0]  %s61_s0, 1024, %s4_s8, [#allocation0] }
  0x13   :  { %31 = dma.done.wait [#allocation0], 1024  }
  0x14   :  { %32 = vsyncadd [#allocation0], 4294966272 }
  0x15   :  { %8 = vsyncpa [#allocation0], 1 }

// kernel: custom-call.2
= control target key start
LH: loop header
LB: loop body
LE: loop exit
PB: predicated region body
PF: predicated region fallthrough
CT: control target
= control target key end

     0   :  { %s126_s0 = inlined_call_operand.vmem [shape: f32[2,4,16,8], index: 0, kind: input, shape index: {}]   ;;  %s127_s1 = inlined_call_operand.vmem [shape: f32[2,4,16,8], index: 1, kind: input, shape index: {}]   ;;  %s128_s2 = inlined_call_operand.hbm [shape: c64[2,4,16,8], index: 2, kind: output, shape index: {}]  }
   0x1   :  { %s87_s11 = scalar_lea.hbm %s128_s2, 1024 }
   0x2   :  { %4 = vsyncpa [#allocation0], 0  ;;  %s5_s14 = sshll.u32 %s126_s0, 4  ;;  %s6_s14 = int_to_ptr.vmem [resolvable:$true] %s5_s14 }
   0x3   :  { %s18_s15 = scalar_lea.vmem %s6_s14, 1024  ;;  %p23_p1 = scmp.lt.s32.totalorder %s6_s14, %s6_s14 }
   0x4   :  { %p19_p0 = scmp.ne.s32.totalorder %s6_s14, %s18_s15  ;;  %p24_p2 = scmp.lt.s32.totalorder %s18_s15, %s18_s15 }
   0x6   :  { %p25_p3 = por %p24_p2, %p23_p1 }
   0x8   :  { %p26_p4 = pnand %p25_p3, %p19_p0 }
   0xa   :  { %29 = shalt.err (!%p26_p4)  }
   0xb   :  { %p31_p5 = scmp.ne.s32.totalorder %s128_s2, %s87_s11  ;;  %s32_s0 = scalar_lea.hbm %s128_s2, 2048 }
   0xc   :  { %p33_p6 = scmp.lt.u32.totalorder %s32_s0, %s87_s11  ;;  %p34_p7 = scmp.lt.u32.totalorder %s87_s11, %s128_s2 }
   0xe   :  { %p35_p8 = por %p34_p7, %p33_p6 }
  0x10   :  { %p36_p9 = pnand %p35_p8, %p31_p5 }
  0x12   :  { %39 = shalt.err (!%p36_p9)  }
  0x13   :  { %8 = dma.vmem_to_hbm [thread:$0]  %s6_s14, 1024, %s128_s2, [#allocation0] }
  0x14   :  { %65 = dma.done.wait [#allocation0], 1024  }
  0x15   :  { %66 = vsyncadd [#allocation0], 4294966272 }
  0x16   :  { %10 = vsyncpa [#allocation0], 1 }
  0x17   :  { %11 = vsyncpa [#allocation1], 0  ;;  %s12_s28 = sshll.u32 %s127_s1, 4  ;;  %s13_s28 = int_to_ptr.vmem [resolvable:$true] %s12_s28 }
  0x18   :  { %s40_s29 = scalar_lea.vmem %s13_s28, 1024  ;;  %p45_p11 = scmp.lt.s32.totalorder %s13_s28, %s13_s28 }
  0x19   :  { %p41_p10 = scmp.ne.s32.totalorder %s13_s28, %s40_s29  ;;  %p46_p12 = scmp.lt.s32.totalorder %s40_s29, %s40_s29 }
  0x1b   :  { %p47_p13 = por %p46_p12, %p45_p11 }
  0x1d   :  { %p48_p0 = pnand %p47_p13, %p41_p10 }
  0x1f   :  { %51 = shalt.err (!%p48_p0)  }
  0x20   :  { %p53_p1 = scmp.ne.s32.totalorder %s87_s11, %s32_s0  ;;  %p56_p2 = scmp.lt.u32.totalorder %s32_s0, %s32_s0 }
  0x22   :  { %p57_p3 = por %p56_p2, %p34_p7 }
  0x24   :  { %p59_p4 = por %p57_p3, %p33_p6 }
  0x26   :  { %p60_p5 = pnand %p59_p4, %p53_p1 }
  0x28   :  { %63 = shalt.err (!%p60_p5)  }
  0x29   :  { %15 = dma.vmem_to_hbm [thread:$0]  %s13_s28, 1024, %s87_s11, [#allocation1] }
  0x2a   :  { %67 = dma.done.wait [#allocation1], 1024  }
  0x2b   :  { %68 = vsyncadd [#allocation1], 4294966272 }
  0x2c   :  { %17 = vsyncpa [#allocation1], 1 }

// kernel: temporal_enc_forward.1
= control target key start
LH: loop header
LB: loop body
LE: loop exit
PB: predicated region body
PF: predicated region fallthrough
CT: control target
= control target key end

     0   :  { %s14211_s0 = inlined_call_operand.vmem [shape: f32[2,64,16], index: 0, kind: input, shape index: {}]   ;;  %s14212_s1 = inlined_call_operand.vmem [shape: f32[2,16,32], index: 1, kind: input, shape index: {}]   ;;  %s14213_s2 = inlined_call_operand.vmem [shape: f32[2,1,32], index: 2, kind: input, shape index: {}]   ;;  %s14214_s3 = inlined_call_operand.vmem [shape: f32[2,2,2,32,16], index: 3, kind: input, shape index: {}]   ;;  %s14215_s4 = inlined_call_operand.vmem [shape: f32[2,2,2,1,16], index: 4, kind: input, shape index: {}]   ;;  %s14216_s5 = inlined_call_operand.vmem [shape: f32[2,2,2,32,16], index: 5, kind: input, shape index: {}]   ;;  %s14217_s6 = inlined_call_operand.vmem [shape: f32[2,2,2,1,16], index: 6, kind: input, shape index: {}]   ;;  %s14218_s7 = inlined_call_operand.vmem [shape: f32[2,2,2,32,16], index: 7, kind: input, shape index: {}]   ;;  %s14219_s8 = inlined_call_operand.vmem [shape: f32[2,2,2,1,16], index: 8, kind: input, shape index: {}]   ;;  %s14220_s9 = inlined_call_operand.vmem [shape: f32[2,2,2,16,32], index: 9, kind: input, shape index: {}]   ;;  %s14221_s10 = inlined_call_operand.vmem [shape: f32[2,2,1,32], index: 10, kind: input, shape index: {}]   ;;  %s14222_s11 = inlined_call_operand.vmem [shape: f32[2,2,32,64], index: 11, kind: input, shape index: {}]   ;;  %s14223_s12 = inlined_call_operand.vmem [shape: f32[2,2,1,64], index: 12, kind: input, shape index: {}]   ;;  %s14224_s13 = inlined_call_operand.vmem [shape: f32[2,2,64,32], index: 13, kind: input, shape index: {}]   ;;  %s14225_s14 = inlined_call_operand.vmem [shape: f32[2,2,1,32], index: 14, kind: input, shape index: {}]   ;;  %s14226_s15 = inlined_call_operand.vmem [shape: f32[2,2,1,32], index: 15, kind: input, shape index: {}]   ;;  %s14227_s16 = inlined_call_operand.vmem [shape: f32[2,2,1,32], index: 16, kind: input, shape index: {}]   ;;  %s14228_s17 = inlined_call_operand.vmem [shape: f32[2,2,1,32], index: 17, kind: input, shape index: {}]   ;;  %s14229_s18 = inlined_call_operand.vmem [shape: f32[2,2,1,32], index: 18, kind: input, shape index: {}]   ;;  %s14230_s19 = inlined_call_operand.vmem [shape: f32[2,32,16], index: 19, kind: input, shape index: {}]   ;;  %s14231_s20 = inlined_call_operand.vmem [shape: f32[2,1,16], index: 20, kind: input, shape index: {}]   ;;  %s14232_s21 = inlined_call_operand.vmem [shape: f32[2,64,16], index: 21, kind: output, shape index: {}]  }
   0x1   :  { %14233 = sst [smem:[#allocation2_spill]] %s14211_s0 }
   0x2   :  { %14234 = sst [smem:[#allocation3_spill]] %s14212_s1 }
   0x3   :  { %14235 = sst [smem:[#allocation4_spill]] %s14213_s2  ;;  %s12470_s2 = smov 0  }
   0x4   :  { %14236 = sst [smem:[#allocation5_spill]] %s14214_s3 }
   0x5   :  { %14237 = sst [smem:[#allocation6_spill]] %s14215_s4 }
   0x6   :  { %14238 = sst [smem:[#allocation7_spill]] %s14216_s5 }
   0x7   :  { %14239 = sst [smem:[#allocation8_spill]] %s14217_s6 }
   0x8   :  { %14240 = sst [smem:[#allocation9_spill]] %s14218_s7 }
   0x9   :  { %14241 = sst [smem:[#allocation10_spill]] %s14219_s8 }
   0xa   :  { %14242 = sst [smem:[#allocation11_spill]] %s14220_s9 }
   0xb   :  { %14243 = sst [smem:[#allocation12_spill]] %s14221_s10 }
   0xc   :  { %14244 = sst [smem:[#allocation13_spill]] %s14226_s15 }
   0xd   :  { %14245 = sst [smem:[#allocation14_spill]] %s14227_s16 }
   0xe LB: > { %s10331_s25 = sadd.s32 4294967295, %s12356_s2   ;;  %p10335_p0 = scmp.ge.s32.totalorder %s12356_s2, 1  ;;  %s12356_s2 = sphi %s12470_s2, %s31_s2  }
   0xf   : > { %p773_p1 = scmp.lt.s32.totalorder %s12356_s2, 3 }
  0x11   : > { %p774_p2 = pnand %p10335_p0, %p773_p1 }
  0x12   : > { %p919_p3 = scmp.lt.s32.totalorder (!%p774_p2), %s10331_s25, 1  ;;  %vm1032_vm0 = vcmask (!%p774_p2), 130048   ;;  %s14246_s29 = sld [smem:[#allocation3_spill]] (!%p774_p2)  ;;  %vm1164_vm1 = vcmask (!%p774_p2), 261120   ;;  %vm12359_vm2 = vmmov (!%p774_p2), 0   ;;  %vm2278_vm3 = vcmask (!%p774_p2), 64512  }
  0x13   : > { %777 = sbr.rel (%p774_p2) target bundleno = 6640 (0x19f0), region = 104  ;;  %s14247_s5 = sld [smem:[#allocation2_spill]] (!%p774_p2)  ;;  %vm5369_vm7 = vcmask (!%p774_p2), 523264  }
  0x14   : > { %s14248_s24 = sld [smem:[#allocation4_spill]] (!%p774_p2)  ;;  %s14251_s7 = sld [smem:[#allocation9_spill]] (!%p774_p2) }
  0x15   : > { %s14252_s15 = sld [smem:[#allocation13_spill]] (!%p774_p2)  ;;  %s14253_s16 = sld [smem:[#allocation14_spill]] (!%p774_p2) }
  0x16   : > { %s14254_s6 = sld [smem:[#allocation8_spill]] (!%p774_p2)  ;;  %s14256_s8 = sld [smem:[#allocation10_spill]] (!%p774_p2) }
  0x17   : > { %s14257_s9 = sld [smem:[#allocation11_spill]] (!%p774_p2)  ;;  %s14258_s10 = sld [smem:[#allocation12_spill]] (!%p774_p2) }
  0x1a   : > { %s14260_s25 = smov (!%p919_p3, %s10331_s25), 1 }
  0x1b   : > { %s10739_s26 = sshll.u32 %s14260_s25, 4  ;;  %s12482_s27 = sshll.u32 %s14260_s25, 6 }
  0x1c   : > { %s928_s0 = scalar_lea.vmem %s14246_s29, %s10739_s26  ;;  %s923_s22 = scalar_lea.vmem %s14247_s5, %s12482_s27 }
  0x1d   : > { %v1023_v0 = vld [vmem:[%s928_s0] sm:$0xff]  ;;  %v1024_v1 = vld [vmem:[%s928_s0 + $0x8] sm:$0xff]  ;;  %v1017_v7 = vld [vmem:[%s923_s22 + $0x10] sm:$0xff]  ;;  %s931_s26 = scalar_lea.vmem %s14248_s24, %s14260_s25  ;;  %s12584_s3 = sshll.u32 %s14260_s25, 7 }
  0x1e   : > { %v1015_v2 = vld [vmem:[%s923_s22] sm:$0xff]  ;;  %v11894_v3 = vpack.c.bf16 %v1024_v1, %v1023_v0  ;;  %v1016_v5 = vld [vmem:[%s923_s22 + $0x8] sm:$0xff]  ;;  %v1021_v8 = vld [vmem:[%s923_s22 + $0x30] sm:$0xff]  ;;  %s14249_s0 = sld [smem:[#allocation5_spill]]  ;;  %s12618_s28 = sshll.u32 %s14260_s25, 1 }
  0x1f   : > { %11142 = vmatprep.mubr.msk.f32.mxu0 %vm1032_vm0, %v1015_v2  ;;  %v1019_v4 = vld [vmem:[%s923_s22 + $0x20] sm:$0xff]  ;;  %v1020_v6 = vld [vmem:[%s923_s22 + $0x28] sm:$0xff]  ;;  %v1018_v9 = vld [vmem:[%s923_s22 + $0x18] sm:$0xff]  ;;  %s12624_s30 = scalar_lea.vmem %s14252_s15, %s12618_s28  ;;  %s12630_s1 = scalar_lea.vmem %s14253_s16, %s12618_s28 }
  0x20   : > { %11895 = vmatprep.subr.bf16.mxu0 %v11894_v3  ;;  %12066 = vmatprep.subr.bf16.mxu1 %v11894_v3  ;;  %v1022_v10 = vld [vmem:[%s923_s22 + $0x38] sm:$0xff]  ;;  %v10366_v11 = vld [vmem:[%s931_s26] ss:$0 sm:$0xff]  ;;  %s14250_s22 = sld [smem:[#allocation7_spill]]  ;;  %s12610_s26 = scalar_lea.vmem %s14251_s7, %s12584_s3 }
  0x21   : > { %11897 = vmatpush3.bf16.msra.mxu0 %v11894_v3  ;;  %12067 = vmatpush3.bf16.msra.mxu1 %v11894_v3  ;;  %s12716_s24 = sshll.u32 %s14260_s25, 2  ;;  %s14255_s15 = sld [smem:[#allocation6_spill]] }
  0x22   : > { %11148 = vmatprep.mubr.msk.f32.mxu1 %vm1032_vm0, %v1019_v4  ;;  %s12722_s5 = scalar_lea.vmem %s14254_s6, %s12716_s24  ;;  %s12749_s29 = scalar_lea.vmem %s14256_s8, %s12716_s24 }
  0x23   : > { %s13191_s6 = scalar_lea.vmem %s14228_s17, %s12618_s28  ;;  %s13235_s8 = scalar_lea.vmem %s14223_s12, %s12618_s28 }
  0x24   : > { %11143 = vmatmul.mubr.msk.f32.vlgmr.msra.gmra.mrb[0].mxu0 %vm1032_vm0, %v1016_v5  ;;  %11149 = vmatmul.mubr.msk.f32.vlgmr.msra.gmra.mrb[0].mxu1 %vm1032_vm0, %v1020_v6  ;;  %s12590_s4 = scalar_lea.vmem %s14249_s0, %s12584_s3  ;;  %s13221_s0 = scalar_lea.vmem %s14224_s13, %s12584_s3 }
  0x25   : > { %11145 = vmatprep.mubr.msk.f32.mxu0 %vm1032_vm0, %v1017_v7  ;;  %11151 = vmatprep.mubr.msk.f32.mxu1 %vm1032_vm0, %v1021_v8  ;;  %s13380_s7 = scalar_lea.vmem %s14225_s14, %s12618_s28 }
  0x26   : > { %s12596_s23 = scalar_lea.vmem %s14250_s22, %s12584_s3  ;;  %s13052_s22 = scalar_lea.vmem %s14257_s9, %s12482_s27 }
  0x27   : > { %s12728_s16 = scalar_lea.vmem %s14255_s15, %s12716_s24  ;;  %s13086_s24 = scalar_lea.vmem %s14258_s10, %s12618_s28 }
  0x28   : > { %11146 = vmatmul.mubr.msk.f32.gmra.mrb[2].mxu0 %vm1032_vm0, %v1018_v9  ;;  %11152 = vmatmul.mubr.msk.f32.gmra.mrb[2].mxu1 %vm1032_vm0, %v1022_v10  ;;  %s13181_s15 = scalar_lea.vmem %s14222_s11, %s12482_s27  ;;  %s13197_s10 = scalar_lea.vmem %s14229_s18, %s12618_s28 }
  0x29   : > { %s1009_s28 = scalar_lea.vmem %s14231_s20, %s14260_s25 }
  0xf7   : > { %v11144_v12 = vpop.f32.mrb[0].mxu0  ;;  %v11150_v13 = vpop.f32.mrb[0].mxu1 }
  0xf8   : > { %v1123_v14 = vpop.f32.mrb[1].mxu0  ;;  %v1143_v15 = vpop.f32.mrb[1].mxu1  ;;  %v12505_v17 = vadd.f32 %v11144_v12, %v10366_v11  ;;  %v12519_v28 = vadd.f32 %v11150_v13, %v10366_v11  ;;  %v1298_v12 = vld [vmem:[%s12590_s4] sm:$0xff]  ;;  %v1299_v13 = vld [vmem:[%s12590_s4 + $0x8] sm:$0xff] }
  0xf9   : > { %v12503_v16 = vadd.f32 %v10366_v11, %v1123_v14  ;;  %v12513_v25 = vadd.f32 %v10366_v11, %v1143_v15  ;;  %v1438_v14 = vld [vmem:[%s12596_s23] sm:$0xff]  ;;  %v11898_v15 = vpack.c.bf16 %v1299_v13, %v1298_v12 }
  0xfa   : > { %v1168_v27 = vsel %vm1164_vm1, %v12505_v17, 0.0  ;;  %v1180_v33 = vsel %vm1164_vm1, %v12519_v28, 0.0 }
  0xfb   : > { %v11147_v18 = vpop.f32.mrb[2].mxu0  ;;  %v1165_v19 = vsel %vm1164_vm1, %v12503_v16, 0.0  ;;  %v11153_v20 = vpop.f32.mrb[2].mxu1  ;;  %v1177_v31 = vsel %vm1164_vm1, %v12513_v25, 0.0  ;;  %11899 = vmatprep.subr.bf16.mxu1 %v11898_v15 }
  0xfc   : > { %v1133_v21 = vpop.f32.mrb[3].mxu0  ;;  %1166 = vadd.xlane.f32.xlu0 %v1165_v19  ;;  %v1153_v22 = vpop.f32.mrb[3].mxu1  ;;  %v12509_v23 = vadd.f32 %v11147_v18, %v10366_v11  ;;  %v12527_v32 = vadd.f32 %v11153_v20, %v10366_v11  ;;  %v1439_v18 = vld [vmem:[%s12596_s23 + $0x8] sm:$0xff]  ;;  %11901 = vmatpush3.bf16.msra.mxu1 %v11898_v15  ;;  %v1300_v20 = vld [vmem:[%s12590_s4 + $0x10] sm:$0xff] }
  0xfd   : > { %v12511_v24 = vadd.f32 %v10366_v11, %v1133_v21  ;;  %v12521_v29 = vadd.f32 %v10366_v11, %v1153_v22  ;;  %v11906_v19 = vpack.c.bf16 %v1439_v18, %v1438_v14  ;;  %v1301_v21 = vld [vmem:[%s12590_s4 + $0x18] sm:$0xff] }
  0xfe   : > { %v1174_v30 = vsel %vm1164_vm1, %v12509_v23, 0.0  ;;  %v1186_v35 = vsel %vm1164_vm1, %v12527_v32, 0.0  ;;  %v11902_v22 = vpack.c.bf16 %v1301_v21, %v1300_v20  ;;  %v1557_v14 = vld [vmem:[%s12610_s26 + $0x18] sm:$0xff] }
  0xff   : > { %v1171_v26 = vsel %vm1164_vm1, %v12511_v24, 0.0  ;;  %v1183_v34 = vsel %vm1164_vm1, %v12521_v29, 0.0  ;;  %11907 = vmatprep.subr.bf16.mxu0 %v11906_v19 }
 0x100   : > { %1172 = vadd.xlane.f32.xlu1 %v1171_v26  ;;  %1169 = vadd.xlane.f32.xlu0 %v1168_v27  ;;  %v1440_v26 = vld [vmem:[%s12596_s23 + $0x10] sm:$0xff]  ;;  %v1441_v27 = vld [vmem:[%s12596_s23 + $0x18] sm:$0xff] }
 0x101   : > { %11909 = vmatpush3.bf16.msra.mxu0 %v11906_v19  ;;  %11903 = vmatprep.subr.bf16.mxu1 %v11902_v22 }
 0x102   : > { %11905 = vmatpush3.bf16.msra.mxu1 %v11902_v22 }
 0x104   : > { %1175 = vadd.xlane.f32.xlu1 %v1174_v30  ;;  %1178 = vadd.xlane.f32.xlu0 %v1177_v31  ;;  %v11910_v30 = vpack.c.bf16 %v1441_v27, %v1440_v26  ;;  %v1554_v31 = vld [vmem:[%s12610_s26] sm:$0xff] }
 0x106   : > { %11911 = vmatprep.subr.bf16.mxu0 %v11910_v30 }
 0x107   : > { %11913 = vmatpush3.bf16.msra.mxu0 %v11910_v30 }
 0x108   : > { %1181 = vadd.xlane.f32.xlu1 %v1180_v33  ;;  %1184 = vadd.xlane.f32.xlu0 %v1183_v34  ;;  %v1555_v33 = vld [vmem:[%s12610_s26 + $0x8] sm:$0xff] }
 0x109   : > { %v12614_v34 = vpack.c.bf16 %v1555_v33, %v1554_v31 }
 0x10b   : > { %11915 = vmatprep.subr.bf16.mxu1 %v12614_v34 }
 0x10c   : > { %1187 = vadd.xlane.f32.xlu1 %v1186_v35 }
 0x189   : > { %v1167_v36 = vpop.xlane.xlu0 %1166 }
 0x18a   : > { %v1190_v37 = vmul.f32 0.03125, %v1167_v36 }
 0x18c   : > { %v12536_v38 = vsub.f32 %v12503_v16, %v1190_v37 }
 0x18d   : > { %v1173_v39 = vpop.xlane.xlu1 %1172  ;;  %v1170_v40 = vpop.xlane.xlu0 %1169 }
 0x18e   : > { %v1192_v41 = vmul.f32 0.03125, %v1173_v39  ;;  %v1191_v42 = vmul.f32 0.03125, %v1170_v40  ;;  %v1206_v43 = vmul.f32 %v12536_v38, %v12536_v38 }
 0x190   : > { %v12541_v44 = vsub.f32 %v12511_v24, %v1192_v41  ;;  %v12544_v45 = vsub.f32 %v12505_v17, %v1191_v42  ;;  %v1214_v46 = vsel %vm1164_vm1, %v1206_v43, 0.0 }
 0x191   : > { %v1176_v47 = vpop.xlane.xlu1 %1175  ;;  %1215 = vadd.xlane.f32.xlu0 %v1214_v46  ;;  %v1179_v48 = vpop.xlane.xlu0 %1178 }
 0x192   : > { %v1193_v49 = vmul.f32 0.03125, %v1176_v47  ;;  %v1194_v50 = vmul.f32 0.03125, %v1179_v48  ;;  %v1208_v51 = vmul.f32 %v12541_v44, %v12541_v44  ;;  %v1207_v52 = vmul.f32 %v12544_v45, %v12544_v45 }
 0x194   : > { %v12552_v53 = vsub.f32 %v12509_v23, %v1193_v49  ;;  %v12555_v54 = vsub.f32 %v12513_v25, %v1194_v50  ;;  %v1220_v55 = vsel %vm1164_vm1, %v1208_v51, 0.0  ;;  %v1217_v56 = vsel %vm1164_vm1, %v1207_v52, 0.0 }
 0x195   : > { %v1182_v57 = vpop.xlane.xlu1 %1181  ;;  %1221 = vadd.xlane.f32.xlu0 %v1220_v55  ;;  %1218 = vadd.xlane.f32.xlu1 %v1217_v56  ;;  %v1185_v58 = vpop.xlane.xlu0 %1184 }
 0x196   : > { %v1195_v59 = vmul.f32 0.03125, %v1182_v57  ;;  %v1196_v60 = vmul.f32 0.03125, %v1185_v58  ;;  %v1209_v61 = vmul.f32 %v12552_v53, %v12552_v53  ;;  %v1210_v62 = vmul.f32 %v12555_v54, %v12555_v54 }
 0x198   : > { %v12564_v63 = vsub.f32 %v12519_v28, %v1195_v59  ;;  %v12567_v0 = vsub.f32 %v12521_v29, %v1196_v60  ;;  %v1223_v1 = vsel %vm1164_vm1, %v1209_v61, 0.0  ;;  %v1226_v2 = vsel %vm1164_vm1, %v1210_v62, 0.0  ;;  %v10375_v60 = vld [vmem:[%s12624_s30] ss:$0 sm:$0xff] }
 0x199   : > { %v1188_v3 = vpop.xlane.xlu1 %1187  ;;  %1224 = vadd.xlane.f32.xlu1 %v1223_v1  ;;  %1227 = vadd.xlane.f32.xlu0 %v1226_v2 }
 0x19a   : > { %v1197_v4 = vmul.f32 0.03125, %v1188_v3  ;;  %v1211_v5 = vmul.f32 %v12564_v63, %v12564_v63  ;;  %v1212_v6 = vmul.f32 %v12567_v0, %v12567_v0 }
 0x19c   : > { %v12576_v7 = vsub.f32 %v12527_v32, %v1197_v4  ;;  %v1229_v8 = vsel %vm1164_vm1, %v1211_v5, 0.0  ;;  %v1232_v9 = vsel %vm1164_vm1, %v1212_v6, 0.0  ;;  %v10376_v4 = vld [vmem:[%s12630_s1] ss:$0 sm:$0xff] }
 0x19d   : > { %1230 = vadd.xlane.f32.xlu1 %v1229_v8  ;;  %1233 = vadd.xlane.f32.xlu0 %v1232_v9 }
 0x19e   : > { %v1213_v10 = vmul.f32 %v12576_v7, %v12576_v7 }
 0x1a0   : > { %v1235_v11 = vsel %vm1164_vm1, %v1213_v10, 0.0 }
 0x1a1   : > { %1236 = vadd.xlane.f32.xlu1 %v1235_v11 }
 0x21e   : > { %v1216_v35 = vpop.xlane.xlu0 %1215 }
 0x21f   : > { %v1238_v36 = vmul.f32 0.03125, %v1216_v35 }
 0x221   : > { %v1246_v37 = vadd.f32 1e-05, %v1238_v36 }
 0x222   : > { %v1219_v39 = vpop.xlane.xlu1 %1218  ;;  %v1222_v40 = vpop.xlane.xlu0 %1221 }
 0x223   : > { %12094 = vrsqrt.f32 %v1246_v37  ;;  %v1239_v41 = vmul.f32 0.03125, %v1219_v39  ;;  %v1240_v42 = vmul.f32 0.03125, %v1222_v40 }
 0x225   : > { %v1247_v43 = vadd.f32 1e-05, %v1239_v41  ;;  %v1248_v46 = vadd.f32 1e-05, %v1240_v42  ;;  %v10386_v42 = vld [vmem:[%s12722_s5] ss:$0 sm:$0xff] }
 0x226   : > { %v1225_v47 = vpop.xlane.xlu1 %1224  ;;  %v1228_v48 = vpop.xlane.xlu0 %1227 }
 0x227   : > { %12096 = vrsqrt.f32 %v1247_v43  ;;  %v1241_v49 = vmul.f32 0.03125, %v1225_v47  ;;  %v1242_v50 = vmul.f32 0.03125, %v1228_v48 }
 0x228   : > { %12098 = vrsqrt.f32 %v1248_v46 }
 0x229   : > { %v1249_v51 = vadd.f32 1e-05, %v1241_v49  ;;  %v1250_v52 = vadd.f32 1e-05, %v1242_v50  ;;  %v10377_v49 = vld [vmem:[%s12728_s16] ss:$0 sm:$0xff] }
 0x22a   : > { %v1231_v55 = vpop.xlane.xlu1 %1230  ;;  %v1234_v56 = vpop.xlane.xlu0 %1233 }
 0x22b   : > { %12100 = vrsqrt.f32 %v1249_v51  ;;  %v1243_v57 = vmul.f32 0.03125, %v1231_v55  ;;  %v1244_v58 = vmul.f32 0.03125, %v1234_v56 }
 0x22c   : > { %12102 = vrsqrt.f32 %v1250_v52 }
 0x22d   : > { %v12095_v59 = vpop.eup %12094  ;;  %v1251_v61 = vadd.f32 1e-05, %v1243_v57  ;;  %v1252_v62 = vadd.f32 1e-05, %v1244_v58 }
 0x22e   : > { %v1262_v1 = vmul.f32 %v12095_v59, %v12536_v38  ;;  %v1237_v2 = vpop.xlane.xlu1 %1236  ;;  %v1556_v38 = vld [vmem:[%s12610_s26 + $0x10] sm:$0xff] }
 0x22f   : > { %12104 = vrsqrt.f32 %v1251_v61  ;;  %v1245_v3 = vmul.f32 0.03125, %v1237_v2  ;;  %v11918_v22 = vpack.c.bf16 %v1557_v14, %v1556_v38 }
 0x230   : > { %v1276_v5 = vmul.f32 %v10375_v60, %v1262_v1  ;;  %12106 = vrsqrt.f32 %v1252_v62 }
 0x231   : > { %v12097_v6 = vpop.eup %12096  ;;  %v1253_v8 = vadd.f32 1e-05, %v1245_v3 }
 0x232   : > { %v12099_v9 = vpop.eup %12098  ;;  %v1263_v10 = vmul.f32 %v12097_v6, %v12544_v45  ;;  %v12636_v11 = vadd.f32 %v10376_v4, %v1276_v5 }
 0x233   : > { %v1264_v12 = vmul.f32 %v12099_v9, %v12541_v44  ;;  %12108 = vrsqrt.f32 %v1253_v8 }
 0x234   : > { %v1277_v13 = vmul.f32 %v10375_v60, %v1263_v10  ;;  %11162 = vmatprep.mubr.msk.f32.mxu1 %vm1164_vm1, %v12636_v11  ;;  %11182 = vmatprep.mubr.msk.f32.mxu0 %vm1164_vm1, %v12636_v11 }
 0x235   : > { %v12101_v15 = vpop.eup %12100  ;;  %v1278_v18 = vmul.f32 %v10375_v60, %v1264_v12 }
 0x236   : > { %v12103_v19 = vpop.eup %12102  ;;  %v1265_v20 = vmul.f32 %v12101_v15, %v12552_v53  ;;  %v12646_v45 = vadd.f32 %v10376_v4, %v1277_v13  ;;  %v10395_v15 = vld [vmem:[%s12749_s29] ss:$0 sm:$0xff] }
 0x237   : > { %v1266_v21 = vmul.f32 %v12103_v19, %v12555_v54  ;;  %v12649_v44 = vadd.f32 %v10376_v4, %v1278_v18 }
 0x238   : > { %v1279_v26 = vmul.f32 %v10375_v60, %v1265_v20  ;;  %11163 = vmatmul.mubr.msk.f32.vlgmr.msra.gmra.mrb[4].mxu1 %vm1164_vm1, %v12646_v45  ;;  %11183 = vmatmul.mubr.msk.f32.vlgmr.msra.gmra.mrb[4].mxu0 %vm1164_vm1, %v12646_v45 }
 0x239   : > { %v12105_v27 = vpop.eup %12104  ;;  %v1280_v30 = vmul.f32 %v10375_v60, %v1266_v21  ;;  %11165 = vmatprep.mubr.msk.f32.mxu1 %vm1164_vm1, %v12649_v44  ;;  %11185 = vmatprep.mubr.msk.f32.mxu0 %vm1164_vm1, %v12649_v44 }
 0x23a   : > { %v12107_v53 = vpop.eup %12106  ;;  %v1267_v54 = vmul.f32 %v12105_v27, %v12564_v63  ;;  %v12660_v31 = vadd.f32 %v10376_v4, %v1279_v26  ;;  %11917 = vmatpush3.bf16.msra.mxu1 %v12614_v34 }
 0x23b   : > { %v1268_v33 = vmul.f32 %v12107_v53, %v12567_v0  ;;  %v12664_v35 = vadd.f32 %v10376_v4, %v1280_v30  ;;  %11919 = vmatprep.subr.bf16.mxu1 %v11918_v22 }
 0x23c   : > { %v1281_v36 = vmul.f32 %v10375_v60, %v1267_v54  ;;  %11166 = vmatmul.mubr.msk.f32.gmra.mrb[6].mxu1 %vm1164_vm1, %v12660_v31  ;;  %11186 = vmatmul.mubr.msk.f32.gmra.mrb[6].mxu0 %vm1164_vm1, %v12660_v31 }
 0x23d   : > { %v12109_v37 = vpop.eup %12108  ;;  %v1282_v39 = vmul.f32 %v10375_v60, %v1268_v33  ;;  %11168 = vmatprep.mubr.msk.f32.mxu1 %vm1164_vm1, %v12664_v35  ;;  %11188 = vmatprep.mubr.msk.f32.mxu0 %vm1164_vm1, %v12664_v35 }
 0x23e   : > { %v1269_v63 = vmul.f32 %v12109_v37, %v12576_v7  ;;  %v12675_v0 = vadd.f32 %v10376_v4, %v1281_v36  ;;  %11921 = vmatpush3.bf16.msra.mxu1 %v11918_v22  ;;  %v12358_v7 = vmov 0.0  }
 0x23f   : > { %v12677_v34 = vadd.f32 %v10376_v4, %v1282_v39  ;;  %11214 = vmatprep.subr.mxu0 %v12358_v7  ;;  %11224 = vmatprep.subr.mxu1 %v12358_v7 }
 0x240   : > { %v1283_v40 = vmul.f32 %v10375_v60, %v1269_v63  ;;  %11169 = vmatmul.mubr.msk.f32.gmra.mrb[8].mxu1 %vm1164_vm1, %v12675_v0  ;;  %11189 = vmatmul.mubr.msk.f32.gmra.mrb[8].mxu0 %vm1164_vm1, %v12675_v0 }
 0x241   : > { %11171 = vmatprep.mubr.msk.f32.mxu1 %vm1164_vm1, %v12677_v34  ;;  %11191 = vmatprep.mubr.msk.f32.mxu0 %vm1164_vm1, %v12677_v34 }
 0x242   : > { %v12687_v41 = vadd.f32 %v10376_v4, %v1283_v40 }
 0x244   : > { %11172 = vmatmul.mubr.msk.f32.gmra.mrb[10].mxu1 %vm1164_vm1, %v12687_v41  ;;  %11192 = vmatmul.mubr.msk.f32.gmra.mrb[10].mxu0 %vm1164_vm1, %v12687_v41 }
 0x245   : > { %11202 = vmatprep.mubr.msk.f32.mxu1 %vm1164_vm1, %v12636_v11  ;;  %11216 = vmatprep.mubr.msk.f32.mxu0 %vm12359_vm2, %v12358_v7 }
 0x248   : > { %11203 = vmatmul.mubr.msk.f32.vlgmr.msra.gmra.mrb[12].mxu1 %vm1164_vm1, %v12646_v45 }
 0x249   : > { %11205 = vmatprep.mubr.msk.f32.mxu1 %vm1164_vm1, %v12649_v44 }
 0x24c   : > { %11206 = vmatmul.mubr.msk.f32.gmra.mrb[14].mxu1 %vm1164_vm1, %v12660_v31 }
 0x24d   : > { %11208 = vmatprep.mubr.msk.f32.mxu1 %vm1164_vm1, %v12664_v35 }
 0x250   : > { %11209 = vmatmul.mubr.msk.f32.gmra.mrb[16].mxu1 %vm1164_vm1, %v12675_v0 }
 0x251   : > { %11211 = vmatprep.mubr.msk.f32.mxu1 %vm1164_vm1, %v12677_v34 }
 0x254   : > { %11212 = vmatmul.mubr.msk.f32.gmra.mrb[18].mxu1 %vm1164_vm1, %v12687_v41 }
 0x255   : > { %11226 = vmatprep.mubr.msk.f32.mxu1 %vm12359_vm2, %v12358_v7 }
 0x30b   : > { %v11164_v43 = vpop.f32.mrb[4].mxu1  ;;  %v11184_v46 = vpop.f32.mrb[4].mxu0 }
 0x30c   : > { %v1399_v47 = vpop.f32.mrb[5].mxu1  ;;  %v1515_v48 = vpop.f32.mrb[5].mxu0  ;;  %v1521_v58 = vadd.f32 %v11184_v46, %v10386_v42  ;;  %v1405_v62 = vadd.f32 %v11164_v43, %v10377_v49 }
 0x30d   : > { %v1516_v50 = vadd.f32 %v10386_v42, %v1515_v48  ;;  %v1400_v55 = vadd.f32 %v10377_v49, %v1399_v47 }
 0x30f   : > { %v11167_v51 = vpop.f32.mrb[6].mxu1  ;;  %v11187_v52 = vpop.f32.mrb[6].mxu0  ;;  %11215 = vmatpush3.xpose.msk.msra.mxu0 %vm1032_vm0, %v1516_v50 }
 0x310   : > { %v1409_v56 = vpop.f32.mrb[7].mxu1  ;;  %v1525_v57 = vpop.f32.mrb[7].mxu0  ;;  %11219 = vmatprep.subr.mxu0 %v12358_v7  ;;  %v1531_v4 = vadd.f32 %v11187_v52, %v10386_v42  ;;  %v1415_v9 = vadd.f32 %v11167_v51, %v10377_v49 }
 0x311   : > { %v1526_v59 = vadd.f32 %v10386_v42, %v1525_v57  ;;  %v1410_v1 = vadd.f32 %v10377_v49, %v1409_v56 }
 0x312   : > { %11217 = vmatmul.mubr.msk.f32.vlgmr.msra.gmra.mrb[12].mxu0 %vm1032_vm0, %v1400_v55 }
 0x313   : > { %v11170_v60 = vpop.f32.mrb[8].mxu1  ;;  %v11190_v61 = vpop.f32.mrb[8].mxu0  ;;  %11220 = vmatpush3.xpose.msk.msra.mxu0 %vm1032_vm0, %v1521_v58  ;;  %11225 = vmatpush3.xpose.msk.msra.mxu1 %vm1032_vm0, %v1526_v59 }
 0x314   : > { %v1419_v2 = vpop.f32.mrb[9].mxu1  ;;  %v1535_v3 = vpop.f32.mrb[9].mxu0  ;;  %11221 = vmatprep.mubr.msk.f32.mxu0 %vm12359_vm2, %v12358_v7  ;;  %11229 = vmatprep.subr.mxu0 %v12358_v7  ;;  %v1541_v38 = vadd.f32 %v11190_v61, %v10386_v42  ;;  %v1425_v19 = vadd.f32 %v11170_v60, %v10377_v49 }
 0x315   : > { %v1536_v5 = vadd.f32 %v10386_v42, %v1535_v3  ;;  %11234 = vmatprep.subr.mxu1 %v12358_v7  ;;  %v1420_v10 = vadd.f32 %v10377_v49, %v1419_v2 }
 0x316   : > { %11222 = vmatmul.mubr.msk.f32.vlgmr.msra.gmra.mrb[14].mxu0 %vm1032_vm0, %v1405_v62  ;;  %11227 = vmatmul.mubr.msk.f32.vlgmr.msra.gmra.mrb[20].mxu1 %vm1032_vm0, %v1410_v1 }
 0x317   : > { %v11173_v6 = vpop.f32.mrb[10].mxu1  ;;  %v11193_v8 = vpop.f32.mrb[10].mxu0  ;;  %11230 = vmatpush3.xpose.msk.msra.mxu0 %vm1032_vm0, %v1531_v4  ;;  %11235 = vmatpush3.xpose.msk.msra.mxu1 %vm1032_vm0, %v1536_v5 }
 0x318   : > { %v1429_v12 = vpop.f32.mrb[11].mxu1  ;;  %v1545_v13 = vpop.f32.mrb[11].mxu0  ;;  %11231 = vmatprep.mubr.msk.f32.mxu0 %vm12359_vm2, %v12358_v7  ;;  %11236 = vmatprep.mubr.msk.f32.mxu1 %vm12359_vm2, %v12358_v7  ;;  %v1551_v22 = vadd.f32 %v11193_v8, %v10386_v42  ;;  %v1435_v30 = vadd.f32 %v11173_v6, %v10377_v49 }
 0x319   : > { %v1546_v14 = vadd.f32 %v10386_v42, %v1545_v13  ;;  %11239 = vmatprep.subr.mxu0 %v12358_v7  ;;  %11244 = vmatprep.subr.mxu1 %v12358_v7  ;;  %v1430_v20 = vadd.f32 %v10377_v49, %v1429_v12 }
 0x31a   : > { %11232 = vmatmul.mubr.msk.f32.vlgmr.msra.gmra.mrb[16].mxu0 %vm1032_vm0, %v1415_v9  ;;  %11237 = vmatmul.mubr.msk.f32.vlgmr.msra.gmra.mrb[22].mxu1 %vm1032_vm0, %v1420_v10 }
 0x31b   : > { %v11204_v18 = vpop.f32.mrb[12].mxu1  ;;  %11240 = vmatpush3.xpose.msk.msra.mxu0 %vm1032_vm0, %v1541_v38  ;;  %11245 = vmatpush3.xpose.msk.msra.mxu1 %vm1032_vm0, %v1546_v14 }
 0x31c   : > { %v1631_v21 = vpop.f32.mrb[13].mxu1  ;;  %11241 = vmatprep.mubr.msk.f32.mxu0 %vm12359_vm2, %v12358_v7  ;;  %11246 = vmatprep.mubr.msk.f32.mxu1 %vm12359_vm2, %v12358_v7  ;;  %v1637_v33 = vadd.f32 %v11204_v18, %v10395_v15 }
 0x31d   : > { %v1632_v26 = vadd.f32 %v10395_v15, %v1631_v21  ;;  %11249 = vmatprep.subr.mxu0 %v12358_v7  ;;  %11254 = vmatprep.subr.mxu1 %v12358_v7 }
 0x31e   : > { %11242 = vmatmul.mubr.msk.f32.vlgmr.msra.gmra.mrb[18].mxu0 %vm1032_vm0, %v1425_v19  ;;  %11247 = vmatmul.mubr.msk.f32.vlgmr.msra.gmra.mrb[24].mxu1 %vm1032_vm0, %v1430_v20 }
 0x31f   : > { %v11207_v27 = vpop.f32.mrb[14].mxu1  ;;  %11250 = vmatpush3.xpose.msk.msra.mxu0 %vm1032_vm0, %v1551_v22  ;;  %11255 = vmatpush3.msra.mxu1 %v1632_v26 }
 0x320   : > { %v12771_v53 = vadd.f32 %v11207_v27, %v10395_v15  ;;  %v1641_v54 = vpop.f32.mrb[15].mxu1  ;;  %11251 = vmatprep.mubr.msk.f32.mxu0 %vm12359_vm2, %v12358_v7  ;;  %11259 = vmatprep.subr.mxu0 %v12358_v7 }
 0x321   : > { %v12776_v36 = vadd.f32 %v10395_v15, %v1641_v54  ;;  %11256 = vmatprep.mubr.msk.f32.mxu1 %vm12359_vm2, %v12358_v7  ;;  %11264 = vmatprep.subr.mxu1 %v12358_v7 }
 0x322   : > { %11252 = vmatmul.mubr.msk.f32.vlgmr.msra.gmra.mrb[20].mxu0 %vm1032_vm0, %v1435_v30 }
 0x323   : > { %v11210_v37 = vpop.f32.mrb[16].mxu1  ;;  %11260 = vmatpush3.msra.mxu0 %v1637_v33  ;;  %11261 = vmatprep.mubr.msk.f32.mxu0 %vm12359_vm2, %v12358_v7 }
 0x324   : > { %v12784_v39 = vadd.f32 %v11210_v37, %v10395_v15  ;;  %v1651_v63 = vpop.f32.mrb[17].mxu1  ;;  %11269 = vmatprep.subr.mxu0 %v12358_v7 }
 0x325   : > { %v12787_v40 = vadd.f32 %v10395_v15, %v1651_v63 }
 0x327   : > { %v11213_v42 = vpop.f32.mrb[18].mxu1 }
 0x328   : > { %v12789_v43 = vadd.f32 %v11213_v42, %v10395_v15  ;;  %v1661_v46 = vpop.f32.mrb[19].mxu1 }
 0x329   : > { %v12791_v47 = vadd.f32 %v10395_v15, %v1661_v46 }
 0x3e5   : > { %v1742_v48 = vpop.f32.mrb[12].mxu0 }
 0x3e6   : > { %v11218_v49 = vpop.f32.mrb[13].mxu0  ;;  %v2279_v50 = vsel %vm2278_vm3, %v1742_v48, -inf }
 0x3e7   : > { %2280 = vmax.xlane.f32.xlu1 %v2279_v50 }
 0x3e9   : > { %v1818_v51 = vpop.f32.mrb[14].mxu0  ;;  %v1894_v52 = vpop.f32.mrb[20].mxu1 }
 0x3ea   : > { %v11223_v55 = vpop.f32.mrb[15].mxu0  ;;  %v11228_v56 = vpop.f32.mrb[21].mxu1  ;;  %v2282_v57 = vsel %vm2278_vm3, %v1818_v51, -inf  ;;  %v2285_v58 = vsel %vm2278_vm3, %v1894_v52, -inf }
 0x3eb   : > { %2283 = vmax.xlane.f32.xlu0 %v2282_v57  ;;  %2286 = vmax.xlane.f32.xlu1 %v2285_v58 }
 0x3ed   : > { %v1970_v59 = vpop.f32.mrb[16].mxu0  ;;  %v2046_v60 = vpop.f32.mrb[22].mxu1 }
 0x3ee   : > { %v11233_v61 = vpop.f32.mrb[17].mxu0  ;;  %v11238_v62 = vpop.f32.mrb[23].mxu1  ;;  %v2288_v1 = vsel %vm2278_vm3, %v1970_v59, -inf  ;;  %v2291_v2 = vsel %vm2278_vm3, %v2046_v60, -inf }
 0x3ef   : > { %2289 = vmax.xlane.f32.xlu0 %v2288_v1  ;;  %2292 = vmax.xlane.f32.xlu1 %v2291_v2 }
 0x3f1   : > { %v2122_v3 = vpop.f32.mrb[18].mxu0  ;;  %v2198_v4 = vpop.f32.mrb[24].mxu1 }
 0x3f2   : > { %v11243_v5 = vpop.f32.mrb[19].mxu0  ;;  %v11248_v6 = vpop.f32.mrb[25].mxu1  ;;  %v2294_v8 = vsel %vm2278_vm3, %v2122_v3, -inf  ;;  %v2297_v9 = vsel %vm2278_vm3, %v2198_v4, -inf }
 0x3f3   : > { %2295 = vmax.xlane.f32.xlu0 %v2294_v8  ;;  %2298 = vmax.xlane.f32.xlu1 %v2297_v9 }
 0x3f5   : > { %v2274_v10 = vpop.f32.mrb[20].mxu0 }
 0x3f6   : > { %v11253_v12 = vpop.f32.mrb[21].mxu0  ;;  %v2300_v13 = vsel %vm2278_vm3, %v2274_v10, -inf }
 0x3f7   : > { %2301 = vmax.xlane.f32.xlu0 %v2300_v13 }
 0x474   : > { %v2281_v38 = vpop.xlane.xlu1 %2280 }
 0x475   : > { %v2303_v14 = vsub.f32 %v1742_v48, %v2281_v38 }
 0x477   : > { %v2311_v15 = vmul.f32 1.442695, %v2303_v14 }
 0x478   : > { %v2284_v18 = vpop.xlane.xlu0 %2283  ;;  %v2287_v19 = vpop.xlane.xlu1 %2286 }
 0x479   : > { %12110 = vpow2.f32 %v2311_v15  ;;  %v2304_v20 = vsub.f32 %v1818_v51, %v2284_v18  ;;  %v2305_v21 = vsub.f32 %v1894_v52, %v2287_v19 }
 0x47b   : > { %v2313_v22 = vmul.f32 1.442695, %v2304_v20  ;;  %v2315_v26 = vmul.f32 1.442695, %v2305_v21 }
 0x47c   : > { %v2290_v27 = vpop.xlane.xlu0 %2289  ;;  %v2293_v30 = vpop.xlane.xlu1 %2292 }
 0x47d   : > { %12112 = vpow2.f32 %v2313_v22  ;;  %v2306_v54 = vsub.f32 %v1970_v59, %v2290_v27  ;;  %v2307_v33 = vsub.f32 %v2046_v60, %v2293_v30 }
 0x47e   : > { %12114 = vpow2.f32 %v2315_v26 }
 0x47f   : > { %v2317_v37 = vmul.f32 1.442695, %v2306_v54  ;;  %v2319_v63 = vmul.f32 1.442695, %v2307_v33 }
 0x480   : > { %v2296_v42 = vpop.xlane.xlu0 %2295  ;;  %v2299_v46 = vpop.xlane.xlu1 %2298 }
 0x481   : > { %12116 = vpow2.f32 %v2317_v37  ;;  %v2308_v48 = vsub.f32 %v2122_v3, %v2296_v42  ;;  %v2309_v49 = vsub.f32 %v2198_v4, %v2299_v46 }
 0x482   : > { %12118 = vpow2.f32 %v2319_v63  ;;  %v10429_v63 = vld [vmem:[%s12590_s4 + $0x28] sm:$0xff] }
 0x483   : > { %v12111_v50 = vpop.eup %12110  ;;  %v2321_v55 = vmul.f32 1.442695, %v2308_v48  ;;  %v2323_v51 = vmul.f32 1.442695, %v2309_v49  ;;  %v10430_v49 = vld [vmem:[%s12590_s4 + $0x30] sm:$0xff] }
 0x484   : > { %v2302_v52 = vpop.xlane.xlu0 %2301  ;;  %v2327_v56 = vsel %vm2278_vm3, %v12111_v50, 0.0 }
 0x485   : > { %12120 = vpow2.f32 %v2321_v55  ;;  %v2310_v57 = vsub.f32 %v2274_v10, %v2302_v52  ;;  %2328 = vadd.xlane.f32.xlu1 %v2327_v56  ;;  %v10442_v55 = vld [vmem:[%s12596_s23 + $0x20] sm:$0xff] }
 0x486   : > { %12122 = vpow2.f32 %v2323_v51  ;;  %v10443_v51 = vld [vmem:[%s12596_s23 + $0x28] sm:$0xff] }
 0x487   : > { %v12113_v58 = vpop.eup %12112  ;;  %v2325_v59 = vmul.f32 1.442695, %v2310_v57 }
 0x488   : > { %v12115_v60 = vpop.eup %12114  ;;  %v2330_v61 = vsel %vm2278_vm3, %v12113_v58, 0.0 }
 0x489   : > { %12124 = vpow2.f32 %v2325_v59  ;;  %2331 = vadd.xlane.f32.xlu0 %v2330_v61  ;;  %v2333_v62 = vsel %vm2278_vm3, %v12115_v60, 0.0  ;;  %v10444_v59 = vld [vmem:[%s12596_s23 + $0x30] sm:$0xff]  ;;  %v10457_v61 = vld [vmem:[%s12610_s26 + $0x28] sm:$0xff] }
 0x48a   : > { %2334 = vadd.xlane.f32.xlu1 %v2333_v62 }
 0x48b   : > { %v12117_v1 = vpop.eup %12116 }
 0x48c   : > { %v12119_v2 = vpop.eup %12118  ;;  %v2336_v3 = vsel %vm2278_vm3, %v12117_v1, 0.0 }
 0x48d   : > { %2337 = vadd.xlane.f32.xlu0 %v2336_v3  ;;  %v2339_v4 = vsel %vm2278_vm3, %v12119_v2, 0.0 }
 0x48e   : > { %2340 = vadd.xlane.f32.xlu1 %v2339_v4  ;;  %v10458_v4 = vld [vmem:[%s12610_s26 + $0x30] sm:$0xff] }
 0x48f   : > { %v12121_v5 = vpop.eup %12120 }
 0x490   : > { %v12123_v6 = vpop.eup %12122  ;;  %v2342_v8 = vsel %vm2278_vm3, %v12121_v5, 0.0 }
 0x491   : > { %2343 = vadd.xlane.f32.xlu0 %v2342_v8  ;;  %v2345_v9 = vsel %vm2278_vm3, %v12123_v6, 0.0 }
 0x492   : > { %2346 = vadd.xlane.f32.xlu1 %v2345_v9 }
 0x493   : > { %v12808_v10 = vpop.eup %12124 }
 0x494   : > { %v2348_v12 = vsel %vm2278_vm3, %v12808_v10, 0.0 }
 0x495   : > { %2349 = vadd.xlane.f32.xlu0 %v2348_v12 }
 0x512   : > { %v2329_v13 = vpop.xlane.xlu1 %2328 }
 0x513   : > { %12126 = vrcp.f32 %v2329_v13 }
 0x516   : > { %v2332_v38 = vpop.xlane.xlu0 %2331 }
 0x517   : > { %12128 = vrcp.f32 %v2332_v38  ;;  %v2335_v14 = vpop.xlane.xlu1 %2334 }
 0x518   : > { %12130 = vrcp.f32 %v2335_v14 }
 0x51a   : > { %v2338_v15 = vpop.xlane.xlu0 %2337 }
 0x51b   : > { %12132 = vrcp.f32 %v2338_v15  ;;  %v2341_v18 = vpop.xlane.xlu1 %2340 }
 0x51c   : > { %12134 = vrcp.f32 %v2341_v18 }
 0x51d   : > { %v12127_v19 = vpop.eup %12126 }
 0x51e   : > { %v2344_v20 = vpop.xlane.xlu0 %2343  ;;  %v2359_v21 = vmul.f32 %v12127_v19, %v12111_v50  ;;  %v10431_v50 = vld [vmem:[%s12590_s4 + $0x38] sm:$0xff]  ;;  %v12926_v19 = vld [vmem:[%s12722_s5 + $0x1] ss:$0 sm:$0xff] }
 0x51f   : > { %12136 = vrcp.f32 %v2344_v20  ;;  %v2347_v22 = vpop.xlane.xlu1 %2346 }
 0x520   : > { %12138 = vrcp.f32 %v2347_v22  ;;  %11257 = vmatmul.mubr.msk.f32.vlgmr.msra.gmra.mrb[26].mxu1 %vm2278_vm3, %v2359_v21 }
 0x521   : > { %v12129_v26 = vpop.eup %12128  ;;  %11265 = vmatpush3.msra.mxu1 %v12776_v36  ;;  %11266 = vmatprep.mubr.msk.f32.mxu1 %vm12359_vm2, %v12358_v7  ;;  %v10428_v36 = vld [vmem:[%s12590_s4 + $0x20] sm:$0xff] }
 0x522   : > { %v12131_v27 = vpop.eup %12130  ;;  %v2350_v30 = vpop.xlane.xlu0 %2349  ;;  %11274 = vmatprep.subr.mxu1 %v12358_v7  ;;  %v2360_v54 = vmul.f32 %v12129_v26, %v12113_v58  ;;  %v11926_v58 = vpack.c.bf16 %v10431_v50, %v10430_v49  ;;  %v12929_v26 = vld [vmem:[%s12728_s16 + $0x1] ss:$0 sm:$0xff] }
 0x523   : > { %12140 = vrcp.f32 %v2350_v30  ;;  %v2361_v33 = vmul.f32 %v12131_v27, %v12115_v60  ;;  %v11930_v60 = vpack.c.bf16 %v10443_v51, %v10442_v55 }
 0x524   : > { %11262 = vmatmul.mubr.msk.f32.vlgmr.msra.gmra.mrb[22].mxu0 %vm2278_vm3, %v2360_v54 }
 0x525   : > { %v12133_v37 = vpop.eup %12132  ;;  %11267 = vmatmul.mubr.msk.f32.vlgmr.msra.gmra.mrb[28].mxu1 %vm2278_vm3, %v2361_v33  ;;  %11270 = vmatpush3.msra.mxu0 %v12771_v53  ;;  %v11922_v53 = vpack.c.bf16 %v10429_v63, %v10428_v36 }
 0x526   : > { %v12135_v42 = vpop.eup %12134  ;;  %11275 = vmatpush3.msra.mxu1 %v12787_v40  ;;  %11271 = vmatprep.mubr.msk.f32.mxu0 %vm12359_vm2, %v12358_v7  ;;  %v2362_v46 = vmul.f32 %v12133_v37, %v12117_v1 }
 0x527   : > { %11276 = vmatprep.mubr.msk.f32.mxu1 %vm12359_vm2, %v12358_v7  ;;  %11279 = vmatprep.subr.mxu0 %v12358_v7  ;;  %v2363_v48 = vmul.f32 %v12135_v42, %v12119_v2 }
 0x528   : > { %11284 = vmatprep.subr.mxu1 %v12358_v7  ;;  %11272 = vmatmul.mubr.msk.f32.vlgmr.msra.gmra.mrb[24].mxu0 %vm2278_vm3, %v2362_v46 }
 0x529   : > { %v12137_v40 = vpop.eup %12136  ;;  %11277 = vmatmul.mubr.msk.f32.vlgmr.msra.gmra.mrb[30].mxu1 %vm2278_vm3, %v2363_v48  ;;  %11280 = vmatpush3.msra.mxu0 %v12784_v39  ;;  %v10445_v39 = vld [vmem:[%s12596_s23 + $0x38] sm:$0xff] }
 0x52a   : > { %v12139_v52 = vpop.eup %12138  ;;  %11285 = vmatpush3.msra.mxu1 %v12791_v47  ;;  %11281 = vmatprep.mubr.msk.f32.mxu0 %vm12359_vm2, %v12358_v7  ;;  %v2364_v56 = vmul.f32 %v12137_v40, %v12121_v5  ;;  %v10456_v47 = vld [vmem:[%s12610_s26 + $0x20] sm:$0xff]  ;;  %v11934_v2 = vpack.c.bf16 %v10445_v39, %v10444_v59  ;;  %v10459_v5 = vld [vmem:[%s12610_s26 + $0x38] sm:$0xff] }
 0x52b   : > { %v2365_v57 = vmul.f32 %v12139_v52, %v12123_v6  ;;  %11286 = vmatprep.mubr.msk.f32.mxu1 %vm12359_vm2, %v12358_v7  ;;  %11289 = vmatprep.subr.mxu0 %v12358_v7  ;;  %v11938_v3 = vpack.c.bf16 %v10457_v61, %v10456_v47  ;;  %v10461_v47 = vld [vmem:[%s12749_s29 + $0x1] ss:$0 sm:$0xff] }
 0x52c   : > { %11923 = vmatprep.subr.bf16.mxu1 %v11922_v53  ;;  %11282 = vmatmul.mubr.msk.f32.vlgmr.msra.gmra.mrb[26].mxu0 %vm2278_vm3, %v2364_v56 }
 0x52d   : > { %v12141_v62 = vpop.eup %12140  ;;  %11287 = vmatmul.mubr.msk.f32.vlgmr.msra.gmra.mrb[32].mxu1 %vm2278_vm3, %v2365_v57  ;;  %11290 = vmatpush3.msra.mxu0 %v12789_v43  ;;  %v11942_v43 = vpack.c.bf16 %v10459_v5, %v10458_v4 }
 0x52e   : > { %v2366_v1 = vmul.f32 %v12141_v62, %v12808_v10  ;;  %11925 = vmatpush3.bf16.msra.mxu1 %v11922_v53  ;;  %11302 = vmatprep.mubr.msk.f32.mxu1 %vm1164_vm1, %v12636_v11 }
 0x52f   : > { %11291 = vmatprep.mubr.msk.f32.mxu0 %vm12359_vm2, %v12358_v7  ;;  %11927 = vmatprep.subr.bf16.mxu1 %v11926_v58 }
 0x530   : > { %11931 = vmatprep.subr.bf16.mxu0 %v11930_v60  ;;  %11292 = vmatmul.mubr.msk.f32.vlgmr.msra.gmra.mrb[28].mxu0 %vm2278_vm3, %v2366_v1 }
 0x531   : > { %11933 = vmatpush3.bf16.msra.mxu0 %v11930_v60  ;;  %11322 = vmatprep.mubr.msk.f32.mxu0 %vm1164_vm1, %v12636_v11 }
 0x532   : > { %11929 = vmatpush3.bf16.msra.mxu1 %v11926_v58  ;;  %11935 = vmatprep.subr.bf16.mxu0 %v11934_v2 }
 0x533   : > { %11939 = vmatprep.subr.bf16.mxu1 %v11938_v3 }
 0x535   : > { %11303 = vmatmul.mubr.msk.f32.vlgmr.msra.gmra.mrb[34].mxu1 %vm1164_vm1, %v12646_v45  ;;  %11937 = vmatpush3.bf16.msra.mxu0 %v11934_v2 }
 0x536   : > { %11305 = vmatprep.mubr.msk.f32.mxu1 %vm1164_vm1, %v12649_v44  ;;  %11941 = vmatpush3.bf16.msra.mxu1 %v11938_v3 }
 0x537   : > { %11943 = vmatprep.subr.bf16.mxu1 %v11942_v43  ;;  %11354 = vmatprep.subr.mxu0 %v12358_v7 }
 0x538   : > { %11323 = vmatmul.mubr.msk.f32.vlgmr.msra.gmra.mrb[30].mxu0 %vm1164_vm1, %v12646_v45 }
 0x539   : > { %11306 = vmatmul.mubr.msk.f32.gmra.mrb[36].mxu1 %vm1164_vm1, %v12660_v31  ;;  %11325 = vmatprep.mubr.msk.f32.mxu0 %vm1164_vm1, %v12649_v44 }
 0x53a   : > { %11308 = vmatprep.mubr.msk.f32.mxu1 %vm1164_vm1, %v12664_v35  ;;  %11945 = vmatpush3.bf16.msra.mxu1 %v11942_v43 }
 0x53b   : > { %11374 = vmatprep.subr.mxu1 %v12358_v7 }
 0x53c   : > { %11326 = vmatmul.mubr.msk.f32.gmra.mrb[32].mxu0 %vm1164_vm1, %v12660_v31 }
 0x53d   : > { %11309 = vmatmul.mubr.msk.f32.gmra.mrb[38].mxu1 %vm1164_vm1, %v12675_v0  ;;  %11328 = vmatprep.mubr.msk.f32.mxu0 %vm1164_vm1, %v12664_v35 }
 0x53e   : > { %11311 = vmatprep.mubr.msk.f32.mxu1 %vm1164_vm1, %v12677_v34 }
 0x540   : > { %11329 = vmatmul.mubr.msk.f32.gmra.mrb[34].mxu0 %vm1164_vm1, %v12675_v0 }
 0x541   : > { %11312 = vmatmul.mubr.msk.f32.gmra.mrb[40].mxu1 %vm1164_vm1, %v12687_v41  ;;  %11331 = vmatprep.mubr.msk.f32.mxu0 %vm1164_vm1, %v12677_v34 }
 0x542   : > { %11342 = vmatprep.mubr.msk.f32.mxu1 %vm1164_vm1, %v12636_v11 }
 0x544   : > { %11332 = vmatmul.mubr.msk.f32.gmra.mrb[36].mxu0 %vm1164_vm1, %v12687_v41 }
 0x545   : > { %11343 = vmatmul.mubr.msk.f32.vlgmr.msra.gmra.mrb[42].mxu1 %vm1164_vm1, %v12646_v45  ;;  %11356 = vmatprep.mubr.msk.f32.mxu0 %vm12359_vm2, %v12358_v7 }
 0x546   : > { %11345 = vmatprep.mubr.msk.f32.mxu1 %vm1164_vm1, %v12649_v44 }
 0x549   : > { %11346 = vmatmul.mubr.msk.f32.gmra.mrb[44].mxu1 %vm1164_vm1, %v12660_v31 }
 0x54a   : > { %11348 = vmatprep.mubr.msk.f32.mxu1 %vm1164_vm1, %v12664_v35 }
 0x54d   : > { %11349 = vmatmul.mubr.msk.f32.gmra.mrb[46].mxu1 %vm1164_vm1, %v12675_v0 }
 0x54e   : > { %11351 = vmatprep.mubr.msk.f32.mxu1 %vm1164_vm1, %v12677_v34 }
 0x551   : > { %11352 = vmatmul.mubr.msk.f32.gmra.mrb[48].mxu1 %vm1164_vm1, %v12687_v41 }
 0x552   : > { %11376 = vmatprep.mubr.msk.f32.mxu1 %vm12359_vm2, %v12358_v7 }
 0x5f3   : > { %v12909_v11 = vpop.f32.mrb[26].mxu1 }
 0x5f4   : > { %v11258_v45 = vpop.f32.mrb[27].mxu1 }
 0x5f7   : > { %v12911_v44 = vpop.f32.mrb[22].mxu0 }
 0x5f8   : > { %v12913_v31 = vpop.f32.mrb[28].mxu1  ;;  %v11263_v35 = vpop.f32.mrb[23].mxu0 }
 0x5f9   : > { %v11268_v6 = vpop.f32.mrb[29].mxu1 }
 0x5fb   : > { %v12915_v0 = vpop.f32.mrb[24].mxu0 }
 0x5fc   : > { %v12917_v34 = vpop.f32.mrb[30].mxu1  ;;  %v11273_v8 = vpop.f32.mrb[25].mxu0 }
 0x5fd   : > { %v11278_v41 = vpop.f32.mrb[31].mxu1 }
 0x5ff   : > { %v12919_v9 = vpop.f32.mrb[26].mxu0 }
 0x600   : > { %v12921_v10 = vpop.f32.mrb[32].mxu1  ;;  %v11283_v12 = vpop.f32.mrb[27].mxu0 }
 0x601   : > { %v11288_v13 = vpop.f32.mrb[33].mxu1 }
 0x603   : > { %v12923_v38 = vpop.f32.mrb[28].mxu0 }
 0x604   : > { %v11293_v14 = vpop.f32.mrb[29].mxu0 }
 0x608   : > { %v11304_v15 = vpop.f32.mrb[34].mxu1 }
 0x609   : > { %v3032_v18 = vpop.f32.mrb[35].mxu1  ;;  %v3038_v48 = vadd.f32 %v11304_v15, %v12929_v26 }
 0x60a   : > { %v3033_v33 = vadd.f32 %v12929_v26, %v3032_v18 }
 0x60b   : > { %v11324_v20 = vpop.f32.mrb[30].mxu0 }
 0x60c   : > { %v11307_v21 = vpop.f32.mrb[36].mxu1  ;;  %v3150_v22 = vpop.f32.mrb[31].mxu0  ;;  %v3156_v63 = vadd.f32 %v11324_v20, %v12926_v19 }
 0x60d   : > { %v3042_v27 = vpop.f32.mrb[37].mxu1  ;;  %v3151_v30 = vadd.f32 %v12926_v19, %v3150_v22  ;;  %v3048_v61 = vadd.f32 %v11307_v21, %v12929_v26 }
 0x60e   : > { %v3043_v52 = vadd.f32 %v12929_v26, %v3042_v27 }
 0x60f   : > { %v11327_v54 = vpop.f32.mrb[32].mxu0  ;;  %11355 = vmatpush3.xpose.msk.msra.mxu0 %vm1032_vm0, %v3151_v30 }
 0x610   : > { %v11310_v37 = vpop.f32.mrb[38].mxu1  ;;  %v3160_v36 = vpop.f32.mrb[33].mxu0  ;;  %11359 = vmatprep.subr.mxu0 %v12358_v7  ;;  %v3166_v59 = vadd.f32 %v11327_v54, %v12926_v19 }
 0x611   : > { %v3052_v42 = vpop.f32.mrb[39].mxu1  ;;  %v3161_v50 = vadd.f32 %v12926_v19, %v3160_v36  ;;  %v3058_v45 = vadd.f32 %v11310_v37, %v12929_v26 }
 0x612   : > { %11357 = vmatmul.mubr.msk.f32.vlgmr.msra.gmra.mrb[38].mxu0 %vm1032_vm0, %v3033_v33  ;;  %v3053_v56 = vadd.f32 %v12929_v26, %v3052_v42 }
 0x613   : > { %v11330_v46 = vpop.f32.mrb[34].mxu0  ;;  %11360 = vmatpush3.xpose.msk.msra.mxu0 %vm1032_vm0, %v3156_v63  ;;  %11361 = vmatprep.mubr.msk.f32.mxu0 %vm12359_vm2, %v12358_v7 }
 0x614   : > { %v11313_v53 = vpop.f32.mrb[40].mxu1  ;;  %v3170_v49 = vpop.f32.mrb[35].mxu0  ;;  %11364 = vmatprep.subr.mxu0 %v12358_v7  ;;  %v3176_v2 = vadd.f32 %v11330_v46, %v12926_v19 }
 0x615   : > { %v3062_v40 = vpop.f32.mrb[41].mxu1  ;;  %v3171_v55 = vadd.f32 %v12926_v19, %v3170_v49  ;;  %v3068_v13 = vadd.f32 %v11313_v53, %v12929_v26 }
 0x616   : > { %11362 = vmatmul.mubr.msk.f32.vlgmr.msra.gmra.mrb[40].mxu0 %vm1032_vm0, %v3038_v48  ;;  %v3063_v62 = vadd.f32 %v12929_v26, %v3062_v40 }
 0x617   : > { %v11333_v51 = vpop.f32.mrb[36].mxu0  ;;  %11365 = vmatpush3.xpose.msk.msra.mxu0 %vm1032_vm0, %v3161_v50  ;;  %11375 = vmatpush3.xpose.msk.msra.mxu1 %vm1032_vm0, %v3171_v55 }
 0x618   : > { %v11344_v57 = vpop.f32.mrb[42].mxu1  ;;  %v3180_v58 = vpop.f32.mrb[37].mxu0  ;;  %11366 = vmatprep.mubr.msk.f32.mxu0 %vm12359_vm2, %v12358_v7  ;;  %11369 = vmatprep.subr.mxu0 %v12358_v7  ;;  %v3186_v6 = vadd.f32 %v11333_v51, %v12926_v19 }
 0x619   : > { %v3181_v39 = vadd.f32 %v12926_v19, %v3180_v58  ;;  %v3268_v60 = vpop.f32.mrb[43].mxu1  ;;  %11384 = vmatprep.subr.mxu1 %v12358_v7  ;;  %v3274_v15 = vadd.f32 %v11344_v57, %v10461_v47 }
 0x61a   : > { %11367 = vmatmul.mubr.msk.f32.vlgmr.msra.gmra.mrb[42].mxu0 %vm1032_vm0, %v3043_v52  ;;  %11377 = vmatmul.mubr.msk.f32.vlgmr.msra.gmra.mrb[50].mxu1 %vm1032_vm0, %v3053_v56  ;;  %v3269_v3 = vadd.f32 %v10461_v47, %v3268_v60 }
 0x61b   : > { %11370 = vmatpush3.xpose.msk.msra.mxu0 %vm1032_vm0, %v3166_v59  ;;  %11385 = vmatpush3.xpose.msk.msra.mxu1 %vm1032_vm0, %v3181_v39 }
 0x61c   : > { %v11347_v1 = vpop.f32.mrb[44].mxu1  ;;  %11371 = vmatprep.mubr.msk.f32.mxu0 %vm12359_vm2, %v12358_v7  ;;  %11386 = vmatprep.mubr.msk.f32.mxu1 %vm12359_vm2, %v12358_v7 }
 0x61d   : > { %v12967_v4 = vadd.f32 %v11347_v1, %v10461_v47  ;;  %v3278_v5 = vpop.f32.mrb[45].mxu1  ;;  %11379 = vmatprep.subr.mxu0 %v12358_v7  ;;  %11394 = vmatprep.subr.mxu1 %v12358_v7 }
 0x61e   : > { %v12971_v43 = vadd.f32 %v10461_v47, %v3278_v5  ;;  %11372 = vmatmul.mubr.msk.f32.vlgmr.msra.gmra.mrb[44].mxu0 %vm1032_vm0, %v3048_v61  ;;  %11387 = vmatmul.mubr.msk.f32.vlgmr.msra.gmra.mrb[52].mxu1 %vm1032_vm0, %v3063_v62 }
 0x61f   : > { %11380 = vmatpush3.xpose.msk.msra.mxu0 %vm1032_vm0, %v3176_v2  ;;  %11395 = vmatpush3.msra.mxu1 %v3269_v3 }
 0x620   : > { %v11350_v35 = vpop.f32.mrb[46].mxu1  ;;  %11381 = vmatprep.mubr.msk.f32.mxu0 %vm12359_vm2, %v12358_v7  ;;  %11389 = vmatprep.subr.mxu0 %v12358_v7 }
 0x621   : > { %v12981_v8 = vadd.f32 %v11350_v35, %v10461_v47  ;;  %v3288_v41 = vpop.f32.mrb[47].mxu1  ;;  %11396 = vmatprep.mubr.msk.f32.mxu1 %vm12359_vm2, %v12358_v7  ;;  %11404 = vmatprep.subr.mxu1 %v12358_v7 }
 0x622   : > { %v12986_v12 = vadd.f32 %v10461_v47, %v3288_v41  ;;  %11382 = vmatmul.mubr.msk.f32.vlgmr.msra.gmra.mrb[46].mxu0 %vm1032_vm0, %v3058_v45 }
 0x623   : > { %11390 = vmatpush3.xpose.msk.msra.mxu0 %vm1032_vm0, %v3186_v6  ;;  %11391 = vmatprep.mubr.msk.f32.mxu0 %vm12359_vm2, %v12358_v7 }
 0x624   : > { %v11353_v14 = vpop.f32.mrb[48].mxu1  ;;  %11399 = vmatprep.subr.mxu0 %v12358_v7 }
 0x625   : > { %v12994_v18 = vadd.f32 %v11353_v14, %v10461_v47  ;;  %v3298_v19 = vpop.f32.mrb[49].mxu1 }
 0x626   : > { %v12996_v20 = vadd.f32 %v10461_v47, %v3298_v19  ;;  %11392 = vmatmul.mubr.msk.f32.vlgmr.msra.gmra.mrb[48].mxu0 %vm1032_vm0, %v3068_v13 }
 0x627   : > { %11400 = vmatpush3.msra.mxu0 %v3274_v15  ;;  %11401 = vmatprep.mubr.msk.f32.mxu0 %vm12359_vm2, %v12358_v7 }
 0x628   : > { %11409 = vmatprep.subr.mxu0 %v12358_v7 }
 0x6e5   : > { %v3379_v21 = vpop.f32.mrb[38].mxu0 }
 0x6e6   : > { %v11358_v22 = vpop.f32.mrb[39].mxu0  ;;  %v3915_v26 = vsel %vm2278_vm3, %v3379_v21, -inf }
 0x6e7   : > { %3916 = vmax.xlane.f32.xlu0 %v3915_v26 }
 0x6e9   : > { %v3455_v27 = vpop.f32.mrb[40].mxu0 }
 0x6ea   : > { %v11363_v30 = vpop.f32.mrb[41].mxu0  ;;  %v3918_v54 = vsel %vm2278_vm3, %v3455_v27, -inf }
 0x6eb   : > { %3919 = vmax.xlane.f32.xlu1 %v3918_v54 }
 0x6ed   : > { %v3531_v33 = vpop.f32.mrb[42].mxu0  ;;  %v3683_v37 = vpop.f32.mrb[50].mxu1 }
 0x6ee   : > { %v11368_v36 = vpop.f32.mrb[43].mxu0  ;;  %v11378_v63 = vpop.f32.mrb[51].mxu1  ;;  %v3921_v42 = vsel %vm2278_vm3, %v3531_v33, -inf  ;;  %v3927_v50 = vsel %vm2278_vm3, %v3683_v37, -inf }
 0x6ef   : > { %3922 = vmax.xlane.f32.xlu0 %v3921_v42 }
 0x6f1   : > { %v3607_v46 = vpop.f32.mrb[44].mxu0  ;;  %v3835_v48 = vpop.f32.mrb[52].mxu1 }
 0x6f2   : > { %v11373_v53 = vpop.f32.mrb[45].mxu0  ;;  %v11388_v49 = vpop.f32.mrb[53].mxu1  ;;  %v3924_v40 = vsel %vm2278_vm3, %v3607_v46, -inf  ;;  %v3933_v52 = vsel %vm2278_vm3, %v3835_v48, -inf }
 0x6f3   : > { %3928 = vmax.xlane.f32.xlu0 %v3927_v50  ;;  %3925 = vmax.xlane.f32.xlu1 %v3924_v40 }
 0x6f5   : > { %v3759_v55 = vpop.f32.mrb[46].mxu0 }
 0x6f6   : > { %v11383_v51 = vpop.f32.mrb[47].mxu0  ;;  %v3930_v56 = vsel %vm2278_vm3, %v3759_v55, -inf }
 0x6f7   : > { %3934 = vmax.xlane.f32.xlu0 %v3933_v52  ;;  %3931 = vmax.xlane.f32.xlu1 %v3930_v56 }
 0x6f9   : > { %v3911_v57 = vpop.f32.mrb[48].mxu0 }
 0x6fa   : > { %v11393_v58 = vpop.f32.mrb[49].mxu0  ;;  %v3936_v59 = vsel %vm2278_vm3, %v3911_v57, -inf }
 0x6fb   : > { %3937 = vmax.xlane.f32.xlu1 %v3936_v59 }
 0x774   : > { %v3917_v39 = vpop.xlane.xlu0 %3916 }
 0x775   : > { %v3939_v60 = vsub.f32 %v3379_v21, %v3917_v39 }
 0x777   : > { %v3947_v47 = vmul.f32 1.442695, %v3939_v60 }
 0x778   : > { %v3920_v61 = vpop.xlane.xlu1 %3919 }
 0x779   : > { %12142 = vpow2.f32 %v3947_v47  ;;  %v3940_v62 = vsub.f32 %v3455_v27, %v3920_v61 }
 0x77b   : > { %v3949_v1 = vmul.f32 1.442695, %v3940_v62 }
 0x77c   : > { %v3923_v2 = vpop.xlane.xlu0 %3922 }
 0x77d   : > { %12144 = vpow2.f32 %v3949_v1  ;;  %v3941_v3 = vsub.f32 %v3531_v33, %v3923_v2 }
 0x77f   : > { %v3951_v5 = vmul.f32 1.442695, %v3941_v3 }
 0x780   : > { %v3929_v45 = vpop.xlane.xlu0 %3928  ;;  %v3926_v35 = vpop.xlane.xlu1 %3925 }
 0x781   : > { %12146 = vpow2.f32 %v3951_v5  ;;  %v3943_v6 = vsub.f32 %v3683_v37, %v3929_v45  ;;  %v3942_v41 = vsub.f32 %v3607_v46, %v3926_v35 }
 0x783   : > { %v12143_v13 = vpop.eup %12142  ;;  %v3955_v14 = vmul.f32 1.442695, %v3943_v6  ;;  %v3953_v15 = vmul.f32 1.442695, %v3942_v41 }
 0x784   : > { %v3935_v19 = vpop.xlane.xlu0 %3934  ;;  %v3932_v22 = vpop.xlane.xlu1 %3931  ;;  %v3963_v21 = vsel %vm2278_vm3, %v12143_v13, 0.0 }
 0x785   : > { %12148 = vpow2.f32 %v3955_v14  ;;  %v3945_v26 = vsub.f32 %v3835_v48, %v3935_v19  ;;  %v3944_v27 = vsub.f32 %v3759_v55, %v3932_v22  ;;  %3964 = vadd.xlane.f32.xlu0 %v3963_v21 }
 0x786   : > { %12150 = vpow2.f32 %v3953_v15 }
 0x787   : > { %v12145_v30 = vpop.eup %12144  ;;  %v3959_v54 = vmul.f32 1.442695, %v3945_v26  ;;  %v3957_v33 = vmul.f32 1.442695, %v3944_v27  ;;  %v10495_v26 = vld [vmem:[%s13052_s22 + $0x18] sm:$0xff] }
 0x788   : > { %v3938_v36 = vpop.xlane.xlu1 %3937  ;;  %v3966_v63 = vsel %vm2278_vm3, %v12145_v30, 0.0 }
 0x789   : > { %12152 = vpow2.f32 %v3959_v54  ;;  %v3946_v37 = vsub.f32 %v3911_v57, %v3938_v36  ;;  %3967 = vadd.xlane.f32.xlu1 %v3966_v63 }
 0x78a   : > { %12154 = vpow2.f32 %v3957_v33 }
 0x78b   : > { %v12147_v42 = vpop.eup %12146  ;;  %v3961_v46 = vmul.f32 1.442695, %v3946_v37 }
 0x78c   : > { %v3969_v53 = vsel %vm2278_vm3, %v12147_v42, 0.0 }
 0x78d   : > { %12156 = vpow2.f32 %v3961_v46  ;;  %3970 = vadd.xlane.f32.xlu0 %v3969_v53 }
 0x78f   : > { %v12149_v48 = vpop.eup %12148 }
 0x790   : > { %v12151_v49 = vpop.eup %12150  ;;  %v3975_v50 = vsel %vm2278_vm3, %v12149_v48, 0.0 }
 0x791   : > { %3976 = vadd.xlane.f32.xlu0 %v3975_v50  ;;  %v3972_v40 = vsel %vm2278_vm3, %v12151_v49, 0.0 }
 0x792   : > { %3973 = vadd.xlane.f32.xlu1 %v3972_v40 }
 0x793   : > { %v12153_v55 = vpop.eup %12152 }
 0x794   : > { %v12155_v51 = vpop.eup %12154  ;;  %v3981_v52 = vsel %vm2278_vm3, %v12153_v55, 0.0 }
 0x795   : > { %3982 = vadd.xlane.f32.xlu0 %v3981_v52  ;;  %v3978_v56 = vsel %vm2278_vm3, %v12155_v51, 0.0 }
 0x796   : > { %3979 = vadd.xlane.f32.xlu1 %v3978_v56 }
 0x797   : > { %v12157_v57 = vpop.eup %12156 }
 0x798   : > { %v3984_v58 = vsel %vm2278_vm3, %v12157_v57, 0.0 }
 0x79a   : > { %3985 = vadd.xlane.f32.xlu1 %v3984_v58 }
 0x812   : > { %v3965_v59 = vpop.xlane.xlu0 %3964 }
 0x813   : > { %12158 = vrcp.f32 %v3965_v59 }
 0x816   : > { %v3968_v39 = vpop.xlane.xlu1 %3967 }
 0x817   : > { %12160 = vrcp.f32 %v3968_v39 }
 0x81a   : > { %v3971_v60 = vpop.xlane.xlu0 %3970 }
 0x81b   : > { %12162 = vrcp.f32 %v3971_v60 }
 0x81d   : > { %v12159_v47 = vpop.eup %12158 }
 0x81e   : > { %v3995_v61 = vmul.f32 %v12159_v47, %v12143_v13  ;;  %v3977_v62 = vpop.xlane.xlu0 %3976 }
 0x81f   : > { %12164 = vrcp.f32 %v3977_v62  ;;  %v3974_v1 = vpop.xlane.xlu1 %3973 }
 0x820   : > { %12166 = vrcp.f32 %v3974_v1  ;;  %11397 = vmatmul.mubr.msk.f32.vlgmr.msra.gmra.mrb[54].mxu1 %vm2278_vm3, %v3995_v61 }
 0x821   : > { %v12161_v2 = vpop.eup %12160  ;;  %11405 = vmatpush3.msra.mxu1 %v12971_v43  ;;  %11406 = vmatprep.mubr.msk.f32.mxu1 %vm12359_vm2, %v12358_v7 }
 0x822   : > { %v3996_v3 = vmul.f32 %v12161_v2, %v12145_v30  ;;  %v3983_v5 = vpop.xlane.xlu0 %3982  ;;  %11414 = vmatprep.subr.mxu1 %v12358_v7  ;;  %v2952_v30 = vld [vmem:[%s13052_s22 + $0x8] sm:$0xff] }
 0x823   : > { %12168 = vrcp.f32 %v3983_v5  ;;  %v3980_v45 = vpop.xlane.xlu1 %3979 }
 0x824   : > { %12170 = vrcp.f32 %v3980_v45  ;;  %11402 = vmatmul.mubr.msk.f32.vlgmr.msra.gmra.mrb[50].mxu0 %vm2278_vm3, %v3996_v3 }
 0x825   : > { %v12163_v35 = vpop.eup %12162  ;;  %11410 = vmatpush3.msra.mxu0 %v12967_v4  ;;  %11411 = vmatprep.mubr.msk.f32.mxu0 %vm12359_vm2, %v12358_v7 }
 0x826   : > { %v3997_v6 = vmul.f32 %v12163_v35, %v12147_v42  ;;  %11419 = vmatprep.subr.mxu0 %v12358_v7 }
 0x827   : > { %v3986_v43 = vpop.xlane.xlu1 %3985 }
 0x828   : > { %12172 = vrcp.f32 %v3986_v43  ;;  %11407 = vmatmul.mubr.msk.f32.vlgmr.msra.gmra.mrb[56].mxu1 %vm2278_vm3, %v3997_v6 }
 0x829   : > { %v12165_v41 = vpop.eup %12164  ;;  %11415 = vmatpush3.msra.mxu1 %v12986_v12  ;;  %11416 = vmatprep.mubr.msk.f32.mxu1 %vm12359_vm2, %v12358_v7 }
 0x82a   : > { %v12167_v13 = vpop.eup %12166  ;;  %v3999_v14 = vmul.f32 %v12165_v41, %v12149_v48  ;;  %11424 = vmatprep.subr.mxu1 %v12358_v7 }
 0x82b   : > { %v3998_v4 = vmul.f32 %v12167_v13, %v12151_v49 }
 0x82c   : > { %11417 = vmatmul.mubr.msk.f32.vlgmr.msra.gmra.mrb[58].mxu1 %vm2278_vm3, %v3999_v14 }
 0x82d   : > { %v12169_v15 = vpop.eup %12168  ;;  %11412 = vmatmul.mubr.msk.f32.vlgmr.msra.gmra.mrb[52].mxu0 %vm2278_vm3, %v3998_v4  ;;  %11425 = vmatpush3.msra.mxu1 %v12996_v20  ;;  %v10494_v20 = vld [vmem:[%s13052_s22 + $0x10] sm:$0xff] }
 0x82e   : > { %v12171_v19 = vpop.eup %12170  ;;  %v4001_v22 = vmul.f32 %v12169_v15, %v12153_v55  ;;  %11420 = vmatpush3.msra.mxu0 %v12981_v8  ;;  %11421 = vmatprep.mubr.msk.f32.mxu0 %vm12359_vm2, %v12358_v7  ;;  %v11946_v27 = vpack.c.bf16 %v10495_v26, %v10494_v20 }
 0x82f   : > { %v4000_v12 = vmul.f32 %v12171_v19, %v12155_v51  ;;  %11426 = vmatprep.mubr.msk.f32.mxu1 %vm12359_vm2, %v12358_v7  ;;  %11429 = vmatprep.subr.mxu0 %v12358_v7 }
 0x830   : > { %11427 = vmatmul.mubr.msk.f32.vlgmr.msra.gmra.mrb[60].mxu1 %vm2278_vm3, %v4001_v22  ;;  %11947 = vmatprep.subr.bf16.mxu1 %v11946_v27 }
 0x831   : > { %11422 = vmatmul.mubr.msk.f32.vlgmr.msra.gmra.mrb[54].mxu0 %vm2278_vm3, %v4000_v12  ;;  %11949 = vmatpush3.bf16.msra.mxu1 %v11946_v27 }
 0x832   : > { %v12173_v21 = vpop.eup %12172  ;;  %11430 = vmatpush3.msra.mxu0 %v12994_v18  ;;  %11431 = vmatprep.mubr.msk.f32.mxu0 %vm12359_vm2, %v12358_v7  ;;  %v2951_v18 = vld [vmem:[%s13052_s22] sm:$0xff] }
 0x833   : > { %v4002_v8 = vmul.f32 %v12173_v21, %v12157_v57  ;;  %v11950_v54 = vpack.c.bf16 %v2952_v30, %v2951_v18 }
 0x835   : > { %11432 = vmatmul.mubr.msk.f32.vlgmr.msra.gmra.mrb[56].mxu0 %vm2278_vm3, %v4002_v8  ;;  %11951 = vmatprep.subr.bf16.mxu1 %v11950_v54 }
 0x8f3   : > { %v4072_v33 = vpop.f32.mrb[54].mxu1 }
 0x8f4   : > { %v11398_v36 = vpop.f32.mrb[55].mxu1  ;;  %11438 = vmatprep.mubr.msk.f32.mxu1 %vm1032_vm0, %v4072_v33 }
 0x8f7   : > { %v4145_v63 = vpop.f32.mrb[50].mxu0 }
 0x8f8   : > { %v11403_v37 = vpop.f32.mrb[51].mxu0  ;;  %11439 = vmatmul.mubr.msk.f32.vlgmr.msra.gmra.mrb[62].mxu1 %vm1032_vm0, %v4145_v63 }
 0x8f9   : > { %11953 = vmatpush3.bf16.msra.mxu1 %v11950_v54 }
 0x8fb   : > { %v4218_v42 = vpop.f32.mrb[56].mxu1 }
 0x8fc   : > { %v11408_v46 = vpop.f32.mrb[57].mxu1  ;;  %11441 = vmatprep.mubr.msk.f32.mxu1 %vm1032_vm0, %v4218_v42 }
 0x8ff   : > { %v4364_v53 = vpop.f32.mrb[58].mxu1 }
 0x900   : > { %v4291_v48 = vpop.f32.mrb[52].mxu0  ;;  %v11418_v49 = vpop.f32.mrb[59].mxu1 }
 0x901   : > { %v11413_v50 = vpop.f32.mrb[53].mxu0  ;;  %11442 = vmatmul.mubr.msk.f32.gmra.mrb[64].mxu1 %vm1032_vm0, %v4291_v48 }
 0x902   : > { %11444 = vmatprep.mubr.msk.f32.mxu1 %vm1032_vm0, %v4364_v53 }
 0x903   : > { %v4510_v40 = vpop.f32.mrb[60].mxu1 }
 0x904   : > { %v4437_v55 = vpop.f32.mrb[54].mxu0  ;;  %v11428_v51 = vpop.f32.mrb[61].mxu1 }
 0x905   : > { %v11423_v52 = vpop.f32.mrb[55].mxu0  ;;  %11445 = vmatmul.mubr.msk.f32.gmra.mrb[66].mxu1 %vm1032_vm0, %v4437_v55 }
 0x906   : > { %11447 = vmatprep.mubr.msk.f32.mxu1 %vm1032_vm0, %v4510_v40 }
 0x908   : > { %v4583_v56 = vpop.f32.mrb[56].mxu0 }
 0x909   : > { %v11433_v57 = vpop.f32.mrb[57].mxu0  ;;  %11448 = vmatmul.mubr.msk.f32.gmra.mrb[68].mxu1 %vm1032_vm0, %v4583_v56 }
 0x90a   : > { %11454 = vmatprep.mubr.msk.f32.mxu1 %vm1032_vm0, %v12909_v11 }
 0x90d   : > { %11455 = vmatmul.mubr.msk.f32.vlgmr.msra.gmra.mrb[62].mxu1 %vm1032_vm0, %v12911_v44  ;;  %v10512_v44 = vld [vmem:[%s13086_s24] ss:$0 sm:$0xff] }
 0x90e   : > { %11457 = vmatprep.mubr.msk.f32.mxu1 %vm1032_vm0, %v12913_v31 }
 0x911   : > { %11458 = vmatmul.mubr.msk.f32.gmra.mrb[64].mxu1 %vm1032_vm0, %v12915_v0 }
 0x912   : > { %11460 = vmatprep.mubr.msk.f32.mxu1 %vm1032_vm0, %v12917_v34 }
 0x915   : > { %11461 = vmatmul.mubr.msk.f32.gmra.mrb[66].mxu1 %vm1032_vm0, %v12919_v9 }
 0x916   : > { %11463 = vmatprep.mubr.msk.f32.mxu1 %vm1032_vm0, %v12921_v10 }
 0x919   : > { %11464 = vmatmul.mubr.msk.f32.gmra.mrb[68].mxu1 %vm1032_vm0, %v12923_v38 }
 0x9e0   : > { %v11456_v11 = vpop.f32.mrb[62].mxu1 }
 0x9e1   : > { %v4849_v31 = vadd.f32 %v11456_v11, %v12505_v17  ;;  %v4809_v0 = vpop.f32.mrb[63].mxu1 }
 0x9e2   : > { %v4848_v34 = vadd.f32 %v4809_v0, %v12503_v16 }
 0x9e3   : > { %v13091_v9 = vadd.f32 %v10512_v44, %v4849_v31 }
 0x9e4   : > { %v13093_v58 = vadd.f32 %v10512_v44, %v4848_v34  ;;  %v11459_v10 = vpop.f32.mrb[64].mxu1 }
 0x9e5   : > { %v4851_v38 = vadd.f32 %v11459_v10, %v12509_v23  ;;  %v4819_v59 = vpop.f32.mrb[65].mxu1  ;;  %v4876_v39 = vsel %vm1164_vm1, %v13091_v9, 0.0 }
 0x9e6   : > { %v4850_v60 = vadd.f32 %v4819_v59, %v12511_v24  ;;  %4877 = vadd.xlane.f32.xlu1 %v4876_v39  ;;  %v4873_v17 = vsel %vm1164_vm1, %v13093_v58, 0.0 }
 0x9e7   : > { %v13101_v47 = vadd.f32 %v10512_v44, %v4851_v38  ;;  %4874 = vadd.xlane.f32.xlu0 %v4873_v17  ;;  %v5005_v17 = vld [vmem:[%s13181_s15] sm:$0xff] }
 0x9e8   : > { %v13103_v16 = vadd.f32 %v10512_v44, %v4850_v60  ;;  %v11462_v61 = vpop.f32.mrb[66].mxu1 }
 0x9e9   : > { %v4853_v62 = vadd.f32 %v11462_v61, %v12519_v28  ;;  %v4829_v1 = vpop.f32.mrb[67].mxu1  ;;  %v4882_v23 = vsel %vm1164_vm1, %v13101_v47, 0.0  ;;  %v5006_v61 = vld [vmem:[%s13181_s15 + $0x8] sm:$0xff] }
 0x9ea   : > { %v4852_v2 = vadd.f32 %v4829_v1, %v12513_v25  ;;  %4883 = vadd.xlane.f32.xlu1 %v4882_v23  ;;  %v4879_v24 = vsel %vm1164_vm1, %v13103_v16, 0.0  ;;  %v5007_v1 = vld [vmem:[%s13181_s15 + $0x10] sm:$0xff]  ;;  %v5008_v23 = vld [vmem:[%s13181_s15 + $0x18] sm:$0xff] }
 0x9eb   : > { %v13111_v3 = vadd.f32 %v10512_v44, %v4853_v62  ;;  %4880 = vadd.xlane.f32.xlu0 %v4879_v24  ;;  %v11954_v62 = vpack.c.bf16 %v5006_v61, %v5005_v17 }
 0x9ec   : > { %v13113_v5 = vadd.f32 %v10512_v44, %v4852_v2  ;;  %v11465_v45 = vpop.f32.mrb[68].mxu1  ;;  %v11958_v2 = vpack.c.bf16 %v5008_v23, %v5007_v1 }
 0x9ed   : > { %v4855_v35 = vadd.f32 %v11465_v45, %v12527_v32  ;;  %v4839_v6 = vpop.f32.mrb[69].mxu1  ;;  %v4888_v28 = vsel %vm1164_vm1, %v13111_v3, 0.0  ;;  %11955 = vmatprep.subr.bf16.mxu0 %v11954_v62 }
 0x9ee   : > { %v4854_v43 = vadd.f32 %v4839_v6, %v12521_v29  ;;  %4889 = vadd.xlane.f32.xlu1 %v4888_v28  ;;  %v4885_v25 = vsel %vm1164_vm1, %v13113_v5, 0.0  ;;  %11957 = vmatpush3.bf16.msra.mxu0 %v11954_v62 }
 0x9ef   : > { %v13121_v41 = vadd.f32 %v10512_v44, %v4855_v35  ;;  %4886 = vadd.xlane.f32.xlu0 %v4885_v25  ;;  %11959 = vmatprep.subr.bf16.mxu0 %v11958_v2 }
 0x9f0   : > { %v13123_v13 = vadd.f32 %v10512_v44, %v4854_v43 }
 0x9f1   : > { %v4894_v14 = vsel %vm1164_vm1, %v13121_v41, 0.0 }
 0x9f2   : > { %4895 = vadd.xlane.f32.xlu1 %v4894_v14  ;;  %v4891_v32 = vsel %vm1164_vm1, %v13123_v13, 0.0  ;;  %11961 = vmatpush3.bf16.msra.mxu0 %v11958_v2 }
 0x9f3   : > { %4892 = vadd.xlane.f32.xlu0 %v4891_v32 }
 0xa73   : > { %v4878_v4 = vpop.xlane.xlu1 %4877 }
 0xa74   : > { %v4898_v15 = vmul.f32 0.03125, %v4878_v4  ;;  %v4875_v29 = vpop.xlane.xlu0 %4874 }
 0xa75   : > { %v4897_v19 = vmul.f32 0.03125, %v4875_v29 }
 0xa76   : > { %v13130_v22 = vsub.f32 %v13091_v9, %v4898_v15 }
 0xa77   : > { %v13133_v12 = vsub.f32 %v13093_v58, %v4897_v19  ;;  %v4884_v21 = vpop.xlane.xlu1 %4883 }
 0xa78   : > { %v4900_v8 = vmul.f32 0.03125, %v4884_v21  ;;  %v4881_v20 = vpop.xlane.xlu0 %4880  ;;  %v4914_v26 = vmul.f32 %v13130_v22, %v13130_v22 }
 0xa79   : > { %v4899_v27 = vmul.f32 0.03125, %v4881_v20  ;;  %v4913_v18 = vmul.f32 %v13133_v12, %v13133_v12 }
 0xa7a   : > { %v13140_v30 = vsub.f32 %v13101_v47, %v4900_v8  ;;  %v4924_v54 = vsel %vm1164_vm1, %v4914_v26, 0.0 }
 0xa7b   : > { %v13144_v33 = vsub.f32 %v13103_v16, %v4899_v27  ;;  %v4890_v36 = vpop.xlane.xlu1 %4889  ;;  %4925 = vadd.xlane.f32.xlu1 %v4924_v54  ;;  %v4921_v63 = vsel %vm1164_vm1, %v4913_v18, 0.0 }
 0xa7c   : > { %v4902_v37 = vmul.f32 0.03125, %v4890_v36  ;;  %v4887_v42 = vpop.xlane.xlu0 %4886  ;;  %4922 = vadd.xlane.f32.xlu0 %v4921_v63  ;;  %v4916_v46 = vmul.f32 %v13140_v30, %v13140_v30 }
 0xa7d   : > { %v4901_v53 = vmul.f32 0.03125, %v4887_v42  ;;  %v4915_v48 = vmul.f32 %v13144_v33, %v13144_v33 }
 0xa7e   : > { %v13152_v49 = vsub.f32 %v13111_v3, %v4902_v37  ;;  %v4930_v50 = vsel %vm1164_vm1, %v4916_v46, 0.0  ;;  %v10513_v46 = vld [vmem:[%s13191_s6] ss:$0 sm:$0xff] }
 0xa7f   : > { %v13156_v40 = vsub.f32 %v13113_v5, %v4901_v53  ;;  %4931 = vadd.xlane.f32.xlu1 %v4930_v50  ;;  %v4896_v55 = vpop.xlane.xlu1 %4895  ;;  %v4927_v51 = vsel %vm1164_vm1, %v4915_v48, 0.0 }
 0xa80   : > { %v4904_v52 = vmul.f32 0.03125, %v4896_v55  ;;  %4928 = vadd.xlane.f32.xlu0 %v4927_v51  ;;  %v4893_v56 = vpop.xlane.xlu0 %4892  ;;  %v4918_v57 = vmul.f32 %v13152_v49, %v13152_v49  ;;  %v10514_v51 = vld [vmem:[%s13197_s10] ss:$0 sm:$0xff] }
 0xa81   : > { %v4903_v11 = vmul.f32 0.03125, %v4893_v56  ;;  %v4917_v44 = vmul.f32 %v13156_v40, %v13156_v40 }
 0xa82   : > { %v13164_v31 = vsub.f32 %v13121_v41, %v4904_v52  ;;  %v4936_v0 = vsel %vm1164_vm1, %v4918_v57, 0.0 }
 0xa83   : > { %v13168_v34 = vsub.f32 %v13123_v13, %v4903_v11  ;;  %4937 = vadd.xlane.f32.xlu1 %v4936_v0  ;;  %v4933_v10 = vsel %vm1164_vm1, %v4917_v44, 0.0 }
 0xa84   : > { %4934 = vadd.xlane.f32.xlu0 %v4933_v10  ;;  %v4920_v38 = vmul.f32 %v13164_v31, %v13164_v31 }
 0xa85   : > { %v4919_v59 = vmul.f32 %v13168_v34, %v13168_v34 }
 0xa86   : > { %v4942_v39 = vsel %vm1164_vm1, %v4920_v38, 0.0 }
 0xa87   : > { %4943 = vadd.xlane.f32.xlu1 %v4942_v39  ;;  %v4939_v60 = vsel %vm1164_vm1, %v4919_v59, 0.0 }
 0xa88   : > { %4940 = vadd.xlane.f32.xlu0 %v4939_v60 }
 0xb08   : > { %v4926_v24 = vpop.xlane.xlu1 %4925 }
 0xb09   : > { %v4946_v45 = vmul.f32 0.03125, %v4926_v24  ;;  %v4923_v35 = vpop.xlane.xlu0 %4922 }
 0xb0a   : > { %v4945_v6 = vmul.f32 0.03125, %v4923_v35 }
 0xb0b   : > { %v4954_v28 = vadd.f32 1e-05, %v4946_v45 }
 0xb0c   : > { %v4953_v43 = vadd.f32 1e-05, %v4945_v6  ;;  %v4932_v25 = vpop.xlane.xlu1 %4931 }
 0xb0d   : > { %12174 = vrsqrt.f32 %v4954_v28  ;;  %v4948_v14 = vmul.f32 0.03125, %v4932_v25  ;;  %v4929_v32 = vpop.xlane.xlu0 %4928  ;;  %v5363_v25 = vld [vmem:[%s13221_s0 + $0x10] sm:$0xff] }
 0xb0e   : > { %12176 = vrsqrt.f32 %v4953_v43  ;;  %v4947_v4 = vmul.f32 0.03125, %v4929_v32 }
 0xb0f   : > { %v4956_v15 = vadd.f32 1e-05, %v4948_v14  ;;  %v5364_v14 = vld [vmem:[%s13221_s0 + $0x18] sm:$0xff] }
 0xb10   : > { %v4955_v29 = vadd.f32 1e-05, %v4947_v4  ;;  %v4938_v19 = vpop.xlane.xlu1 %4937  ;;  %v11966_v32 = vpack.c.bf16 %v5364_v14, %v5363_v25  ;;  %v5365_v4 = vld [vmem:[%s13221_s0 + $0x20] sm:$0xff] }
 0xb11   : > { %12178 = vrsqrt.f32 %v4956_v15  ;;  %v4950_v21 = vmul.f32 0.03125, %v4938_v19  ;;  %v4935_v8 = vpop.xlane.xlu0 %4934  ;;  %v5366_v15 = vld [vmem:[%s13221_s0 + $0x28] sm:$0xff]  ;;  %v5367_v19 = vld [vmem:[%s13221_s0 + $0x30] sm:$0xff] }
 0xb12   : > { %12180 = vrsqrt.f32 %v4955_v29  ;;  %v4949_v20 = vmul.f32 0.03125, %v4935_v8  ;;  %v11970_v29 = vpack.c.bf16 %v5366_v15, %v5365_v4 }
 0xb13   : > { %v4958_v26 = vadd.f32 1e-05, %v4950_v21  ;;  %v5368_v21 = vld [vmem:[%s13221_s0 + $0x38] sm:$0xff] }
 0xb14   : > { %v4957_v27 = vadd.f32 1e-05, %v4949_v20  ;;  %v4944_v18 = vpop.xlane.xlu1 %4943  ;;  %v11974_v8 = vpack.c.bf16 %v5368_v21, %v5367_v19  ;;  %v10515_v20 = vld [vmem:[%s13235_s8] ss:$0 sm:$0xff] }
 0xb15   : > { %12182 = vrsqrt.f32 %v4958_v26  ;;  %v4952_v54 = vmul.f32 0.03125, %v4944_v18  ;;  %v4941_v36 = vpop.xlane.xlu0 %4940 }
 0xb16   : > { %12184 = vrsqrt.f32 %v4957_v27  ;;  %v4951_v63 = vmul.f32 0.03125, %v4941_v36 }
 0xb17   : > { %v12175_v37 = vpop.eup %12174  ;;  %v4960_v42 = vadd.f32 1e-05, %v4952_v54 }
 0xb18   : > { %v12177_v53 = vpop.eup %12176  ;;  %v4970_v48 = vmul.f32 %v12175_v37, %v13130_v22  ;;  %v4959_v50 = vadd.f32 1e-05, %v4951_v63 }
 0xb19   : > { %12186 = vrsqrt.f32 %v4960_v42  ;;  %v4969_v55 = vmul.f32 %v12177_v53, %v13133_v12 }
 0xb1a   : > { %12188 = vrsqrt.f32 %v4959_v50  ;;  %v4984_v52 = vmul.f32 %v10513_v46, %v4970_v48 }
 0xb1b   : > { %v12179_v56 = vpop.eup %12178  ;;  %v4983_v57 = vmul.f32 %v10513_v46, %v4969_v55 }
 0xb1c   : > { %v12181_v11 = vpop.eup %12180  ;;  %v4972_v44 = vmul.f32 %v12179_v56, %v13140_v30  ;;  %v4998_v38 = vadd.f32 %v10514_v51, %v4984_v52 }
 0xb1d   : > { %v4997_v0 = vadd.f32 %v10514_v51, %v4983_v57  ;;  %v4971_v10 = vmul.f32 %v12181_v11, %v13144_v33 }
 0xb1e   : > { %v4986_v59 = vmul.f32 %v10513_v46, %v4972_v44 }
 0xb1f   : > { %v12183_v39 = vpop.eup %12182  ;;  %11474 = vmatprep.mubr.msk.f32.mxu0 %vm1164_vm1, %v4997_v0  ;;  %v4985_v22 = vmul.f32 %v10513_v46, %v4971_v10 }
 0xb20   : > { %v12185_v60 = vpop.eup %12184  ;;  %11475 = vmatmul.mubr.msk.f32.vlgmr.msra.gmra.mrb[58].mxu0 %vm1164_vm1, %v4998_v38  ;;  %v4974_v12 = vmul.f32 %v12183_v39, %v13152_v49  ;;  %v5000_v62 = vadd.f32 %v10514_v51, %v4986_v59 }
 0xb21   : > { %v4999_v17 = vadd.f32 %v10514_v51, %v4985_v22  ;;  %v4973_v61 = vmul.f32 %v12185_v60, %v13156_v40 }
 0xb22   : > { %v4988_v1 = vmul.f32 %v10513_v46, %v4974_v12 }
 0xb23   : > { %v12187_v30 = vpop.eup %12186  ;;  %11477 = vmatprep.mubr.msk.f32.mxu0 %vm1164_vm1, %v4999_v17  ;;  %v4987_v33 = vmul.f32 %v10513_v46, %v4973_v61 }
 0xb24   : > { %v12189_v23 = vpop.eup %12188  ;;  %11478 = vmatmul.mubr.msk.f32.gmra.mrb[60].mxu0 %vm1164_vm1, %v5000_v62  ;;  %v4976_v2 = vmul.f32 %v12187_v30, %v13164_v31  ;;  %v5002_v35 = vadd.f32 %v10514_v51, %v4988_v1  ;;  %v5361_v31 = vld [vmem:[%s13221_s0] sm:$0xff] }
 0xb25   : > { %v5001_v24 = vadd.f32 %v10514_v51, %v4987_v33  ;;  %v4975_v45 = vmul.f32 %v12189_v23, %v13168_v34  ;;  %v5362_v34 = vld [vmem:[%s13221_s0 + $0x8] sm:$0xff] }
 0xb26   : > { %v4990_v49 = vmul.f32 %v10513_v46, %v4976_v2  ;;  %v11962_v43 = vpack.c.bf16 %v5362_v34, %v5361_v31 }
 0xb27   : > { %11480 = vmatprep.mubr.msk.f32.mxu0 %vm1164_vm1, %v5001_v24  ;;  %v4989_v40 = vmul.f32 %v10513_v46, %v4975_v45 }
 0xb28   : > { %11481 = vmatmul.mubr.msk.f32.gmra.mrb[62].mxu0 %vm1164_vm1, %v5002_v35  ;;  %v5004_v28 = vadd.f32 %v10514_v51, %v4990_v49  ;;  %11963 = vmatprep.subr.bf16.mxu0 %v11962_v43 }
 0xb29   : > { %v5003_v6 = vadd.f32 %v10514_v51, %v4989_v40  ;;  %11965 = vmatpush3.bf16.msra.mxu0 %v11962_v43 }
 0xb2a   : > { %11967 = vmatprep.subr.bf16.mxu0 %v11966_v32 }
 0xb2b   : > { %11483 = vmatprep.mubr.msk.f32.mxu0 %vm1164_vm1, %v5003_v6 }
 0xb2c   : > { %11484 = vmatmul.mubr.msk.f32.gmra.mrb[64].mxu0 %vm1164_vm1, %v5004_v28 }
 0xb2d   : > { %11969 = vmatpush3.bf16.msra.mxu0 %v11966_v32 }
 0xb2e   : > { %11971 = vmatprep.subr.bf16.mxu0 %v11970_v29 }
 0xb31   : > { %11973 = vmatpush3.bf16.msra.mxu0 %v11970_v29 }
 0xb32   : > { %11975 = vmatprep.subr.bf16.mxu0 %v11974_v8 }
 0xb35   : > { %11977 = vmatpush3.bf16.msra.mxu0 %v11974_v8 }
 0xbf3   : > { %v11476_v26 = vpop.f32.mrb[58].mxu0 }
 0xbf4   : > { %v5112_v27 = vadd.f32 %v11476_v26, %v10515_v20  ;;  %v5106_v18 = vpop.f32.mrb[59].mxu0 }
 0xbf5   : > { %v13238_v54 = vadd.f32 %v10515_v20, %v5106_v18 }
 0xbf6   : > { %v13240_v36 = vmul.f32 0.70710677, %v5112_v27  ;;  %v13275_v31 = vmul.f32 0.5, %v5112_v27 }
 0xbf7   : > { %v13243_v63 = vmul.f32 0.70710677, %v13238_v54  ;;  %v11479_v37 = vpop.f32.mrb[60].mxu0 }
 0xbf8   : > { %v5162_v42 = vand.u32 2147483647, %v13240_v36  ;;  %v13246_v46 = vadd.f32 %v11479_v37, %v10515_v20  ;;  %v5116_v53 = vpop.f32.mrb[61].mxu0  ;;  %vm5322_vm4 = vcmp.ge.f32.partialorder %v13240_v36, 0.0 }
 0xbf9   : > { %v5161_v48 = vand.u32 2147483647, %v13243_v63  ;;  %v13249_v50 = vadd.f32 %v10515_v20, %v5116_v53  ;;  %vm5321_vm5 = vcmp.ge.f32.partialorder %v13243_v63, 0.0 }
 0xbfa   : > { %v5170_v55 = vmul.f32 0.3275911, %v5162_v42  ;;  %v13252_v51 = vmul.f32 0.70710677, %v13246_v46  ;;  %v5274_v39 = vsub.f32 0.0, %v5162_v42 }
 0xbfb   : > { %v5169_v52 = vmul.f32 0.3275911, %v5161_v48  ;;  %v13255_v56 = vmul.f32 0.70710677, %v13249_v50  ;;  %v11482_v44 = vpop.f32.mrb[62].mxu0  ;;  %v5273_v12 = vsub.f32 0.0, %v5161_v48 }
 0xbfc   : > { %v5178_v57 = vadd.f32 1.0, %v5170_v55  ;;  %v5164_v11 = vand.u32 2147483647, %v13252_v51  ;;  %v5126_v38 = vpop.f32.mrb[63].mxu0  ;;  %v13259_v61 = vadd.f32 %v11482_v44, %v10515_v20  ;;  %v5282_v2 = vmul.f32 %v5274_v39, %v5162_v42 }
 0xbfd   : > { %v5177_v0 = vadd.f32 1.0, %v5169_v52  ;;  %v5163_v10 = vand.u32 2147483647, %v13255_v56  ;;  %v13261_v30 = vadd.f32 %v10515_v20, %v5126_v38  ;;  %v5281_v45 = vmul.f32 %v5273_v12, %v5161_v48 }
 0xbfe   : > { %12190 = vrcp.f32 %v5178_v57  ;;  %v5172_v59 = vmul.f32 0.3275911, %v5164_v11  ;;  %v5276_v33 = vsub.f32 0.0, %v5164_v11  ;;  %v13264_v23 = vmul.f32 0.70710677, %v13259_v61 }
 0xbff   : > { %12192 = vrcp.f32 %v5177_v0  ;;  %v5171_v22 = vmul.f32 0.3275911, %v5163_v10  ;;  %v11485_v60 = vpop.f32.mrb[64].mxu0  ;;  %v13267_v24 = vmul.f32 0.70710677, %v13261_v30  ;;  %v5275_v35 = vsub.f32 0.0, %v5163_v10 }
 0xc00   : > { %v5180_v17 = vadd.f32 1.0, %v5172_v59  ;;  %v5136_v62 = vpop.f32.mrb[65].mxu0  ;;  %v5166_v49 = vand.u32 2147483647, %v13264_v23  ;;  %v13270_v40 = vadd.f32 %v11485_v60, %v10515_v20  ;;  %v5284_v34 = vmul.f32 %v5276_v33, %v5164_v11 }
 0xc01   : > { %v5179_v1 = vadd.f32 1.0, %v5171_v22  ;;  %v5165_v6 = vand.u32 2147483647, %v13267_v24  ;;  %v13273_v28 = vadd.f32 %v10515_v20, %v5136_v62  ;;  %v5291_v14 = vmul.f32 1.442695, %v5282_v2 }
 0xc02   : > { %12194 = vrcp.f32 %v5180_v17  ;;  %v5174_v43 = vmul.f32 0.3275911, %v5166_v49  ;;  %v13278_v25 = vmul.f32 0.70710677, %v13270_v40  ;;  %v5289_v29 = vmul.f32 1.442695, %v5281_v45 }
 0xc03   : > { %12196 = vrcp.f32 %v5179_v1  ;;  %v5173_v32 = vmul.f32 0.3275911, %v5165_v6  ;;  %v13281_v4 = vmul.f32 0.70710677, %v13273_v28  ;;  %v5283_v19 = vmul.f32 %v5275_v35, %v5163_v10 }
 0xc04   : > { %v5182_v21 = vadd.f32 1.0, %v5174_v43  ;;  %v5168_v8 = vand.u32 2147483647, %v13278_v25  ;;  %v5278_v27 = vsub.f32 0.0, %v5166_v49  ;;  %v5295_v53 = vmul.f32 1.442695, %v5284_v34 }
 0xc05   : > { %v5181_v18 = vadd.f32 1.0, %v5173_v32  ;;  %v5167_v37 = vand.u32 2147483647, %v13281_v4  ;;  %v5277_v52 = vsub.f32 0.0, %v5165_v6  ;;  %v5293_v22 = vmul.f32 1.442695, %v5283_v19 }
 0xc06   : > { %12198 = vrcp.f32 %v5182_v21  ;;  %v5176_v48 = vmul.f32 0.3275911, %v5168_v8  ;;  %v5280_v57 = vsub.f32 0.0, %v5168_v8  ;;  %v5286_v60 = vmul.f32 %v5278_v27, %v5166_v49 }
 0xc07   : > { %12200 = vrcp.f32 %v5181_v18  ;;  %v5175_v10 = vmul.f32 0.3275911, %v5167_v37  ;;  %v5285_v2 = vmul.f32 %v5277_v52, %v5165_v6  ;;  %v5279_v43 = vsub.f32 0.0, %v5167_v37 }
 0xc08   : > { %v13283_v15 = vpop.eup %12190  ;;  %12202 = vpow2.f32 %v5291_v14  ;;  %v5184_v0 = vadd.f32 1.0, %v5176_v48  ;;  %v5288_v45 = vmul.f32 %v5280_v57, %v5168_v8  ;;  %v5299_v49 = vmul.f32 1.442695, %v5286_v60 }
 0xc09   : > { %v13286_v20 = vpop.eup %12192  ;;  %v5202_v26 = vmul.f32 1.0614054, %v13283_v15  ;;  %v5183_v62 = vadd.f32 1.0, %v5175_v10  ;;  %v13302_v19 = vmul.f32 0.5, %v13238_v54  ;;  %v5287_v27 = vmul.f32 %v5279_v43, %v5167_v37 }
 0xc0a   : > { %v5201_v42 = vmul.f32 1.0614054, %v13286_v20  ;;  %12204 = vrcp.f32 %v5184_v0  ;;  %v5297_v18 = vmul.f32 1.442695, %v5285_v2  ;;  %vm5324_vm6 = vcmp.ge.f32.partialorder %v13252_v51, 0.0 }
 0xc0b   : > { %v5210_v55 = vadd.f32 -1.4531521, %v5202_v26  ;;  %12206 = vrcp.f32 %v5183_v62  ;;  %vm5323_vm8 = vcmp.ge.f32.partialorder %v13255_v56, 0.0  ;;  %v5148_v51 = vmul.f32 0.5, %v13246_v46 }
 0xc0c   : > { %v13291_v11 = vpop.eup %12194  ;;  %v5209_v44 = vadd.f32 -1.4531521, %v5201_v42  ;;  %12208 = vpow2.f32 %v5289_v29  ;;  %v5303_v29 = vmul.f32 1.442695, %v5288_v45  ;;  %vm5326_vm9 = vcmp.ge.f32.partialorder %v13264_v23, 0.0 }
 0xc0d   : > { %v13293_v38 = vpop.eup %12196  ;;  %v5218_v59 = vmul.f32 %v13283_v15, %v5210_v55  ;;  %v5204_v39 = vmul.f32 1.0614054, %v13291_v11  ;;  %12210 = vpow2.f32 %v5295_v53  ;;  %vm5325_vm10 = vcmp.ge.f32.partialorder %v13267_v24, 0.0 }
 0xc0e   : > { %v5217_v12 = vmul.f32 %v13286_v20, %v5209_v44  ;;  %v5203_v17 = vmul.f32 1.0614054, %v13293_v38  ;;  %12212 = vpow2.f32 %v5293_v22  ;;  %vm5328_vm11 = vcmp.ge.f32.partialorder %v13278_v25, 0.0 }
 0xc0f   : > { %v5226_v1 = vadd.f32 1.4214138, %v5218_v59  ;;  %v5212_v33 = vadd.f32 -1.4531521, %v5204_v39  ;;  %12214 = vpow2.f32 %v5299_v49  ;;  %v5301_v59 = vmul.f32 1.442695, %v5287_v27 }
 0xc10   : > { %v5225_v35 = vadd.f32 1.4214138, %v5217_v12  ;;  %v5211_v34 = vadd.f32 -1.4531521, %v5203_v17  ;;  %v13306_v42 = vpop.eup %12198  ;;  %12216 = vpow2.f32 %v5297_v18  ;;  %vm5327_vm12 = vcmp.ge.f32.partialorder %v13281_v4, 0.0 }
 0xc11   : > { %v5234_v14 = vmul.f32 %v13283_v15, %v5226_v1  ;;  %v5220_v32 = vmul.f32 %v13291_v11, %v5212_v33  ;;  %v13308_v52 = vpop.eup %12200  ;;  %v5206_v44 = vmul.f32 1.0614054, %v13306_v42  ;;  %12218 = vpow2.f32 %v5303_v29  ;;  %v10532_v4 = vld [vmem:[%s13380_s7] ss:$0 sm:$0xff] }
 0xc12   : > { %v5233_v21 = vmul.f32 %v13286_v20, %v5225_v35  ;;  %v5219_v26 = vmul.f32 %v13293_v38, %v5211_v34  ;;  %v12203_v37 = vpop.eup %12202  ;;  %v5205_v10 = vmul.f32 1.0614054, %v13308_v52  ;;  %12220 = vpow2.f32 %v5301_v59 }
 0xc13   : > { %v5242_v6 = vadd.f32 -0.28449672, %v5234_v14  ;;  %v5228_v8 = vadd.f32 1.4214138, %v5220_v32  ;;  %v5214_v60 = vadd.f32 -1.4531521, %v5206_v44 }
 0xc14   : > { %v5241_v48 = vadd.f32 -0.28449672, %v5233_v21  ;;  %v5227_v55 = vadd.f32 1.4214138, %v5219_v26  ;;  %v13316_v12 = vpop.eup %12204  ;;  %v5213_v1 = vadd.f32 -1.4531521, %v5205_v10 }
 0xc15   : > { %v5250_v54 = vmul.f32 %v13283_v15, %v5242_v6  ;;  %v5236_v57 = vmul.f32 %v13291_v11, %v5228_v8  ;;  %v5222_v45 = vmul.f32 %v13306_v42, %v5214_v60  ;;  %v5208_v35 = vmul.f32 1.0614054, %v13316_v12  ;;  %v13324_v34 = vpop.eup %12206 }
 0xc16   : > { %v5249_v0 = vmul.f32 %v13286_v20, %v5241_v48  ;;  %v5235_v53 = vmul.f32 %v13293_v38, %v5227_v55  ;;  %v5221_v32 = vmul.f32 %v13308_v52, %v5213_v1  ;;  %v12209_v49 = vpop.eup %12208  ;;  %v5207_v48 = vmul.f32 1.0614054, %v13324_v34 }
 0xc17   : > { %v5258_v39 = vadd.f32 0.2548296, %v5250_v54  ;;  %v5244_v22 = vadd.f32 -0.28449672, %v5236_v57  ;;  %v5230_v26 = vadd.f32 1.4214138, %v5222_v45  ;;  %v12211_v55 = vpop.eup %12210 }
 0xc18   : > { %v5257_v17 = vadd.f32 0.2548296, %v5249_v0  ;;  %v5243_v62 = vadd.f32 -0.28449672, %v5235_v53  ;;  %v5216_v27 = vadd.f32 -1.4531521, %v5208_v35  ;;  %v12213_v44 = vpop.eup %12212 }
 0xc19   : > { %v5266_v33 = vmul.f32 %v13283_v15, %v5258_v39  ;;  %v5252_v2 = vmul.f32 %v13291_v11, %v5244_v22  ;;  %v5229_v18 = vadd.f32 1.4214138, %v5221_v32  ;;  %v5238_v54 = vmul.f32 %v13306_v42, %v5230_v26  ;;  %v12215_v59 = vpop.eup %12214 }
 0xc1a   : > { %v5265_v43 = vmul.f32 %v13286_v20, %v5257_v17  ;;  %v5251_v14 = vmul.f32 %v13293_v38, %v5243_v62  ;;  %v5224_v57 = vmul.f32 %v13316_v12, %v5216_v27  ;;  %v5215_v10 = vadd.f32 -1.4531521, %v5207_v48 }
 0xc1b   : > { %v5306_v21 = vmul.f32 %v12203_v37, %v5266_v33  ;;  %v5260_v15 = vadd.f32 0.2548296, %v5252_v2  ;;  %v5237_v53 = vmul.f32 %v13308_v52, %v5229_v18  ;;  %v5246_v60 = vadd.f32 -0.28449672, %v5238_v54  ;;  %v12217_v2 = vpop.eup %12216 }
 0xc1c   : > { %v5305_v6 = vmul.f32 %v12209_v49, %v5265_v43  ;;  %v5259_v8 = vadd.f32 0.2548296, %v5251_v14  ;;  %v5232_v17 = vadd.f32 1.4214138, %v5224_v57  ;;  %v5223_v33 = vmul.f32 %v13324_v34, %v5215_v10  ;;  %v12219_v14 = vpop.eup %12218 }
 0xc1d   : > { %v5314_v20 = vsub.f32 1.0, %v5306_v21  ;;  %v5268_v29 = vmul.f32 %v13291_v11, %v5260_v15  ;;  %v5245_v1 = vadd.f32 -0.28449672, %v5237_v53  ;;  %v12221_v18 = vpop.eup %12220  ;;  %v5147_v53 = vmul.f32 0.5, %v13249_v50 }
 0xc1e   : > { %v5313_v37 = vsub.f32 1.0, %v5305_v6  ;;  %v5267_v0 = vmul.f32 %v13293_v38, %v5259_v8  ;;  %v5254_v38 = vmul.f32 %v13306_v42, %v5246_v60  ;;  %v5240_v43 = vmul.f32 %v13316_v12, %v5232_v17 }
 0xc1f   : > { %v5330_v39 = vsub.f32 0.0, %v5314_v20  ;;  %v5308_v22 = vmul.f32 %v12211_v55, %v5268_v29  ;;  %v5253_v15 = vmul.f32 %v13308_v52, %v5245_v1 }
 0xc20   : > { %v5329_v62 = vsub.f32 0.0, %v5313_v37  ;;  %v5307_v11 = vmul.f32 %v12213_v44, %v5267_v0  ;;  %v5262_v6 = vadd.f32 0.2548296, %v5254_v38  ;;  %v5248_v8 = vadd.f32 -0.28449672, %v5240_v43 }
 0xc21   : > { %v5338_v45 = vsel %vm5322_vm4, %v5314_v20, %v5330_v39  ;;  %v5316_v35 = vsub.f32 1.0, %v5308_v22  ;;  %v5261_v55 = vadd.f32 0.2548296, %v5253_v15  ;;  %v5231_v20 = vadd.f32 1.4214138, %v5223_v33 }
 0xc22   : > { %v5346_v32 = vadd.f32 1.0, %v5338_v45  ;;  %v5337_v49 = vsel %vm5321_vm5, %v5313_v37, %v5329_v62  ;;  %v5315_v21 = vsub.f32 1.0, %v5307_v11  ;;  %v5270_v63 = vmul.f32 %v13306_v42, %v5262_v6 }
 0xc23   : > { %v5345_v26 = vadd.f32 1.0, %v5337_v49  ;;  %v5332_v27 = vsub.f32 0.0, %v5316_v35  ;;  %v5256_v57 = vmul.f32 %v13316_v12, %v5248_v8  ;;  %v5269_v0 = vmul.f32 %v13308_v52, %v5261_v55 }
 0xc24   : > { %v5354_v36 = vmul.f32 %v5346_v32, %v13275_v31  ;;  %v5331_v48 = vsub.f32 0.0, %v5315_v21  ;;  %v5239_v31 = vmul.f32 %v13324_v34, %v5231_v20  ;;  %v5310_v39 = vmul.f32 %v12215_v59, %v5270_v63 }
 0xc25   : > { %v5353_v29 = vmul.f32 %v5345_v26, %v13302_v19  ;;  %v5340_v54 = vsel %vm5324_vm6, %v5316_v35, %v5332_v27  ;;  %v5264_v19 = vadd.f32 0.2548296, %v5256_v57  ;;  %v5309_v42 = vmul.f32 %v12217_v2, %v5269_v0 }
 0xc26   : > { %v5348_v44 = vadd.f32 1.0, %v5340_v54  ;;  %v5339_v37 = vsel %vm5323_vm8, %v5315_v21, %v5331_v48  ;;  %v5247_v22 = vadd.f32 -0.28449672, %v5239_v31  ;;  %v5318_v56 = vsub.f32 1.0, %v5310_v39 }
 0xc27   : > { %v5347_v10 = vadd.f32 1.0, %v5339_v37  ;;  %11502 = vmatprep.mubr.msk.f32.mxu0 %vm5369_vm7, %v5353_v29  ;;  %v5272_v17 = vmul.f32 %v13316_v12, %v5264_v19  ;;  %v5317_v62 = vsub.f32 1.0, %v5309_v42  ;;  %v5149_v38 = vmul.f32 0.5, %v13261_v30 }
 0xc28   : > { %11503 = vmatmul.mubr.msk.f32.vlgmr.msra.gmra.mrb[66].mxu0 %vm5369_vm7, %v5354_v36  ;;  %v5356_v52 = vmul.f32 %v5348_v44, %v5148_v51  ;;  %v5255_v11 = vmul.f32 %v13324_v34, %v5247_v22  ;;  %v5334_v50 = vsub.f32 0.0, %v5318_v56  ;;  %v5150_v32 = vmul.f32 0.5, %v13259_v61 }
 0xc29   : > { %v5355_v60 = vmul.f32 %v5347_v10, %v5147_v53  ;;  %v5312_v1 = vmul.f32 %v12219_v14, %v5272_v17  ;;  %v5333_v59 = vsub.f32 0.0, %v5317_v62  ;;  %v5151_v27 = vmul.f32 0.5, %v13273_v28 }
 0xc2a   : > { %v5263_v46 = vadd.f32 0.2548296, %v5255_v11  ;;  %v5342_v33 = vsel %vm5326_vm9, %v5318_v56, %v5334_v50  ;;  %v5152_v6 = vmul.f32 0.5, %v13270_v40 }
 0xc2b   : > { %11505 = vmatprep.mubr.msk.f32.mxu0 %vm5369_vm7, %v5355_v60  ;;  %v5320_v2 = vsub.f32 1.0, %v5312_v1  ;;  %v5350_v45 = vadd.f32 1.0, %v5342_v33  ;;  %v5341_v12 = vsel %vm5325_vm10, %v5317_v62, %v5333_v59 }
 0xc2c   : > { %11506 = vmatmul.mubr.msk.f32.gmra.mrb[68].mxu0 %vm5369_vm7, %v5356_v52  ;;  %v5271_v35 = vmul.f32 %v13324_v34, %v5263_v46  ;;  %v5349_v43 = vadd.f32 1.0, %v5341_v12 }
 0xc2d   : > { %v5336_v14 = vsub.f32 0.0, %v5320_v2  ;;  %v5358_v21 = vmul.f32 %v5350_v45, %v5150_v32 }
 0xc2e   : > { %v5311_v49 = vmul.f32 %v12221_v18, %v5271_v35  ;;  %v5357_v23 = vmul.f32 %v5349_v43, %v5149_v38 }
 0xc2f   : > { %v5344_v26 = vsel %vm5328_vm11, %v5320_v2, %v5336_v14 }
 0xc30   : > { %v5319_v15 = vsub.f32 1.0, %v5311_v49  ;;  %11508 = vmatprep.mubr.msk.f32.mxu0 %vm5369_vm7, %v5357_v23  ;;  %v5352_v30 = vadd.f32 1.0, %v5344_v26 }
 0xc31   : > { %11509 = vmatmul.mubr.msk.f32.gmra.mrb[70].mxu0 %vm5369_vm7, %v5358_v21 }
 0xc32   : > { %v5335_v24 = vsub.f32 0.0, %v5319_v15  ;;  %v5360_v18 = vmul.f32 %v5352_v30, %v5152_v6 }
 0xc34   : > { %v5343_v34 = vsel %vm5327_vm12, %v5319_v15, %v5335_v24 }
 0xc35   : > { %v5351_v61 = vadd.f32 1.0, %v5343_v34 }
 0xc37   : > { %v5359_v8 = vmul.f32 %v5351_v61, %v5151_v27 }
 0xc39   : > { %11511 = vmatprep.mubr.msk.f32.mxu0 %vm5369_vm7, %v5359_v8 }
 0xc3a   : > { %11512 = vmatmul.mubr.msk.f32.gmra.mrb[72].mxu0 %vm5369_vm7, %v5360_v18 }
 0xcfb   : > { %v11504_v25 = vpop.f32.mrb[66].mxu0 }
 0xcfc   : > { %v5500_v36 = vadd.f32 %v11504_v25, %v13091_v9  ;;  %v5460_v28 = vpop.f32.mrb[67].mxu0 }
 0xcfd   : > { %v5499_v48 = vadd.f32 %v5460_v28, %v13093_v58 }
 0xcfe   : > { %v13385_v40 = vadd.f32 %v10532_v4, %v5500_v36 }
 0xcff   : > { %v13387_v55 = vadd.f32 %v10532_v4, %v5499_v48  ;;  %v11507_v20 = vpop.f32.mrb[68].mxu0 }
 0xd00   : > { %v5502_v29 = vadd.f32 %v11507_v20, %v13101_v47  ;;  %v5470_v54 = vpop.f32.mrb[69].mxu0  ;;  %v5529_v63 = vsel %vm1164_vm1, %v13385_v40, 0.0 }
 0xd01   : > { %v5501_v57 = vadd.f32 %v5470_v54, %v13103_v16  ;;  %5530 = vadd.xlane.f32.xlu1 %v5529_v63  ;;  %v5526_v9 = vsel %vm1164_vm1, %v13387_v55, 0.0 }
 0xd02   : > { %v13395_v44 = vadd.f32 %v10532_v4, %v5502_v29  ;;  %5527 = vadd.xlane.f32.xlu0 %v5526_v9  ;;  %v10537_v9 = vld [vmem:[%s12590_s4 + $0x40] sm:$0xff] }
 0xd03   : > { %v13397_v58 = vadd.f32 %v10532_v4, %v5501_v57 }
 0xd04   : > { %v5535_v37 = vsel %vm1164_vm1, %v13395_v44, 0.0  ;;  %v11510_v0 = vpop.f32.mrb[70].mxu0 }
 0xd05   : > { %5536 = vadd.xlane.f32.xlu1 %v5535_v37  ;;  %v5532_v47 = vsel %vm1164_vm1, %v13397_v58, 0.0  ;;  %v5504_v16 = vadd.f32 %v11510_v0, %v13111_v3  ;;  %v5480_v31 = vpop.f32.mrb[71].mxu0  ;;  %v10538_v37 = vld [vmem:[%s12590_s4 + $0x48] sm:$0xff] }
 0xd06   : > { %5533 = vadd.xlane.f32.xlu0 %v5532_v47  ;;  %v5503_v53 = vadd.f32 %v5480_v31, %v13113_v5  ;;  %v10551_v47 = vld [vmem:[%s12596_s23 + $0x40] sm:$0xff]  ;;  %v11978_v0 = vpack.c.bf16 %v10538_v37, %v10537_v9 }
 0xd07   : > { %v13405_v10 = vadd.f32 %v10532_v4, %v5504_v16  ;;  %v10552_v16 = vld [vmem:[%s12596_s23 + $0x48] sm:$0xff] }
 0xd08   : > { %v13407_v39 = vadd.f32 %v10532_v4, %v5503_v53  ;;  %v11986_v31 = vpack.c.bf16 %v10552_v16, %v10551_v47  ;;  %11979 = vmatprep.subr.bf16.mxu1 %v11978_v0  ;;  %v10539_v53 = vld [vmem:[%s12590_s4 + $0x50] sm:$0xff] }
 0xd09   : > { %v5541_v19 = vsel %vm1164_vm1, %v13405_v10, 0.0  ;;  %11981 = vmatpush3.bf16.msra.mxu1 %v11978_v0 }
 0xd0a   : > { %5542 = vadd.xlane.f32.xlu1 %v5541_v19  ;;  %v5538_v51 = vsel %vm1164_vm1, %v13407_v39, 0.0  ;;  %11987 = vmatprep.subr.bf16.mxu0 %v11986_v31  ;;  %v10540_v19 = vld [vmem:[%s12590_s4 + $0x58] sm:$0xff] }
 0xd0b   : > { %5539 = vadd.xlane.f32.xlu0 %v5538_v51  ;;  %v10553_v51 = vld [vmem:[%s12596_s23 + $0x50] sm:$0xff]  ;;  %11989 = vmatpush3.bf16.msra.mxu0 %v11986_v31 }
 0xd0d   : > { %v11513_v42 = vpop.f32.mrb[72].mxu0 }
 0xd0e   : > { %v5506_v22 = vadd.f32 %v11513_v42, %v13121_v41  ;;  %v5490_v60 = vpop.f32.mrb[73].mxu0  ;;  %v11982_v42 = vpack.c.bf16 %v10540_v19, %v10539_v53 }
 0xd0f   : > { %v5505_v3 = vadd.f32 %v5490_v60, %v13123_v13 }
 0xd10   : > { %v13415_v56 = vadd.f32 %v10532_v4, %v5506_v22  ;;  %v10554_v22 = vld [vmem:[%s12596_s23 + $0x58] sm:$0xff]  ;;  %11983 = vmatprep.subr.bf16.mxu1 %v11982_v42 }
 0xd11   : > { %v13417_v5 = vadd.f32 %v10532_v4, %v5505_v3  ;;  %v11990_v60 = vpack.c.bf16 %v10554_v22, %v10553_v51  ;;  %11985 = vmatpush3.bf16.msra.mxu1 %v11982_v42  ;;  %v10565_v3 = vld [vmem:[%s12610_s26 + $0x40] sm:$0xff] }
 0xd12   : > { %v5547_v17 = vsel %vm1164_vm1, %v13415_v56, 0.0 }
 0xd13   : > { %5548 = vadd.xlane.f32.xlu1 %v5547_v17  ;;  %v5544_v52 = vsel %vm1164_vm1, %v13417_v5, 0.0  ;;  %11991 = vmatprep.subr.bf16.mxu0 %v11990_v60  ;;  %v10566_v17 = vld [vmem:[%s12610_s26 + $0x48] sm:$0xff] }
 0xd14   : > { %5545 = vadd.xlane.f32.xlu0 %v5544_v52  ;;  %11993 = vmatpush3.bf16.msra.mxu0 %v11990_v60  ;;  %v11994_v52 = vpack.c.bf16 %v10566_v17, %v10565_v3 }
 0xd15   : > { %11574 = vmatprep.subr.mxu0 %v12358_v7 }
 0xd16   : > { %11995 = vmatprep.subr.bf16.mxu1 %v11994_v52 }
 0xd8e   : > { %v5531_v62 = vpop.xlane.xlu1 %5530 }
 0xd8f   : > { %v5551_v11 = vmul.f32 0.03125, %v5531_v62  ;;  %v5528_v50 = vpop.xlane.xlu0 %5527 }
 0xd90   : > { %v5550_v1 = vmul.f32 0.03125, %v5528_v50 }
 0xd91   : > { %v13424_v41 = vsub.f32 %v13385_v40, %v5551_v11 }
 0xd92   : > { %v13427_v13 = vsub.f32 %v13387_v55, %v5550_v1  ;;  %v5537_v59 = vpop.xlane.xlu1 %5536 }
 0xd93   : > { %v5553_v46 = vmul.f32 0.03125, %v5537_v59  ;;  %v5534_v33 = vpop.xlane.xlu0 %5533  ;;  %v5567_v2 = vmul.f32 %v13424_v41, %v13424_v41 }
 0xd94   : > { %v5552_v45 = vmul.f32 0.03125, %v5534_v33  ;;  %v5566_v12 = vmul.f32 %v13427_v13, %v13427_v13 }
 0xd95   : > { %v13434_v35 = vsub.f32 %v13395_v44, %v5553_v46  ;;  %v5577_v38 = vsel %vm1164_vm1, %v5567_v2, 0.0 }
 0xd96   : > { %v13438_v43 = vsub.f32 %v13397_v58, %v5552_v45  ;;  %5578 = vadd.xlane.f32.xlu1 %v5577_v38  ;;  %v5574_v14 = vsel %vm1164_vm1, %v5566_v12, 0.0 }
 0xd97   : > { %5575 = vadd.xlane.f32.xlu0 %v5574_v14  ;;  %v5569_v32 = vmul.f32 %v13434_v35, %v13434_v35  ;;  %v5543_v21 = vpop.xlane.xlu1 %5542 }
 0xd98   : > { %v5568_v49 = vmul.f32 %v13438_v43, %v13438_v43  ;;  %v5555_v26 = vmul.f32 0.03125, %v5543_v21  ;;  %v5540_v24 = vpop.xlane.xlu0 %5539 }
 0xd99   : > { %v5583_v23 = vsel %vm1164_vm1, %v5569_v32, 0.0  ;;  %v5554_v30 = vmul.f32 0.03125, %v5540_v24 }
 0xd9a   : > { %5584 = vadd.xlane.f32.xlu1 %v5583_v23  ;;  %v5580_v15 = vsel %vm1164_vm1, %v5568_v49, 0.0  ;;  %v13448_v34 = vsub.f32 %v13405_v10, %v5555_v26  ;;  %v10535_v26 = vld [vmem:[%s12624_s30 + $0x1] ss:$0 sm:$0xff] }
 0xd9b   : > { %5581 = vadd.xlane.f32.xlu0 %v5580_v15  ;;  %v13451_v27 = vsub.f32 %v13407_v39, %v5554_v30 }
 0xd9c   : > { %v5571_v61 = vmul.f32 %v13448_v34, %v13448_v34 }
 0xd9d   : > { %v5570_v6 = vmul.f32 %v13451_v27, %v13451_v27 }
 0xd9e   : > { %v5589_v8 = vsel %vm1164_vm1, %v5571_v61, 0.0 }
 0xd9f   : > { %5590 = vadd.xlane.f32.xlu1 %v5589_v8  ;;  %v5586_v25 = vsel %vm1164_vm1, %v5570_v6, 0.0 }
 0xda0   : > { %v5549_v18 = vpop.xlane.xlu1 %5548  ;;  %5587 = vadd.xlane.f32.xlu0 %v5586_v25 }
 0xda1   : > { %v5557_v4 = vmul.f32 0.03125, %v5549_v18  ;;  %v5546_v36 = vpop.xlane.xlu0 %5545  ;;  %v10536_v18 = vld [vmem:[%s12630_s1 + $0x1] ss:$0 sm:$0xff] }
 0xda2   : > { %v5556_v28 = vmul.f32 0.03125, %v5546_v36 }
 0xda3   : > { %v13460_v48 = vsub.f32 %v13415_v56, %v5557_v4 }
 0xda4   : > { %v13463_v20 = vsub.f32 %v13417_v5, %v5556_v28  ;;  %v10567_v28 = vld [vmem:[%s12610_s26 + $0x50] sm:$0xff] }
 0xda5   : > { %v5573_v29 = vmul.f32 %v13460_v48, %v13460_v48 }
 0xda6   : > { %v5572_v54 = vmul.f32 %v13463_v20, %v13463_v20 }
 0xda7   : > { %v5595_v63 = vsel %vm1164_vm1, %v5573_v29, 0.0  ;;  %v10568_v29 = vld [vmem:[%s12610_s26 + $0x58] sm:$0xff] }
 0xda8   : > { %5596 = vadd.xlane.f32.xlu1 %v5595_v63  ;;  %v5592_v57 = vsel %vm1164_vm1, %v5572_v54, 0.0  ;;  %v11998_v31 = vpack.c.bf16 %v10568_v29, %v10567_v28 }
 0xda9   : > { %5593 = vadd.xlane.f32.xlu0 %v5592_v57 }
 0xe23   : > { %v5579_v62 = vpop.xlane.xlu1 %5578 }
 0xe24   : > { %v5599_v11 = vmul.f32 0.03125, %v5579_v62  ;;  %v5576_v50 = vpop.xlane.xlu0 %5575 }
 0xe25   : > { %v5598_v1 = vmul.f32 0.03125, %v5576_v50 }
 0xe26   : > { %v5607_v59 = vadd.f32 1e-05, %v5599_v11 }
 0xe27   : > { %v5606_v46 = vadd.f32 1e-05, %v5598_v1  ;;  %v5585_v33 = vpop.xlane.xlu1 %5584 }
 0xe28   : > { %12222 = vrsqrt.f32 %v5607_v59  ;;  %v5601_v2 = vmul.f32 0.03125, %v5585_v33  ;;  %v5582_v45 = vpop.xlane.xlu0 %5581 }
 0xe29   : > { %12224 = vrsqrt.f32 %v5606_v46  ;;  %v5600_v12 = vmul.f32 0.03125, %v5582_v45 }
 0xe2a   : > { %v5609_v38 = vadd.f32 1e-05, %v5601_v2 }
 0xe2b   : > { %v5608_v14 = vadd.f32 1e-05, %v5600_v12 }
 0xe2c   : > { %12226 = vrsqrt.f32 %v5609_v38  ;;  %v5591_v32 = vpop.xlane.xlu1 %5590 }
 0xe2d   : > { %12228 = vrsqrt.f32 %v5608_v14  ;;  %v5603_v49 = vmul.f32 0.03125, %v5591_v32  ;;  %v5588_v23 = vpop.xlane.xlu0 %5587  ;;  %v10542_v14 = vld [vmem:[%s12728_s16 + $0x2] ss:$0 sm:$0xff] }
 0xe2e   : > { %v5602_v21 = vmul.f32 0.03125, %v5588_v23 }
 0xe2f   : > { %v5611_v24 = vadd.f32 1e-05, %v5603_v49 }
 0xe30   : > { %v5610_v6 = vadd.f32 1e-05, %v5602_v21 }
 0xe31   : > { %12230 = vrsqrt.f32 %v5611_v24 }
 0xe32   : > { %v12223_v15 = vpop.eup %12222  ;;  %12232 = vrsqrt.f32 %v5610_v6 }
 0xe33   : > { %v12225_v30 = vpop.eup %12224  ;;  %v5623_v61 = vmul.f32 %v12223_v15, %v13424_v41 }
 0xe34   : > { %v5622_v8 = vmul.f32 %v12225_v30, %v13427_v13 }
 0xe35   : > { %v5637_v25 = vmul.f32 %v10535_v26, %v5623_v61  ;;  %v5597_v57 = vpop.xlane.xlu1 %5596 }
 0xe36   : > { %v12227_v4 = vpop.eup %12226  ;;  %v5636_v36 = vmul.f32 %v10535_v26, %v5622_v8  ;;  %v5605_v41 = vmul.f32 0.03125, %v5597_v57  ;;  %v5594_v47 = vpop.xlane.xlu0 %5593 }
 0xe37   : > { %v12229_v54 = vpop.eup %12228  ;;  %v5625_v63 = vmul.f32 %v12227_v4, %v13434_v35  ;;  %v13492_v0 = vadd.f32 %v10536_v18, %v5637_v25  ;;  %v5604_v16 = vmul.f32 0.03125, %v5594_v47 }
 0xe38   : > { %v13489_v9 = vadd.f32 %v10536_v18, %v5636_v36  ;;  %v5624_v37 = vmul.f32 %v12229_v54, %v13438_v43  ;;  %v5613_v19 = vadd.f32 1e-05, %v5605_v41 }
 0xe39   : > { %v5639_v13 = vmul.f32 %v10535_v26, %v5625_v63  ;;  %v5612_v35 = vadd.f32 1e-05, %v5604_v16 }
 0xe3a   : > { %v5638_v53 = vmul.f32 %v10535_v26, %v5624_v37  ;;  %11522 = vmatprep.mubr.msk.f32.mxu1 %vm1164_vm1, %v13489_v9  ;;  %11542 = vmatprep.mubr.msk.f32.mxu0 %vm1164_vm1, %v13489_v9  ;;  %12234 = vrsqrt.f32 %v5613_v19 }
 0xe3b   : > { %11523 = vmatmul.mubr.msk.f32.vlgmr.msra.gmra.mrb[70].mxu1 %vm1164_vm1, %v13492_v0  ;;  %11543 = vmatmul.mubr.msk.f32.vlgmr.msra.gmra.mrb[74].mxu0 %vm1164_vm1, %v13492_v0  ;;  %v13504_v51 = vadd.f32 %v10536_v18, %v5639_v13  ;;  %12236 = vrsqrt.f32 %v5612_v35  ;;  %v12231_v42 = vpop.eup %12230 }
 0xe3c   : > { %v13502_v43 = vadd.f32 %v10536_v18, %v5638_v53  ;;  %11997 = vmatpush3.bf16.msra.mxu1 %v11994_v52  ;;  %v12233_v22 = vpop.eup %12232  ;;  %v5627_v60 = vmul.f32 %v12231_v42, %v13448_v34  ;;  %v10570_v53 = vld [vmem:[%s12749_s29 + $0x2] ss:$0 sm:$0xff] }
 0xe3d   : > { %11999 = vmatprep.subr.bf16.mxu1 %v11998_v31  ;;  %v5626_v3 = vmul.f32 %v12233_v22, %v13451_v27 }
 0xe3e   : > { %11525 = vmatprep.mubr.msk.f32.mxu1 %vm1164_vm1, %v13502_v43  ;;  %11545 = vmatprep.mubr.msk.f32.mxu0 %vm1164_vm1, %v13502_v43  ;;  %v5641_v17 = vmul.f32 %v10535_v26, %v5627_v60 }
 0xe3f   : > { %11526 = vmatmul.mubr.msk.f32.gmra.mrb[72].mxu1 %vm1164_vm1, %v13504_v51  ;;  %11546 = vmatmul.mubr.msk.f32.gmra.mrb[76].mxu0 %vm1164_vm1, %v13504_v51  ;;  %v5640_v52 = vmul.f32 %v10535_v26, %v5626_v3 }
 0xe40   : > { %12001 = vmatpush3.bf16.msra.mxu1 %v11998_v31  ;;  %v13519_v11 = vadd.f32 %v10536_v18, %v5641_v17 }
 0xe41   : > { %11589 = vmatprep.subr.mxu1 %v12358_v7  ;;  %v13517_v62 = vadd.f32 %v10536_v18, %v5640_v52 }
 0xe43   : > { %11528 = vmatprep.mubr.msk.f32.mxu1 %vm1164_vm1, %v13517_v62  ;;  %11548 = vmatprep.mubr.msk.f32.mxu0 %vm1164_vm1, %v13517_v62 }
 0xe44   : > { %v12235_v50 = vpop.eup %12234  ;;  %11529 = vmatmul.mubr.msk.f32.gmra.mrb[74].mxu1 %vm1164_vm1, %v13519_v11  ;;  %11549 = vmatmul.mubr.msk.f32.gmra.mrb[78].mxu0 %vm1164_vm1, %v13519_v11 }
 0xe45   : > { %v12237_v34 = vpop.eup %12236  ;;  %v5629_v1 = vmul.f32 %v12235_v50, %v13460_v48  ;;  %v10556_v48 = vld [vmem:[%s12722_s5 + $0x2] ss:$0 sm:$0xff] }
 0xe46   : > { %v5628_v27 = vmul.f32 %v12237_v34, %v13463_v20 }
 0xe47   : > { %v5643_v59 = vmul.f32 %v10535_v26, %v5629_v1 }
 0xe48   : > { %v5642_v46 = vmul.f32 %v10535_v26, %v5628_v27 }
 0xe49   : > { %v13533_v2 = vadd.f32 %v10536_v18, %v5643_v59 }
 0xe4a   : > { %v13531_v33 = vadd.f32 %v10536_v18, %v5642_v46 }
 0xe4c   : > { %11531 = vmatprep.mubr.msk.f32.mxu1 %vm1164_vm1, %v13531_v33  ;;  %11551 = vmatprep.mubr.msk.f32.mxu0 %vm1164_vm1, %v13531_v33 }
 0xe4d   : > { %11532 = vmatmul.mubr.msk.f32.gmra.mrb[76].mxu1 %vm1164_vm1, %v13533_v2  ;;  %11552 = vmatmul.mubr.msk.f32.gmra.mrb[80].mxu0 %vm1164_vm1, %v13533_v2 }
 0xe4e   : > { %11562 = vmatprep.mubr.msk.f32.mxu1 %vm1164_vm1, %v13489_v9  ;;  %11576 = vmatprep.mubr.msk.f32.mxu0 %vm12359_vm2, %v12358_v7 }
 0xe51   : > { %11563 = vmatmul.mubr.msk.f32.vlgmr.msra.gmra.mrb[78].mxu1 %vm1164_vm1, %v13492_v0 }
 0xe52   : > { %11565 = vmatprep.mubr.msk.f32.mxu1 %vm1164_vm1, %v13502_v43 }
 0xe55   : > { %11566 = vmatmul.mubr.msk.f32.gmra.mrb[80].mxu1 %vm1164_vm1, %v13504_v51 }
 0xe56   : > { %11568 = vmatprep.mubr.msk.f32.mxu1 %vm1164_vm1, %v13517_v62 }
 0xe59   : > { %11569 = vmatmul.mubr.msk.f32.gmra.mrb[82].mxu1 %vm1164_vm1, %v13519_v11 }
 0xe5a   : > { %11571 = vmatprep.mubr.msk.f32.mxu1 %vm1164_vm1, %v13531_v33 }
 0xe5d   : > { %11572 = vmatmul.mubr.msk.f32.gmra.mrb[84].mxu1 %vm1164_vm1, %v13533_v2 }
 0xe5e   : > { %11591 = vmatprep.mubr.msk.f32.mxu1 %vm12359_vm2, %v12358_v7 }
 0xf0e   : > { %v11524_v20 = vpop.f32.mrb[70].mxu1  ;;  %v11544_v45 = vpop.f32.mrb[74].mxu0 }
 0xf0f   : > { %v5761_v12 = vpop.f32.mrb[71].mxu1  ;;  %v5879_v38 = vpop.f32.mrb[75].mxu0  ;;  %v5885_v30 = vadd.f32 %v11544_v45, %v10556_v48  ;;  %v5767_v6 = vadd.f32 %v11524_v20, %v10542_v14 }
 0xf10   : > { %v5880_v32 = vadd.f32 %v10556_v48, %v5879_v38  ;;  %v5762_v21 = vadd.f32 %v10542_v14, %v5761_v12 }
 0xf12   : > { %v11527_v49 = vpop.f32.mrb[72].mxu1  ;;  %v11547_v23 = vpop.f32.mrb[76].mxu0  ;;  %11575 = vmatpush3.xpose.msk.msra.mxu0 %vm1032_vm0, %v5880_v32 }
 0xf13   : > { %v5895_v15 = vadd.f32 %v11547_v23, %v10556_v48  ;;  %v5771_v26 = vpop.f32.mrb[73].mxu1  ;;  %v5889_v24 = vpop.f32.mrb[77].mxu0  ;;  %11579 = vmatprep.subr.mxu0 %v12358_v7  ;;  %v5777_v61 = vadd.f32 %v11527_v49, %v10542_v14 }
 0xf14   : > { %v5890_v8 = vadd.f32 %v10556_v48, %v5889_v24  ;;  %v5772_v4 = vadd.f32 %v10542_v14, %v5771_v26 }
 0xf15   : > { %11577 = vmatmul.mubr.msk.f32.vlgmr.msra.gmra.mrb[82].mxu0 %vm1032_vm0, %v5762_v21  ;;  %11590 = vmatpush3.xpose.msk.msra.mxu1 %vm1032_vm0, %v5895_v15 }
 0xf16   : > { %11580 = vmatpush3.xpose.msk.msra.mxu0 %vm1032_vm0, %v5885_v30  ;;  %11581 = vmatprep.mubr.msk.f32.mxu0 %vm12359_vm2, %v12358_v7 }
 0xf17   : > { %11599 = vmatprep.subr.mxu1 %v12358_v7  ;;  %11584 = vmatprep.subr.mxu0 %v12358_v7  ;;  %v11530_v18 = vpop.f32.mrb[74].mxu1  ;;  %v11550_v25 = vpop.f32.mrb[78].mxu0 }
 0xf18   : > { %11592 = vmatmul.mubr.msk.f32.vlgmr.msra.gmra.mrb[86].mxu1 %vm1032_vm0, %v5777_v61  ;;  %v5905_v36 = vadd.f32 %v11550_v25, %v10556_v48  ;;  %v5781_v28 = vpop.f32.mrb[75].mxu1  ;;  %v5899_v29 = vpop.f32.mrb[79].mxu0  ;;  %v5787_v63 = vadd.f32 %v11530_v18, %v10542_v14 }
 0xf19   : > { %11582 = vmatmul.mubr.msk.f32.vlgmr.msra.gmra.mrb[84].mxu0 %vm1032_vm0, %v5767_v6  ;;  %11601 = vmatprep.mubr.msk.f32.mxu1 %vm12359_vm2, %v12358_v7  ;;  %v5900_v54 = vadd.f32 %v10556_v48, %v5899_v29  ;;  %v5782_v57 = vadd.f32 %v10542_v14, %v5781_v28 }
 0xf1a   : > { %11585 = vmatpush3.xpose.msk.msra.mxu0 %vm1032_vm0, %v5890_v8  ;;  %11586 = vmatprep.mubr.msk.f32.mxu0 %vm12359_vm2, %v12358_v7 }
 0xf1b   : > { %11594 = vmatprep.subr.mxu0 %v12358_v7  ;;  %11600 = vmatpush3.xpose.msk.msra.mxu1 %vm1032_vm0, %v5905_v36 }
 0xf1c   : > { %11609 = vmatprep.subr.mxu1 %v12358_v7 }
 0xf1d   : > { %11587 = vmatmul.mubr.msk.f32.vlgmr.msra.gmra.mrb[86].mxu0 %vm1032_vm0, %v5772_v4 }
 0xf1e   : > { %11595 = vmatpush3.xpose.msk.msra.mxu0 %vm1032_vm0, %v5900_v54  ;;  %11596 = vmatprep.mubr.msk.f32.mxu0 %vm12359_vm2, %v12358_v7 }
 0xf1f   : > { %11604 = vmatprep.subr.mxu0 %v12358_v7  ;;  %11602 = vmatmul.mubr.msk.f32.vlgmr.msra.gmra.mrb[88].mxu1 %vm1032_vm0, %v5787_v63 }
 0xf20   : > { %11611 = vmatprep.mubr.msk.f32.mxu1 %vm12359_vm2, %v12358_v7  ;;  %v11533_v37 = vpop.f32.mrb[76].mxu1  ;;  %v11553_v41 = vpop.f32.mrb[80].mxu0 }
 0xf21   : > { %11597 = vmatmul.mubr.msk.f32.vlgmr.msra.gmra.mrb[88].mxu0 %vm1032_vm0, %v5782_v57  ;;  %v5915_v47 = vadd.f32 %v11553_v41, %v10556_v48  ;;  %v5791_v13 = vpop.f32.mrb[77].mxu1  ;;  %v5909_v16 = vpop.f32.mrb[81].mxu0  ;;  %v5797_v19 = vadd.f32 %v11533_v37, %v10542_v14 }
 0xf22   : > { %11606 = vmatprep.mubr.msk.f32.mxu0 %vm12359_vm2, %v12358_v7  ;;  %v5910_v31 = vadd.f32 %v10556_v48, %v5909_v16  ;;  %v5792_v42 = vadd.f32 %v10542_v14, %v5791_v13 }
 0xf23   : > { %11610 = vmatpush3.xpose.msk.msra.mxu1 %vm1032_vm0, %v5915_v47 }
 0xf24   : > { %v11564_v35 = vpop.f32.mrb[78].mxu1  ;;  %11619 = vmatprep.subr.mxu1 %v12358_v7  ;;  %11605 = vmatpush3.xpose.msk.msra.mxu0 %vm1032_vm0, %v5910_v31 }
 0xf25   : > { %v6003_v22 = vadd.f32 %v11564_v35, %v10570_v53  ;;  %v5997_v60 = vpop.f32.mrb[79].mxu1  ;;  %11614 = vmatprep.subr.mxu0 %v12358_v7 }
 0xf26   : > { %v5998_v3 = vadd.f32 %v10570_v53, %v5997_v60  ;;  %11612 = vmatmul.mubr.msk.f32.vlgmr.msra.gmra.mrb[90].mxu1 %vm1032_vm0, %v5797_v19 }
 0xf27   : > { %11620 = vmatpush3.msra.mxu1 %v6003_v22  ;;  %11607 = vmatmul.mubr.msk.f32.vlgmr.msra.gmra.mrb[90].mxu0 %vm1032_vm0, %v5792_v42 }
 0xf28   : > { %v11567_v17 = vpop.f32.mrb[80].mxu1  ;;  %11615 = vmatpush3.msra.mxu0 %v5998_v3  ;;  %11616 = vmatprep.mubr.msk.f32.mxu0 %vm12359_vm2, %v12358_v7 }
 0xf29   : > { %v13604_v52 = vadd.f32 %v11567_v17, %v10570_v53  ;;  %v6007_v50 = vpop.f32.mrb[81].mxu1  ;;  %11624 = vmatprep.subr.mxu0 %v12358_v7  ;;  %11621 = vmatprep.mubr.msk.f32.mxu1 %vm12359_vm2, %v12358_v7 }
 0xf2a   : > { %v13609_v34 = vadd.f32 %v10570_v53, %v6007_v50  ;;  %11629 = vmatprep.subr.mxu1 %v12358_v7 }
 0xf2c   : > { %v11570_v1 = vpop.f32.mrb[82].mxu1 }
 0xf2d   : > { %v13612_v27 = vadd.f32 %v11570_v1, %v10570_v53  ;;  %v6017_v59 = vpop.f32.mrb[83].mxu1 }
 0xf2e   : > { %v13614_v46 = vadd.f32 %v10570_v53, %v6017_v59 }
 0xf30   : > { %v11573_v48 = vpop.f32.mrb[84].mxu1 }
 0xf31   : > { %v13616_v20 = vadd.f32 %v11573_v48, %v10570_v53  ;;  %v6027_v45 = vpop.f32.mrb[85].mxu1 }
 0xf32   : > { %v13618_v12 = vadd.f32 %v10570_v53, %v6027_v45 }
 0xfe8   : > { %v6108_v38 = vpop.f32.mrb[82].mxu0 }
 0xfe9   : > { %v11578_v14 = vpop.f32.mrb[83].mxu0  ;;  %v6644_v32 = vsel %vm2278_vm3, %v6108_v38, -inf }
 0xfea   : > { %6645 = vmax.xlane.f32.xlu1 %v6644_v32 }
 0xfeb   : > { %v6336_v49 = vpop.f32.mrb[86].mxu1 }
 0xfec   : > { %v6184_v23 = vpop.f32.mrb[84].mxu0  ;;  %v11593_v21 = vpop.f32.mrb[87].mxu1  ;;  %v6653_v6 = vsel %vm2278_vm3, %v6336_v49, -inf }
 0xfed   : > { %v11583_v15 = vpop.f32.mrb[85].mxu0  ;;  %v6647_v26 = vsel %vm2278_vm3, %v6184_v23, -inf }
 0xfee   : > { %6648 = vmax.xlane.f32.xlu0 %v6647_v26 }
 0xff0   : > { %v6260_v24 = vpop.f32.mrb[86].mxu0 }
 0xff1   : > { %v11588_v30 = vpop.f32.mrb[87].mxu0  ;;  %v6650_v61 = vsel %vm2278_vm3, %v6260_v24, -inf }
 0xff2   : > { %6651 = vmax.xlane.f32.xlu1 %v6650_v61  ;;  %6654 = vmax.xlane.f32.xlu0 %v6653_v6  ;;  %v6488_v8 = vpop.f32.mrb[88].mxu1 }
 0xff3   : > { %v11603_v18 = vpop.f32.mrb[89].mxu1  ;;  %v6659_v28 = vsel %vm2278_vm3, %v6488_v8, -inf }
 0xff4   : > { %v6412_v25 = vpop.f32.mrb[88].mxu0 }
 0xff5   : > { %v11598_v4 = vpop.f32.mrb[89].mxu0  ;;  %v6656_v36 = vsel %vm2278_vm3, %v6412_v25, -inf }
 0xff6   : > { %6657 = vmax.xlane.f32.xlu1 %v6656_v36  ;;  %6660 = vmax.xlane.f32.xlu0 %v6659_v28 }
 0xff9   : > { %v6640_v29 = vpop.f32.mrb[90].mxu1 }
 0xffa   : > { %v11613_v54 = vpop.f32.mrb[91].mxu1  ;;  %v6564_v63 = vpop.f32.mrb[90].mxu0  ;;  %v6665_v57 = vsel %vm2278_vm3, %v6640_v29, -inf }
 0xffb   : > { %v11608_v37 = vpop.f32.mrb[91].mxu0  ;;  %6666 = vmax.xlane.f32.xlu0 %v6665_v57  ;;  %v6662_v41 = vsel %vm2278_vm3, %v6564_v63, -inf }
 0xffc   : > { %6663 = vmax.xlane.f32.xlu1 %v6662_v41 }
0x1077   : > { %v6646_v47 = vpop.xlane.xlu1 %6645 }
0x1078   : > { %v6668_v13 = vsub.f32 %v6108_v38, %v6646_v47 }
0x107a   : > { %v6676_v16 = vmul.f32 1.442695, %v6668_v13 }
0x107b   : > { %v6649_v31 = vpop.xlane.xlu0 %6648 }
0x107c   : > { %12238 = vpow2.f32 %v6676_v16  ;;  %v6669_v53 = vsub.f32 %v6184_v23, %v6649_v31 }
0x107e   : > { %v6678_v19 = vmul.f32 1.442695, %v6669_v53 }
0x107f   : > { %v6652_v35 = vpop.xlane.xlu1 %6651  ;;  %v6655_v42 = vpop.xlane.xlu0 %6654 }
0x1080   : > { %12240 = vpow2.f32 %v6678_v19  ;;  %v6670_v22 = vsub.f32 %v6260_v24, %v6652_v35  ;;  %v6671_v60 = vsub.f32 %v6336_v49, %v6655_v42 }
0x1082   : > { %v6680_v3 = vmul.f32 1.442695, %v6670_v22  ;;  %v6682_v17 = vmul.f32 1.442695, %v6671_v60 }
0x1083   : > { %v6658_v50 = vpop.xlane.xlu1 %6657  ;;  %v6661_v1 = vpop.xlane.xlu0 %6660 }
0x1084   : > { %12242 = vpow2.f32 %v6680_v3  ;;  %v6672_v59 = vsub.f32 %v6412_v25, %v6658_v50  ;;  %v6673_v48 = vsub.f32 %v6488_v8, %v6661_v1 }
0x1085   : > { %12244 = vpow2.f32 %v6682_v17 }
0x1086   : > { %v12239_v45 = vpop.eup %12238  ;;  %v6684_v38 = vmul.f32 1.442695, %v6672_v59  ;;  %v6686_v14 = vmul.f32 1.442695, %v6673_v48  ;;  %v10605_v59 = vld [vmem:[%s12590_s4 + $0x60] sm:$0xff]  ;;  %v10606_v48 = vld [vmem:[%s12590_s4 + $0x68] sm:$0xff] }
0x1087   : > { %v6692_v32 = vsel %vm2278_vm3, %v12239_v45, 0.0 }
0x1088   : > { %12246 = vpow2.f32 %v6684_v38  ;;  %6693 = vadd.xlane.f32.xlu1 %v6692_v32  ;;  %v6667_v21 = vpop.xlane.xlu0 %6666  ;;  %v10620_v38 = vld [vmem:[%s12596_s23 + $0x68] sm:$0xff] }
0x1089   : > { %12248 = vpow2.f32 %v6686_v14  ;;  %v6675_v15 = vsub.f32 %v6640_v29, %v6667_v21  ;;  %v6664_v49 = vpop.xlane.xlu1 %6663 }
0x108a   : > { %v12241_v23 = vpop.eup %12240  ;;  %v6674_v24 = vsub.f32 %v6564_v63, %v6664_v49 }
0x108b   : > { %v6695_v26 = vsel %vm2278_vm3, %v12241_v23, 0.0  ;;  %v6690_v30 = vmul.f32 1.442695, %v6675_v15  ;;  %v10608_v15 = vld [vmem:[%s12590_s4 + $0x78] sm:$0xff] }
0x108c   : > { %6696 = vadd.xlane.f32.xlu0 %v6695_v26  ;;  %v6688_v6 = vmul.f32 1.442695, %v6674_v24  ;;  %v10621_v26 = vld [vmem:[%s12596_s23 + $0x70] sm:$0xff]  ;;  %v10622_v24 = vld [vmem:[%s12596_s23 + $0x78] sm:$0xff] }
0x108d   : > { %12250 = vpow2.f32 %v6690_v30 }
0x108e   : > { %v12243_v61 = vpop.eup %12242  ;;  %12252 = vpow2.f32 %v6688_v6  ;;  %v12014_v6 = vpack.c.bf16 %v10622_v24, %v10621_v26 }
0x108f   : > { %v12245_v8 = vpop.eup %12244  ;;  %v6698_v18 = vsel %vm2278_vm3, %v12243_v61, 0.0 }
0x1090   : > { %v6701_v25 = vsel %vm2278_vm3, %v12245_v8, 0.0  ;;  %6699 = vadd.xlane.f32.xlu1 %v6698_v18  ;;  %v10634_v18 = vld [vmem:[%s12610_s26 + $0x68] sm:$0xff] }
0x1091   : > { %6702 = vadd.xlane.f32.xlu0 %v6701_v25 }
0x1092   : > { %v12247_v4 = vpop.eup %12246 }
0x1093   : > { %v12249_v36 = vpop.eup %12248  ;;  %v6704_v28 = vsel %vm2278_vm3, %v12247_v4, 0.0 }
0x1094   : > { %v6707_v29 = vsel %vm2278_vm3, %v12249_v36, 0.0  ;;  %6705 = vadd.xlane.f32.xlu1 %v6704_v28 }
0x1095   : > { %6708 = vadd.xlane.f32.xlu0 %v6707_v29 }
0x1097   : > { %v13634_v54 = vpop.eup %12250 }
0x1098   : > { %v13636_v63 = vpop.eup %12252  ;;  %v6713_v57 = vsel %vm2278_vm3, %v13634_v54, 0.0 }
0x1099   : > { %6714 = vadd.xlane.f32.xlu0 %v6713_v57  ;;  %v6710_v37 = vsel %vm2278_vm3, %v13636_v63, 0.0 }
0x109a   : > { %6711 = vadd.xlane.f32.xlu1 %v6710_v37 }
0x1115   : > { %v6694_v41 = vpop.xlane.xlu1 %6693 }
0x1116   : > { %12254 = vrcp.f32 %v6694_v41 }
0x1119   : > { %v6697_v47 = vpop.xlane.xlu0 %6696 }
0x111a   : > { %12256 = vrcp.f32 %v6697_v47 }
0x111d   : > { %v6700_v13 = vpop.xlane.xlu1 %6699 }
0x111e   : > { %v6703_v16 = vpop.xlane.xlu0 %6702  ;;  %12258 = vrcp.f32 %v6700_v13 }
0x111f   : > { %12260 = vrcp.f32 %v6703_v16  ;;  %v13757_v16 = vld [vmem:[%s12722_s5 + $0x3] ss:$0 sm:$0xff]  ;;  %s1014_s5 = scalar_lea.vmem %s14232_s21, %s12482_s27 }
0x1120   : > { %v12255_v31 = vpop.eup %12254 }
0x1121   : > { %v6724_v53 = vmul.f32 %v12255_v31, %v12239_v45  ;;  %v6706_v19 = vpop.xlane.xlu1 %6705 }
0x1122   : > { %v6709_v35 = vpop.xlane.xlu0 %6708  ;;  %12262 = vrcp.f32 %v6706_v19 }
0x1123   : > { %12264 = vrcp.f32 %v6709_v35  ;;  %11617 = vmatmul.mubr.msk.f32.vlgmr.msra.gmra.mrb[92].mxu0 %vm2278_vm3, %v6724_v53  ;;  %v13760_v35 = vld [vmem:[%s12728_s16 + $0x3] ss:$0 sm:$0xff] }
0x1124   : > { %v12257_v42 = vpop.eup %12256  ;;  %11625 = vmatpush3.msra.mxu0 %v13609_v34  ;;  %11626 = vmatprep.mubr.msk.f32.mxu0 %vm12359_vm2, %v12358_v7 }
0x1125   : > { %v6725_v22 = vmul.f32 %v12257_v42, %v12241_v23  ;;  %11634 = vmatprep.subr.mxu0 %v12358_v7 }
0x1126   : > { %v6715_v3 = vpop.xlane.xlu0 %6714 }
0x1127   : > { %11622 = vmatmul.mubr.msk.f32.vlgmr.msra.gmra.mrb[92].mxu1 %vm2278_vm3, %v6725_v22  ;;  %12266 = vrcp.f32 %v6715_v3  ;;  %v6712_v50 = vpop.xlane.xlu1 %6711 }
0x1128   : > { %v12259_v60 = vpop.eup %12258  ;;  %11630 = vmatpush3.msra.mxu1 %v13604_v52  ;;  %11631 = vmatprep.mubr.msk.f32.mxu1 %vm12359_vm2, %v12358_v7  ;;  %12268 = vrcp.f32 %v6712_v50  ;;  %v10619_v52 = vld [vmem:[%s12596_s23 + $0x60] sm:$0xff] }
0x1129   : > { %v12261_v34 = vpop.eup %12260  ;;  %v6726_v17 = vmul.f32 %v12259_v60, %v12243_v61  ;;  %11639 = vmatprep.subr.mxu1 %v12358_v7  ;;  %v12010_v21 = vpack.c.bf16 %v10620_v38, %v10619_v52 }
0x112a   : > { %v6727_v1 = vmul.f32 %v12261_v34, %v12245_v8  ;;  %v10633_v8 = vld [vmem:[%s12610_s26 + $0x60] sm:$0xff] }
0x112b   : > { %11627 = vmatmul.mubr.msk.f32.vlgmr.msra.gmra.mrb[94].mxu0 %vm2278_vm3, %v6726_v17  ;;  %v12018_v25 = vpack.c.bf16 %v10634_v18, %v10633_v8 }
0x112c   : > { %v12263_v45 = vpop.eup %12262  ;;  %11632 = vmatmul.mubr.msk.f32.vlgmr.msra.gmra.mrb[94].mxu1 %vm2278_vm3, %v6727_v1  ;;  %11635 = vmatpush3.msra.mxu0 %v13614_v46  ;;  %v12002_v46 = vpack.c.bf16 %v10606_v48, %v10605_v59 }
0x112d   : > { %v12265_v14 = vpop.eup %12264  ;;  %v6728_v32 = vmul.f32 %v12263_v45, %v12247_v4  ;;  %11640 = vmatpush3.msra.mxu1 %v13612_v27  ;;  %11636 = vmatprep.mubr.msk.f32.mxu0 %vm12359_vm2, %v12358_v7  ;;  %v10607_v27 = vld [vmem:[%s12590_s4 + $0x70] sm:$0xff] }
0x112e   : > { %v6729_v23 = vmul.f32 %v12265_v14, %v12249_v36  ;;  %11641 = vmatprep.mubr.msk.f32.mxu1 %vm12359_vm2, %v12358_v7  ;;  %11644 = vmatprep.subr.mxu0 %v12358_v7  ;;  %v12006_v61 = vpack.c.bf16 %v10608_v15, %v10607_v27  ;;  %v10635_v4 = vld [vmem:[%s12610_s26 + $0x70] sm:$0xff]  ;;  %v10636_v36 = vld [vmem:[%s12610_s26 + $0x78] sm:$0xff] }
0x112f   : > { %11649 = vmatprep.subr.mxu1 %v12358_v7  ;;  %11637 = vmatmul.mubr.msk.f32.vlgmr.msra.gmra.mrb[96].mxu0 %vm2278_vm3, %v6728_v32  ;;  %v12022_v28 = vpack.c.bf16 %v10636_v36, %v10635_v4 }
0x1130   : > { %11642 = vmatmul.mubr.msk.f32.vlgmr.msra.gmra.mrb[96].mxu1 %vm2278_vm3, %v6729_v23  ;;  %11645 = vmatpush3.msra.mxu0 %v13618_v12 }
0x1131   : > { %11650 = vmatpush3.msra.mxu1 %v13616_v20  ;;  %11646 = vmatprep.mubr.msk.f32.mxu0 %vm12359_vm2, %v12358_v7  ;;  %v12267_v49 = vpop.eup %12266 }
0x1132   : > { %11651 = vmatprep.mubr.msk.f32.mxu1 %vm12359_vm2, %v12358_v7  ;;  %12003 = vmatprep.subr.bf16.mxu0 %v12002_v46  ;;  %v12269_v30 = vpop.eup %12268  ;;  %v6731_v12 = vmul.f32 %v12267_v49, %v13634_v54 }
0x1133   : > { %12011 = vmatprep.subr.bf16.mxu1 %v12010_v21  ;;  %v6730_v20 = vmul.f32 %v12269_v30, %v13636_v63  ;;  %v10638_v30 = vld [vmem:[%s12749_s29 + $0x3] ss:$0 sm:$0xff] }
0x1134   : > { %11652 = vmatmul.mubr.msk.f32.vlgmr.msra.gmra.mrb[98].mxu1 %vm2278_vm3, %v6731_v12 }
0x1135   : > { %11647 = vmatmul.mubr.msk.f32.vlgmr.msra.gmra.mrb[98].mxu0 %vm2278_vm3, %v6730_v20  ;;  %12013 = vmatpush3.bf16.msra.mxu1 %v12010_v21 }
0x1136   : > { %12005 = vmatpush3.bf16.msra.mxu0 %v12002_v46  ;;  %11662 = vmatprep.mubr.msk.f32.mxu0 %vm1164_vm1, %v13489_v9 }
0x1137   : > { %11682 = vmatprep.mubr.msk.f32.mxu1 %vm1164_vm1, %v13489_v9  ;;  %12007 = vmatprep.subr.bf16.mxu0 %v12006_v61 }
0x1138   : > { %12015 = vmatprep.subr.bf16.mxu1 %v12014_v6 }
0x1139   : > { %12017 = vmatpush3.bf16.msra.mxu1 %v12014_v6 }
0x113a   : > { %12009 = vmatpush3.bf16.msra.mxu0 %v12006_v61  ;;  %11714 = vmatprep.subr.mxu1 %v12358_v7 }
0x113b   : > { %12019 = vmatprep.subr.bf16.mxu0 %v12018_v25 }
0x113c   : > { %11683 = vmatmul.mubr.msk.f32.vlgmr.msra.gmra.mrb[100].mxu1 %vm1164_vm1, %v13492_v0 }
0x113d   : > { %11663 = vmatmul.mubr.msk.f32.vlgmr.msra.gmra.mrb[100].mxu0 %vm1164_vm1, %v13492_v0  ;;  %11685 = vmatprep.mubr.msk.f32.mxu1 %vm1164_vm1, %v13502_v43 }
0x113e   : > { %11665 = vmatprep.mubr.msk.f32.mxu0 %vm1164_vm1, %v13502_v43  ;;  %12021 = vmatpush3.bf16.msra.mxu0 %v12018_v25 }
0x113f   : > { %12023 = vmatprep.subr.bf16.mxu0 %v12022_v28 }
0x1140   : > { %11686 = vmatmul.mubr.msk.f32.gmra.mrb[102].mxu1 %vm1164_vm1, %v13504_v51 }
0x1141   : > { %11666 = vmatmul.mubr.msk.f32.gmra.mrb[102].mxu0 %vm1164_vm1, %v13504_v51  ;;  %11688 = vmatprep.mubr.msk.f32.mxu1 %vm1164_vm1, %v13517_v62 }
0x1142   : > { %11668 = vmatprep.mubr.msk.f32.mxu0 %vm1164_vm1, %v13517_v62  ;;  %12025 = vmatpush3.bf16.msra.mxu0 %v12022_v28 }
0x1143   : > { %11734 = vmatprep.subr.mxu0 %v12358_v7 }
0x1144   : > { %11689 = vmatmul.mubr.msk.f32.gmra.mrb[104].mxu1 %vm1164_vm1, %v13519_v11 }
0x1145   : > { %11669 = vmatmul.mubr.msk.f32.gmra.mrb[104].mxu0 %vm1164_vm1, %v13519_v11  ;;  %11691 = vmatprep.mubr.msk.f32.mxu1 %vm1164_vm1, %v13531_v33 }
0x1146   : > { %11671 = vmatprep.mubr.msk.f32.mxu0 %vm1164_vm1, %v13531_v33 }
0x1148   : > { %11692 = vmatmul.mubr.msk.f32.gmra.mrb[106].mxu1 %vm1164_vm1, %v13533_v2 }
0x1149   : > { %11672 = vmatmul.mubr.msk.f32.gmra.mrb[106].mxu0 %vm1164_vm1, %v13533_v2  ;;  %11716 = vmatprep.mubr.msk.f32.mxu1 %vm12359_vm2, %v12358_v7 }
0x114a   : > { %11702 = vmatprep.mubr.msk.f32.mxu0 %vm1164_vm1, %v13489_v9 }
0x114d   : > { %11703 = vmatmul.mubr.msk.f32.vlgmr.msra.gmra.mrb[108].mxu0 %vm1164_vm1, %v13492_v0 }
0x114e   : > { %11705 = vmatprep.mubr.msk.f32.mxu0 %vm1164_vm1, %v13502_v43 }
0x1151   : > { %11706 = vmatmul.mubr.msk.f32.gmra.mrb[110].mxu0 %vm1164_vm1, %v13504_v51 }
0x1152   : > { %11708 = vmatprep.mubr.msk.f32.mxu0 %vm1164_vm1, %v13517_v62 }
0x1155   : > { %11709 = vmatmul.mubr.msk.f32.gmra.mrb[112].mxu0 %vm1164_vm1, %v13519_v11 }
0x1156   : > { %11711 = vmatprep.mubr.msk.f32.mxu0 %vm1164_vm1, %v13531_v33 }
0x1159   : > { %11712 = vmatmul.mubr.msk.f32.gmra.mrb[114].mxu0 %vm1164_vm1, %v13533_v2 }
0x115a   : > { %11736 = vmatprep.mubr.msk.f32.mxu0 %vm12359_vm2, %v12358_v7 }
0x11f6   : > { %v13740_v9 = vpop.f32.mrb[92].mxu0 }
0x11f7   : > { %v11618_v0 = vpop.f32.mrb[93].mxu0 }
0x11fa   : > { %v13742_v43 = vpop.f32.mrb[92].mxu1 }
0x11fb   : > { %v11623_v51 = vpop.f32.mrb[93].mxu1 }
0x11fe   : > { %v13744_v62 = vpop.f32.mrb[94].mxu0 }
0x11ff   : > { %v13746_v11 = vpop.f32.mrb[94].mxu1  ;;  %v11628_v29 = vpop.f32.mrb[95].mxu0 }
0x1200   : > { %v11633_v33 = vpop.f32.mrb[95].mxu1 }
0x1202   : > { %v13748_v54 = vpop.f32.mrb[96].mxu0 }
0x1203   : > { %v13750_v2 = vpop.f32.mrb[96].mxu1  ;;  %v11638_v63 = vpop.f32.mrb[97].mxu0 }
0x1204   : > { %v11643_v57 = vpop.f32.mrb[97].mxu1 }
0x1207   : > { %v13752_v37 = vpop.f32.mrb[98].mxu1 }
0x1208   : > { %v13754_v41 = vpop.f32.mrb[98].mxu0  ;;  %v11653_v47 = vpop.f32.mrb[99].mxu1 }
0x1209   : > { %v11648_v13 = vpop.f32.mrb[99].mxu0 }
0x120f   : > { %v11684_v31 = vpop.f32.mrb[100].mxu1 }
0x1210   : > { %v11664_v53 = vpop.f32.mrb[100].mxu0  ;;  %v7516_v19 = vpop.f32.mrb[101].mxu1  ;;  %v7522_v50 = vadd.f32 %v11684_v31, %v13757_v16 }
0x1211   : > { %v7398_v42 = vpop.f32.mrb[101].mxu0  ;;  %v7517_v22 = vadd.f32 %v13757_v16, %v7516_v19  ;;  %v7404_v48 = vadd.f32 %v11664_v53, %v13760_v35 }
0x1212   : > { %v7399_v3 = vadd.f32 %v13760_v35, %v7398_v42 }
0x1213   : > { %v11687_v60 = vpop.f32.mrb[102].mxu1  ;;  %11715 = vmatpush3.xpose.msk.msra.mxu1 %vm1032_vm0, %v7517_v22 }
0x1214   : > { %v11667_v34 = vpop.f32.mrb[102].mxu0  ;;  %v7526_v17 = vpop.f32.mrb[103].mxu1  ;;  %11719 = vmatprep.subr.mxu1 %v12358_v7  ;;  %v7532_v49 = vadd.f32 %v11687_v60, %v13757_v16 }
0x1215   : > { %v7408_v1 = vpop.f32.mrb[103].mxu0  ;;  %v7527_v38 = vadd.f32 %v13757_v16, %v7526_v17  ;;  %v7414_v12 = vadd.f32 %v11667_v34, %v13760_v35 }
0x1216   : > { %11717 = vmatmul.mubr.msk.f32.vlgmr.msra.gmra.mrb[108].mxu1 %vm1032_vm0, %v7399_v3  ;;  %v7409_v46 = vadd.f32 %v13760_v35, %v7408_v1 }
0x1217   : > { %v11690_v59 = vpop.f32.mrb[104].mxu1  ;;  %11720 = vmatpush3.xpose.msk.msra.mxu1 %vm1032_vm0, %v7522_v50  ;;  %11721 = vmatprep.mubr.msk.f32.mxu1 %vm12359_vm2, %v12358_v7 }
0x1218   : > { %v11670_v45 = vpop.f32.mrb[104].mxu0  ;;  %v7536_v52 = vpop.f32.mrb[105].mxu1  ;;  %11724 = vmatprep.subr.mxu1 %v12358_v7  ;;  %v7542_v6 = vadd.f32 %v11690_v59, %v13757_v16 }
0x1219   : > { %v7418_v14 = vpop.f32.mrb[105].mxu0  ;;  %v7537_v32 = vadd.f32 %v13757_v16, %v7536_v52  ;;  %v7424_v25 = vadd.f32 %v11670_v45, %v13760_v35 }
0x121a   : > { %11722 = vmatmul.mubr.msk.f32.vlgmr.msra.gmra.mrb[110].mxu1 %vm1032_vm0, %v7404_v48  ;;  %v7419_v21 = vadd.f32 %v13760_v35, %v7418_v14 }
0x121b   : > { %v11693_v23 = vpop.f32.mrb[106].mxu1  ;;  %11725 = vmatpush3.xpose.msk.msra.mxu1 %vm1032_vm0, %v7527_v38  ;;  %11735 = vmatpush3.xpose.msk.msra.mxu0 %vm1032_vm0, %v7537_v32 }
0x121c   : > { %v11673_v27 = vpop.f32.mrb[106].mxu0  ;;  %v7546_v15 = vpop.f32.mrb[107].mxu1  ;;  %11726 = vmatprep.mubr.msk.f32.mxu1 %vm12359_vm2, %v12358_v7  ;;  %11729 = vmatprep.subr.mxu1 %v12358_v7  ;;  %v7552_v36 = vadd.f32 %v11693_v23, %v13757_v16 }
0x121d   : > { %v7428_v26 = vpop.f32.mrb[107].mxu0  ;;  %v7547_v24 = vadd.f32 %v13757_v16, %v7546_v15  ;;  %11744 = vmatprep.subr.mxu0 %v12358_v7  ;;  %v7434_v29 = vadd.f32 %v11673_v27, %v13760_v35 }
0x121e   : > { %11727 = vmatmul.mubr.msk.f32.vlgmr.msra.gmra.mrb[112].mxu1 %vm1032_vm0, %v7409_v46  ;;  %11737 = vmatmul.mubr.msk.f32.vlgmr.msra.gmra.mrb[116].mxu0 %vm1032_vm0, %v7419_v21  ;;  %v7429_v20 = vadd.f32 %v13760_v35, %v7428_v26 }
0x121f   : > { %11730 = vmatpush3.xpose.msk.msra.mxu1 %vm1032_vm0, %v7532_v49  ;;  %11745 = vmatpush3.xpose.msk.msra.mxu0 %vm1032_vm0, %v7547_v24 }
0x1220   : > { %v11704_v61 = vpop.f32.mrb[108].mxu0  ;;  %11731 = vmatprep.mubr.msk.f32.mxu1 %vm12359_vm2, %v12358_v7  ;;  %11746 = vmatprep.mubr.msk.f32.mxu0 %vm12359_vm2, %v12358_v7 }
0x1221   : > { %v7634_v8 = vpop.f32.mrb[109].mxu0  ;;  %11739 = vmatprep.subr.mxu1 %v12358_v7  ;;  %11754 = vmatprep.subr.mxu0 %v12358_v7  ;;  %v7640_v63 = vadd.f32 %v11704_v61, %v10638_v30 }
0x1222   : > { %v7635_v18 = vadd.f32 %v10638_v30, %v7634_v8  ;;  %11732 = vmatmul.mubr.msk.f32.vlgmr.msra.gmra.mrb[114].mxu1 %vm1032_vm0, %v7414_v12  ;;  %11747 = vmatmul.mubr.msk.f32.vlgmr.msra.gmra.mrb[118].mxu0 %vm1032_vm0, %v7429_v20 }
0x1223   : > { %11740 = vmatpush3.xpose.msk.msra.mxu1 %vm1032_vm0, %v7542_v6  ;;  %11741 = vmatprep.mubr.msk.f32.mxu1 %vm12359_vm2, %v12358_v7 }
0x1224   : > { %v11707_v4 = vpop.f32.mrb[110].mxu0  ;;  %11755 = vmatpush3.msra.mxu0 %v7635_v18  ;;  %11749 = vmatprep.subr.mxu1 %v12358_v7 }
0x1225   : > { %v13808_v28 = vadd.f32 %v11707_v4, %v10638_v30  ;;  %v7644_v0 = vpop.f32.mrb[111].mxu0  ;;  %11756 = vmatprep.mubr.msk.f32.mxu0 %vm12359_vm2, %v12358_v7  ;;  %11764 = vmatprep.subr.mxu0 %v12358_v7 }
0x1226   : > { %v13813_v51 = vadd.f32 %v10638_v30, %v7644_v0  ;;  %11742 = vmatmul.mubr.msk.f32.vlgmr.msra.gmra.mrb[116].mxu1 %vm1032_vm0, %v7424_v25 }
0x1227   : > { %11750 = vmatpush3.xpose.msk.msra.mxu1 %vm1032_vm0, %v7552_v36  ;;  %11751 = vmatprep.mubr.msk.f32.mxu1 %vm12359_vm2, %v12358_v7 }
0x1228   : > { %v11710_v33 = vpop.f32.mrb[112].mxu0  ;;  %11759 = vmatprep.subr.mxu1 %v12358_v7 }
0x1229   : > { %v13821_v57 = vadd.f32 %v11710_v33, %v10638_v30  ;;  %v7654_v47 = vpop.f32.mrb[113].mxu0 }
0x122a   : > { %v13823_v13 = vadd.f32 %v10638_v30, %v7654_v47  ;;  %11752 = vmatmul.mubr.msk.f32.vlgmr.msra.gmra.mrb[118].mxu1 %vm1032_vm0, %v7434_v29 }
0x122b   : > { %11760 = vmatpush3.msra.mxu1 %v7640_v63  ;;  %11761 = vmatprep.mubr.msk.f32.mxu1 %vm12359_vm2, %v12358_v7 }
0x122c   : > { %v11713_v16 = vpop.f32.mrb[114].mxu0  ;;  %11769 = vmatprep.subr.mxu1 %v12358_v7 }
0x122d   : > { %v13829_v31 = vadd.f32 %v11713_v16, %v10638_v30  ;;  %v7664_v53 = vpop.f32.mrb[115].mxu0 }
0x122e   : > { %v13831_v19 = vadd.f32 %v10638_v30, %v7664_v53 }
0x12e9   : > { %v7745_v35 = vpop.f32.mrb[108].mxu1 }
0x12ea   : > { %v11718_v42 = vpop.f32.mrb[109].mxu1  ;;  %v8281_v22 = vsel %vm2278_vm3, %v7745_v35, -inf }
0x12eb   : > { %8282 = vmax.xlane.f32.xlu0 %v8281_v22 }
0x12ed   : > { %v7821_v60 = vpop.f32.mrb[110].mxu1 }
0x12ee   : > { %v11723_v3 = vpop.f32.mrb[111].mxu1  ;;  %v8284_v34 = vsel %vm2278_vm3, %v7821_v60, -inf }
0x12ef   : > { %8285 = vmax.xlane.f32.xlu1 %v8284_v34 }
0x12f1   : > { %v7897_v17 = vpop.f32.mrb[112].mxu1  ;;  %v8049_v50 = vpop.f32.mrb[116].mxu0 }
0x12f2   : > { %v11728_v1 = vpop.f32.mrb[113].mxu1  ;;  %v11738_v59 = vpop.f32.mrb[117].mxu0  ;;  %v8287_v48 = vsel %vm2278_vm3, %v7897_v17, -inf  ;;  %v8293_v32 = vsel %vm2278_vm3, %v8049_v50, -inf }
0x12f3   : > { %8288 = vmax.xlane.f32.xlu0 %v8287_v48 }
0x12f5   : > { %v7973_v45 = vpop.f32.mrb[114].mxu1  ;;  %v8201_v52 = vpop.f32.mrb[118].mxu0 }
0x12f6   : > { %v11733_v38 = vpop.f32.mrb[115].mxu1  ;;  %v11748_v14 = vpop.f32.mrb[119].mxu0  ;;  %v8290_v23 = vsel %vm2278_vm3, %v7973_v45, -inf  ;;  %v8299_v27 = vsel %vm2278_vm3, %v8201_v52, -inf }
0x12f7   : > { %8294 = vmax.xlane.f32.xlu0 %v8293_v32  ;;  %8291 = vmax.xlane.f32.xlu1 %v8290_v23 }
0x12f9   : > { %v8125_v46 = vpop.f32.mrb[116].mxu1 }
0x12fa   : > { %v11743_v21 = vpop.f32.mrb[117].mxu1  ;;  %v8296_v15 = vsel %vm2278_vm3, %v8125_v46, -inf }
0x12fb   : > { %8300 = vmax.xlane.f32.xlu0 %v8299_v27  ;;  %8297 = vmax.xlane.f32.xlu1 %v8296_v15 }
0x12fd   : > { %v8277_v49 = vpop.f32.mrb[118].mxu1 }
0x12fe   : > { %v11753_v26 = vpop.f32.mrb[119].mxu1  ;;  %v8302_v24 = vsel %vm2278_vm3, %v8277_v49, -inf }
0x12ff   : > { %8303 = vmax.xlane.f32.xlu1 %v8302_v24 }
0x1378   : > { %v8283_v30 = vpop.xlane.xlu0 %8282 }
0x1379   : > { %v8305_v12 = vsub.f32 %v7745_v35, %v8283_v30 }
0x137b   : > { %v8313_v20 = vmul.f32 1.442695, %v8305_v12 }
0x137c   : > { %v8286_v61 = vpop.xlane.xlu1 %8285 }
0x137d   : > { %12270 = vpow2.f32 %v8313_v20  ;;  %v8306_v6 = vsub.f32 %v7821_v60, %v8286_v61 }
0x137f   : > { %v8315_v8 = vmul.f32 1.442695, %v8306_v6 }
0x1380   : > { %v8289_v18 = vpop.xlane.xlu0 %8288 }
0x1381   : > { %12272 = vpow2.f32 %v8315_v8  ;;  %v8307_v25 = vsub.f32 %v7897_v17, %v8289_v18 }
0x1383   : > { %v8317_v4 = vmul.f32 1.442695, %v8307_v25 }
0x1384   : > { %v8295_v36 = vpop.xlane.xlu0 %8294  ;;  %v8292_v0 = vpop.xlane.xlu1 %8291 }
0x1385   : > { %12274 = vpow2.f32 %v8317_v4  ;;  %v8309_v29 = vsub.f32 %v8049_v50, %v8295_v36  ;;  %v8308_v33 = vsub.f32 %v7973_v45, %v8292_v0 }
0x1387   : > { %v12271_v63 = vpop.eup %12270  ;;  %v8321_v47 = vmul.f32 1.442695, %v8309_v29  ;;  %v8319_v16 = vmul.f32 1.442695, %v8308_v33 }
0x1388   : > { %v8301_v53 = vpop.xlane.xlu0 %8300  ;;  %v8298_v42 = vpop.xlane.xlu1 %8297  ;;  %v8329_v35 = vsel %vm2278_vm3, %v12271_v63, 0.0 }
0x1389   : > { %12276 = vpow2.f32 %v8321_v47  ;;  %v8311_v22 = vsub.f32 %v8201_v52, %v8301_v53  ;;  %v8310_v60 = vsub.f32 %v8125_v46, %v8298_v42  ;;  %8330 = vadd.xlane.f32.xlu0 %v8329_v35  ;;  %v10671_v35 = vld [vmem:[%s13052_s22 + $0x30] sm:$0xff] }
0x138a   : > { %12278 = vpow2.f32 %v8319_v16 }
0x138b   : > { %v12273_v3 = vpop.eup %12272  ;;  %v8325_v34 = vmul.f32 1.442695, %v8311_v22  ;;  %v8323_v17 = vmul.f32 1.442695, %v8310_v60  ;;  %v10672_v22 = vld [vmem:[%s13052_s22 + $0x38] sm:$0xff] }
0x138c   : > { %v8304_v1 = vpop.xlane.xlu1 %8303  ;;  %v8332_v59 = vsel %vm2278_vm3, %v12273_v3, 0.0  ;;  %v12026_v60 = vpack.c.bf16 %v10672_v22, %v10671_v35 }
0x138d   : > { %12280 = vpow2.f32 %v8325_v34  ;;  %v8312_v50 = vsub.f32 %v8277_v49, %v8304_v1  ;;  %8333 = vadd.xlane.f32.xlu1 %v8332_v59  ;;  %v10604_v34 = vld [vmem:[%s13052_s22 + $0x28] sm:$0xff] }
0x138e   : > { %12282 = vpow2.f32 %v8323_v17 }
0x138f   : > { %v12275_v48 = vpop.eup %12274  ;;  %v8327_v45 = vmul.f32 1.442695, %v8312_v50 }
0x1390   : > { %v8335_v38 = vsel %vm2278_vm3, %v12275_v48, 0.0 }
0x1391   : > { %12284 = vpow2.f32 %v8327_v45  ;;  %8336 = vadd.xlane.f32.xlu0 %v8335_v38 }
0x1393   : > { %v12277_v52 = vpop.eup %12276 }
0x1394   : > { %v12279_v14 = vpop.eup %12278  ;;  %v8341_v32 = vsel %vm2278_vm3, %v12277_v52, 0.0 }
0x1395   : > { %8342 = vadd.xlane.f32.xlu0 %v8341_v32  ;;  %v8338_v23 = vsel %vm2278_vm3, %v12279_v14, 0.0 }
0x1396   : > { %8339 = vadd.xlane.f32.xlu1 %v8338_v23 }
0x1397   : > { %v12281_v46 = vpop.eup %12280 }
0x1398   : > { %v12283_v21 = vpop.eup %12282  ;;  %v8347_v27 = vsel %vm2278_vm3, %v12281_v46, 0.0 }
0x1399   : > { %8348 = vadd.xlane.f32.xlu0 %v8347_v27  ;;  %v8344_v15 = vsel %vm2278_vm3, %v12283_v21, 0.0 }
0x139a   : > { %8345 = vadd.xlane.f32.xlu1 %v8344_v15 }
0x139b   : > { %v12285_v49 = vpop.eup %12284 }
0x139c   : > { %v8350_v26 = vsel %vm2278_vm3, %v12285_v49, 0.0 }
0x139e   : > { %8351 = vadd.xlane.f32.xlu1 %v8350_v26 }
0x1416   : > { %v8331_v24 = vpop.xlane.xlu0 %8330 }
0x1417   : > { %12286 = vrcp.f32 %v8331_v24 }
0x141a   : > { %v8334_v30 = vpop.xlane.xlu1 %8333 }
0x141b   : > { %12288 = vrcp.f32 %v8334_v30 }
0x141e   : > { %v8337_v12 = vpop.xlane.xlu0 %8336 }
0x141f   : > { %12290 = vrcp.f32 %v8337_v12 }
0x1421   : > { %v12287_v20 = vpop.eup %12286 }
0x1422   : > { %v8361_v61 = vmul.f32 %v12287_v20, %v12271_v63  ;;  %v8343_v6 = vpop.xlane.xlu0 %8342 }
0x1423   : > { %12292 = vrcp.f32 %v8343_v6  ;;  %v8340_v8 = vpop.xlane.xlu1 %8339 }
0x1424   : > { %12294 = vrcp.f32 %v8340_v8  ;;  %11757 = vmatmul.mubr.msk.f32.vlgmr.msra.gmra.mrb[120].mxu0 %vm2278_vm3, %v8361_v61 }
0x1425   : > { %v12289_v18 = vpop.eup %12288  ;;  %11765 = vmatpush3.msra.mxu0 %v13813_v51  ;;  %11766 = vmatprep.mubr.msk.f32.mxu0 %vm12359_vm2, %v12358_v7 }
0x1426   : > { %v8362_v25 = vmul.f32 %v12289_v18, %v12273_v3  ;;  %v8349_v4 = vpop.xlane.xlu0 %8348  ;;  %11774 = vmatprep.subr.mxu0 %v12358_v7  ;;  %v10603_v3 = vld [vmem:[%s13052_s22 + $0x20] sm:$0xff] }
0x1427   : > { %12296 = vrcp.f32 %v8349_v4  ;;  %v8346_v36 = vpop.xlane.xlu1 %8345  ;;  %v12030_v17 = vpack.c.bf16 %v10604_v34, %v10603_v3 }
0x1428   : > { %12298 = vrcp.f32 %v8346_v36  ;;  %11762 = vmatmul.mubr.msk.f32.vlgmr.msra.gmra.mrb[120].mxu1 %vm2278_vm3, %v8362_v25 }
0x1429   : > { %v12291_v0 = vpop.eup %12290  ;;  %11770 = vmatpush3.msra.mxu1 %v13808_v28  ;;  %11771 = vmatprep.mubr.msk.f32.mxu1 %vm12359_vm2, %v12358_v7 }
0x142a   : > { %v8363_v29 = vmul.f32 %v12291_v0, %v12275_v48  ;;  %11779 = vmatprep.subr.mxu1 %v12358_v7 }
0x142b   : > { %v8352_v51 = vpop.xlane.xlu1 %8351 }
0x142c   : > { %12300 = vrcp.f32 %v8352_v51  ;;  %11767 = vmatmul.mubr.msk.f32.vlgmr.msra.gmra.mrb[122].mxu0 %vm2278_vm3, %v8363_v29 }
0x142d   : > { %v12293_v33 = vpop.eup %12292  ;;  %11775 = vmatpush3.msra.mxu0 %v13823_v13  ;;  %11776 = vmatprep.mubr.msk.f32.mxu0 %vm12359_vm2, %v12358_v7 }
0x142e   : > { %v12295_v63 = vpop.eup %12294  ;;  %v8365_v47 = vmul.f32 %v12293_v33, %v12277_v52  ;;  %11784 = vmatprep.subr.mxu0 %v12358_v7 }
0x142f   : > { %v8364_v28 = vmul.f32 %v12295_v63, %v12279_v14 }
0x1430   : > { %11777 = vmatmul.mubr.msk.f32.vlgmr.msra.gmra.mrb[124].mxu0 %vm2278_vm3, %v8365_v47 }
0x1431   : > { %v12297_v16 = vpop.eup %12296  ;;  %11772 = vmatmul.mubr.msk.f32.vlgmr.msra.gmra.mrb[122].mxu1 %vm2278_vm3, %v8364_v28  ;;  %11785 = vmatpush3.msra.mxu0 %v13831_v19 }
0x1432   : > { %v12299_v53 = vpop.eup %12298  ;;  %v8367_v42 = vmul.f32 %v12297_v16, %v12281_v46  ;;  %11780 = vmatpush3.msra.mxu1 %v13821_v57  ;;  %11781 = vmatprep.mubr.msk.f32.mxu1 %vm12359_vm2, %v12358_v7 }
0x1433   : > { %v8366_v13 = vmul.f32 %v12299_v53, %v12283_v21  ;;  %11786 = vmatprep.mubr.msk.f32.mxu0 %vm12359_vm2, %v12358_v7  ;;  %11789 = vmatprep.subr.mxu1 %v12358_v7 }
0x1434   : > { %11787 = vmatmul.mubr.msk.f32.vlgmr.msra.gmra.mrb[126].mxu0 %vm2278_vm3, %v8367_v42  ;;  %12027 = vmatprep.subr.bf16.mxu0 %v12026_v60 }
0x1435   : > { %11782 = vmatmul.mubr.msk.f32.vlgmr.msra.gmra.mrb[124].mxu1 %vm2278_vm3, %v8366_v13  ;;  %12029 = vmatpush3.bf16.msra.mxu0 %v12026_v60 }
0x1436   : > { %v12301_v19 = vpop.eup %12300  ;;  %11790 = vmatpush3.msra.mxu1 %v13829_v31  ;;  %11791 = vmatprep.mubr.msk.f32.mxu1 %vm12359_vm2, %v12358_v7 }
0x1437   : > { %v8368_v57 = vmul.f32 %v12301_v19, %v12285_v49  ;;  %12031 = vmatprep.subr.bf16.mxu0 %v12030_v17 }
0x1439   : > { %11792 = vmatmul.mubr.msk.f32.vlgmr.msra.gmra.mrb[126].mxu1 %vm2278_vm3, %v8368_v57 }
0x14f7   : > { %v8438_v1 = vpop.f32.mrb[120].mxu0 }
0x14f8   : > { %v11758_v59 = vpop.f32.mrb[121].mxu0  ;;  %11798 = vmatprep.mubr.msk.f32.mxu0 %vm1032_vm0, %v8438_v1 }
0x14fb   : > { %v8511_v31 = vpop.f32.mrb[120].mxu1 }
0x14fc   : > { %v11763_v50 = vpop.f32.mrb[121].mxu1  ;;  %11799 = vmatmul.mubr.msk.f32.vlgmr.msra.gmra.mrb[128].mxu0 %vm1032_vm0, %v8511_v31 }
0x14fd   : > { %12033 = vmatpush3.bf16.msra.mxu0 %v12030_v17 }
0x14ff   : > { %v8584_v7 = vpop.f32.mrb[122].mxu0 }
0x1500   : > { %v11768_v48 = vpop.f32.mrb[123].mxu0  ;;  %11801 = vmatprep.mubr.msk.f32.mxu0 %vm1032_vm0, %v8584_v7 }
0x1503   : > { %v8730_v45 = vpop.f32.mrb[124].mxu0 }
0x1504   : > { %v8657_v38 = vpop.f32.mrb[122].mxu1  ;;  %v11778_v52 = vpop.f32.mrb[125].mxu0 }
0x1505   : > { %v11773_v14 = vpop.f32.mrb[123].mxu1  ;;  %11802 = vmatmul.mubr.msk.f32.gmra.mrb[130].mxu0 %vm1032_vm0, %v8657_v38 }
0x1506   : > { %11804 = vmatprep.mubr.msk.f32.mxu0 %vm1032_vm0, %v8730_v45 }
0x1507   : > { %v8876_v32 = vpop.f32.mrb[126].mxu0 }
0x1508   : > { %v8803_v23 = vpop.f32.mrb[124].mxu1  ;;  %v11788_v46 = vpop.f32.mrb[127].mxu0 }
0x1509   : > { %v11783_v21 = vpop.f32.mrb[125].mxu1  ;;  %11805 = vmatmul.mubr.msk.f32.gmra.mrb[132].mxu0 %vm1032_vm0, %v8803_v23 }
0x150a   : > { %11807 = vmatprep.mubr.msk.f32.mxu0 %vm1032_vm0, %v8876_v32 }
0x150c   : > { %v8949_v27 = vpop.f32.mrb[126].mxu1 }
0x150d   : > { %v11793_v15 = vpop.f32.mrb[127].mxu1  ;;  %11808 = vmatmul.mubr.msk.f32.gmra.mrb[134].mxu0 %vm1032_vm0, %v8949_v27 }
0x150e   : > { %11814 = vmatprep.mubr.msk.f32.mxu0 %vm1032_vm0, %v13740_v9 }
0x1511   : > { %11815 = vmatmul.mubr.msk.f32.vlgmr.msra.gmra.mrb[128].mxu0 %vm1032_vm0, %v13742_v43  ;;  %v10690_v43 = vld [vmem:[%s13086_s24 + $0x1] ss:$0 sm:$0xff] }
0x1512   : > { %11817 = vmatprep.mubr.msk.f32.mxu0 %vm1032_vm0, %v13744_v62 }
0x1515   : > { %11818 = vmatmul.mubr.msk.f32.gmra.mrb[130].mxu0 %vm1032_vm0, %v13746_v11 }
0x1516   : > { %11820 = vmatprep.mubr.msk.f32.mxu0 %vm1032_vm0, %v13748_v54 }
0x1519   : > { %11821 = vmatmul.mubr.msk.f32.gmra.mrb[132].mxu0 %vm1032_vm0, %v13750_v2 }
0x151a   : > { %11823 = vmatprep.mubr.msk.f32.mxu0 %vm1032_vm0, %v13754_v41 }
0x151d   : > { %11824 = vmatmul.mubr.msk.f32.gmra.mrb[134].mxu0 %vm1032_vm0, %v13752_v37 }
0x15e4   : > { %v11816_v9 = vpop.f32.mrb[128].mxu0 }
0x15e5   : > { %v9215_v49 = vadd.f32 %v11816_v9, %v13385_v40  ;;  %v9175_v62 = vpop.f32.mrb[129].mxu0 }
0x15e6   : > { %v9214_v26 = vadd.f32 %v9175_v62, %v13387_v55 }
0x15e7   : > { %v13910_v11 = vadd.f32 %v10690_v43, %v9215_v49 }
0x15e8   : > { %v13912_v24 = vadd.f32 %v10690_v43, %v9214_v26  ;;  %v11819_v54 = vpop.f32.mrb[130].mxu0 }
0x15e9   : > { %v9217_v2 = vadd.f32 %v11819_v54, %v13395_v44  ;;  %v9185_v30 = vpop.f32.mrb[131].mxu0  ;;  %v9245_v41 = vsel %vm1164_vm1, %v13910_v11, 0.0 }
0x15ea   : > { %v9216_v37 = vadd.f32 %v9185_v30, %v13397_v58  ;;  %9246 = vadd.xlane.f32.xlu1 %v9245_v41  ;;  %v9242_v40 = vsel %vm1164_vm1, %v13912_v24, 0.0 }
0x15eb   : > { %v13920_v12 = vadd.f32 %v10690_v43, %v9217_v2  ;;  %9243 = vadd.xlane.f32.xlu0 %v9242_v40  ;;  %v10696_v40 = vld [vmem:[%s13181_s15 + $0x28] sm:$0xff] }
0x15ec   : > { %v13922_v55 = vadd.f32 %v10690_v43, %v9216_v37  ;;  %v11822_v20 = vpop.f32.mrb[132].mxu0  ;;  %v10695_v37 = vld [vmem:[%s13181_s15 + $0x20] sm:$0xff] }
0x15ed   : > { %v9219_v61 = vadd.f32 %v11822_v20, %v13405_v10  ;;  %v9195_v6 = vpop.f32.mrb[133].mxu0  ;;  %v9251_v44 = vsel %vm1164_vm1, %v13920_v12, 0.0  ;;  %v10697_v20 = vld [vmem:[%s13181_s15 + $0x30] sm:$0xff] }
0x15ee   : > { %v9218_v8 = vadd.f32 %v9195_v6, %v13407_v39  ;;  %9252 = vadd.xlane.f32.xlu1 %v9251_v44  ;;  %v9248_v58 = vsel %vm1164_vm1, %v13922_v55, 0.0  ;;  %v10698_v6 = vld [vmem:[%s13181_s15 + $0x38] sm:$0xff] }
0x15ef   : > { %v13930_v18 = vadd.f32 %v10690_v43, %v9219_v61  ;;  %9249 = vadd.xlane.f32.xlu0 %v9248_v58  ;;  %v12034_v61 = vpack.c.bf16 %v10696_v40, %v10695_v37  ;;  %v12038_v44 = vpack.c.bf16 %v10698_v6, %v10697_v20 }
0x15f0   : > { %v13932_v25 = vadd.f32 %v10690_v43, %v9218_v8  ;;  %v11825_v4 = vpop.f32.mrb[134].mxu0 }
0x15f1   : > { %v9221_v36 = vadd.f32 %v11825_v4, %v13415_v56  ;;  %v9205_v0 = vpop.f32.mrb[135].mxu0  ;;  %v9257_v10 = vsel %vm1164_vm1, %v13930_v18, 0.0  ;;  %12035 = vmatprep.subr.bf16.mxu1 %v12034_v61 }
0x15f2   : > { %v9220_v29 = vadd.f32 %v9205_v0, %v13417_v5  ;;  %9258 = vadd.xlane.f32.xlu1 %v9257_v10  ;;  %v9254_v39 = vsel %vm1164_vm1, %v13932_v25, 0.0  ;;  %12037 = vmatpush3.bf16.msra.mxu1 %v12034_v61 }
0x15f3   : > { %v13940_v51 = vadd.f32 %v10690_v43, %v9221_v36  ;;  %9255 = vadd.xlane.f32.xlu0 %v9254_v39  ;;  %12039 = vmatprep.subr.bf16.mxu1 %v12038_v44 }
0x15f4   : > { %v13942_v33 = vadd.f32 %v10690_v43, %v9220_v29 }
0x15f5   : > { %v9263_v63 = vsel %vm1164_vm1, %v13940_v51, 0.0 }
0x15f6   : > { %9264 = vadd.xlane.f32.xlu1 %v9263_v63  ;;  %v9260_v56 = vsel %vm1164_vm1, %v13942_v33, 0.0  ;;  %12041 = vmatpush3.bf16.msra.mxu1 %v12038_v44 }
0x15f7   : > { %9261 = vadd.xlane.f32.xlu0 %v9260_v56 }
0x1677   : > { %v9247_v47 = vpop.xlane.xlu1 %9246 }
0x1678   : > { %v9267_v28 = vmul.f32 0.03125, %v9247_v47  ;;  %v9244_v5 = vpop.xlane.xlu0 %9243 }
0x1679   : > { %v9266_v16 = vmul.f32 0.03125, %v9244_v5 }
0x167a   : > { %v13949_v53 = vsub.f32 %v13910_v11, %v9267_v28 }
0x167b   : > { %v13952_v42 = vsub.f32 %v13912_v24, %v9266_v16  ;;  %v9253_v13 = vpop.xlane.xlu1 %9252 }
0x167c   : > { %v9269_v19 = vmul.f32 0.03125, %v9253_v13  ;;  %v9250_v57 = vpop.xlane.xlu0 %9249  ;;  %v9283_v35 = vmul.f32 %v13949_v53, %v13949_v53 }
0x167d   : > { %v9268_v22 = vmul.f32 0.03125, %v9250_v57  ;;  %v9282_v60 = vmul.f32 %v13952_v42, %v13952_v42 }
0x167e   : > { %v13959_v3 = vsub.f32 %v13920_v12, %v9269_v19  ;;  %v9293_v34 = vsel %vm1164_vm1, %v9283_v35, 0.0 }
0x167f   : > { %v13963_v17 = vsub.f32 %v13922_v55, %v9268_v22  ;;  %v9259_v1 = vpop.xlane.xlu1 %9258  ;;  %9294 = vadd.xlane.f32.xlu1 %v9293_v34  ;;  %v9290_v59 = vsel %vm1164_vm1, %v9282_v60, 0.0 }
0x1680   : > { %v9271_v31 = vmul.f32 0.03125, %v9259_v1  ;;  %v9256_v50 = vpop.xlane.xlu0 %9255  ;;  %9291 = vadd.xlane.f32.xlu0 %v9290_v59  ;;  %v9285_v7 = vmul.f32 %v13959_v3, %v13959_v3 }
0x1681   : > { %v9270_v48 = vmul.f32 0.03125, %v9256_v50  ;;  %v9284_v45 = vmul.f32 %v13963_v17, %v13963_v17  ;;  %v10693_v50 = vld [vmem:[%s13191_s6 + $0x1] ss:$0 sm:$0xff]  ;;  %s10746_s6 = sshll.u32 %s14260_s25, 5 }
0x1682   : > { %v13971_v38 = vsub.f32 %v13930_v18, %v9271_v31  ;;  %v9299_v52 = vsel %vm1164_vm1, %v9285_v7, 0.0  ;;  %s14030_s4 = scalar_lea.vmem %s14230_s19, %s10746_s6 }
0x1683   : > { %v13975_v14 = vsub.f32 %v13932_v25, %v9270_v48  ;;  %9300 = vadd.xlane.f32.xlu1 %v9299_v52  ;;  %v9265_v32 = vpop.xlane.xlu1 %9264  ;;  %v9296_v23 = vsel %vm1164_vm1, %v9284_v45, 0.0 }
0x1684   : > { %v9273_v46 = vmul.f32 0.03125, %v9265_v32  ;;  %9297 = vadd.xlane.f32.xlu0 %v9296_v23  ;;  %v9262_v21 = vpop.xlane.xlu0 %9261  ;;  %v9287_v27 = vmul.f32 %v13971_v38, %v13971_v38  ;;  %v10694_v32 = vld [vmem:[%s13197_s10 + $0x1] ss:$0 sm:$0xff] }
0x1685   : > { %v9272_v15 = vmul.f32 0.03125, %v9262_v21  ;;  %v9286_v9 = vmul.f32 %v13975_v14, %v13975_v14 }
0x1686   : > { %v13983_v43 = vsub.f32 %v13940_v51, %v9273_v46  ;;  %v9305_v49 = vsel %vm1164_vm1, %v9287_v27, 0.0 }
0x1687   : > { %v13987_v62 = vsub.f32 %v13942_v33, %v9272_v15  ;;  %9306 = vadd.xlane.f32.xlu1 %v9305_v49  ;;  %v9302_v26 = vsel %vm1164_vm1, %v9286_v9, 0.0 }
0x1688   : > { %9303 = vadd.xlane.f32.xlu0 %v9302_v26  ;;  %v9289_v54 = vmul.f32 %v13983_v43, %v13983_v43 }
0x1689   : > { %v9288_v2 = vmul.f32 %v13987_v62, %v13987_v62 }
0x168a   : > { %v9311_v30 = vsel %vm1164_vm1, %v9289_v54, 0.0 }
0x168b   : > { %9312 = vadd.xlane.f32.xlu1 %v9311_v30  ;;  %v9308_v41 = vsel %vm1164_vm1, %v9288_v2, 0.0 }
0x168c   : > { %9309 = vadd.xlane.f32.xlu0 %v9308_v41 }
0x170c   : > { %v9295_v8 = vpop.xlane.xlu1 %9294 }
0x170d   : > { %v9315_v58 = vmul.f32 0.03125, %v9295_v8  ;;  %v9292_v4 = vpop.xlane.xlu0 %9291 }
0x170e   : > { %v9314_v36 = vmul.f32 0.03125, %v9292_v4 }
0x170f   : > { %v9323_v0 = vadd.f32 1e-05, %v9315_v58 }
0x1710   : > { %v9322_v10 = vadd.f32 1e-05, %v9314_v36  ;;  %v9301_v29 = vpop.xlane.xlu1 %9300 }
0x1711   : > { %12302 = vrsqrt.f32 %v9323_v0  ;;  %v9317_v39 = vmul.f32 0.03125, %v9301_v29  ;;  %v9298_v63 = vpop.xlane.xlu0 %9297  ;;  %v10712_v29 = vld [vmem:[%s13221_s0 + $0x58] sm:$0xff] }
0x1712   : > { %12304 = vrsqrt.f32 %v9322_v10  ;;  %v9316_v56 = vmul.f32 0.03125, %v9298_v63  ;;  %v10711_v10 = vld [vmem:[%s13221_s0 + $0x50] sm:$0xff]  ;;  %v10713_v63 = vld [vmem:[%s13221_s0 + $0x60] sm:$0xff] }
0x1713   : > { %v9325_v47 = vadd.f32 1e-05, %v9317_v39  ;;  %v12046_v39 = vpack.c.bf16 %v10712_v29, %v10711_v10 }
0x1714   : > { %v9324_v28 = vadd.f32 1e-05, %v9316_v56  ;;  %v9307_v5 = vpop.xlane.xlu1 %9306  ;;  %v10714_v56 = vld [vmem:[%s13221_s0 + $0x68] sm:$0xff] }
0x1715   : > { %12306 = vrsqrt.f32 %v9325_v47  ;;  %v9319_v16 = vmul.f32 0.03125, %v9307_v5  ;;  %v9304_v13 = vpop.xlane.xlu0 %9303  ;;  %v12050_v47 = vpack.c.bf16 %v10714_v56, %v10713_v63  ;;  %v10716_v5 = vld [vmem:[%s13221_s0 + $0x78] sm:$0xff] }
0x1716   : > { %12308 = vrsqrt.f32 %v9324_v28  ;;  %v9318_v19 = vmul.f32 0.03125, %v9304_v13  ;;  %v10715_v28 = vld [vmem:[%s13221_s0 + $0x70] sm:$0xff]  ;;  %v9894_v13 = vld [vmem:[%s14030_s4] sm:$0xff] }
0x1717   : > { %v9327_v57 = vadd.f32 1e-05, %v9319_v16  ;;  %v12054_v16 = vpack.c.bf16 %v10716_v5, %v10715_v28 }
0x1718   : > { %v9326_v35 = vadd.f32 1e-05, %v9318_v19  ;;  %v9313_v22 = vpop.xlane.xlu1 %9312  ;;  %v9895_v19 = vld [vmem:[%s14030_s4 + $0x8] sm:$0xff] }
0x1719   : > { %12310 = vrsqrt.f32 %v9327_v57  ;;  %v9321_v60 = vmul.f32 0.03125, %v9313_v22  ;;  %v9310_v34 = vpop.xlane.xlu0 %9309  ;;  %v12058_v57 = vpack.c.bf16 %v9895_v19, %v9894_v13 }
0x171a   : > { %12312 = vrsqrt.f32 %v9326_v35  ;;  %v9320_v1 = vmul.f32 0.03125, %v9310_v34  ;;  %v10700_v35 = vld [vmem:[%s13235_s8 + $0x1] ss:$0 sm:$0xff] }
0x171b   : > { %v12303_v59 = vpop.eup %12302  ;;  %v9329_v31 = vadd.f32 1e-05, %v9321_v60  ;;  %12059 = vmatprep.subr.bf16.mxu0 %v12058_v57 }
0x171c   : > { %v12305_v7 = vpop.eup %12304  ;;  %v9339_v48 = vmul.f32 %v12303_v59, %v13949_v53  ;;  %v9328_v45 = vadd.f32 1e-05, %v9320_v1  ;;  %12061 = vmatpush3.bf16.msra.mxu0 %v12058_v57 }
0x171d   : > { %12314 = vrsqrt.f32 %v9329_v31  ;;  %v9338_v52 = vmul.f32 %v12305_v7, %v13952_v42 }
0x171e   : > { %12316 = vrsqrt.f32 %v9328_v45  ;;  %v9353_v23 = vmul.f32 %v10693_v50, %v9339_v48 }
0x171f   : > { %v12307_v46 = vpop.eup %12306  ;;  %v9352_v21 = vmul.f32 %v10693_v50, %v9338_v52 }
0x1720   : > { %v12309_v27 = vpop.eup %12308  ;;  %v9341_v15 = vmul.f32 %v12307_v46, %v13959_v3  ;;  %v9367_v26 = vadd.f32 %v10694_v32, %v9353_v23 }
0x1721   : > { %v9366_v9 = vadd.f32 %v10694_v32, %v9352_v21  ;;  %v9340_v49 = vmul.f32 %v12309_v27, %v13963_v17 }
0x1722   : > { %v9355_v54 = vmul.f32 %v10693_v50, %v9341_v15 }
0x1723   : > { %v12311_v2 = vpop.eup %12310  ;;  %11834 = vmatprep.mubr.msk.f32.mxu1 %vm1164_vm1, %v9366_v9  ;;  %v9354_v53 = vmul.f32 %v10693_v50, %v9340_v49 }
0x1724   : > { %v12313_v30 = vpop.eup %12312  ;;  %11835 = vmatmul.mubr.msk.f32.vlgmr.msra.gmra.mrb[128].mxu1 %vm1164_vm1, %v9367_v26  ;;  %v9343_v42 = vmul.f32 %v12311_v2, %v13971_v38  ;;  %v9369_v40 = vadd.f32 %v10694_v32, %v9355_v54 }
0x1725   : > { %v9368_v41 = vadd.f32 %v10694_v32, %v9354_v53  ;;  %v9342_v37 = vmul.f32 %v12313_v30, %v13975_v14 }
0x1726   : > { %v9357_v20 = vmul.f32 %v10693_v50, %v9343_v42 }
0x1727   : > { %v12315_v3 = vpop.eup %12314  ;;  %11837 = vmatprep.mubr.msk.f32.mxu1 %vm1164_vm1, %v9368_v41  ;;  %v9356_v17 = vmul.f32 %v10693_v50, %v9342_v37 }
0x1728   : > { %v12317_v61 = vpop.eup %12316  ;;  %11838 = vmatmul.mubr.msk.f32.gmra.mrb[130].mxu1 %vm1164_vm1, %v9369_v40  ;;  %v9345_v6 = vmul.f32 %v12315_v3, %v13983_v43  ;;  %v9371_v8 = vadd.f32 %v10694_v32, %v9357_v20  ;;  %v10709_v43 = vld [vmem:[%s13221_s0 + $0x40] sm:$0xff] }
0x1729   : > { %v9370_v44 = vadd.f32 %v10694_v32, %v9356_v17  ;;  %v9344_v38 = vmul.f32 %v12317_v61, %v13987_v62  ;;  %v10710_v62 = vld [vmem:[%s13221_s0 + $0x48] sm:$0xff] }
0x172a   : > { %v9359_v14 = vmul.f32 %v10693_v50, %v9345_v6  ;;  %v12042_v0 = vpack.c.bf16 %v10710_v62, %v10709_v43 }
0x172b   : > { %11840 = vmatprep.mubr.msk.f32.mxu1 %vm1164_vm1, %v9370_v44  ;;  %v9358_v58 = vmul.f32 %v10693_v50, %v9344_v38 }
0x172c   : > { %11841 = vmatmul.mubr.msk.f32.gmra.mrb[132].mxu1 %vm1164_vm1, %v9371_v8  ;;  %v9373_v36 = vadd.f32 %v10694_v32, %v9359_v14  ;;  %12043 = vmatprep.subr.bf16.mxu1 %v12042_v0 }
0x172d   : > { %v9372_v4 = vadd.f32 %v10694_v32, %v9358_v58  ;;  %12045 = vmatpush3.bf16.msra.mxu1 %v12042_v0 }
0x172e   : > { %12047 = vmatprep.subr.bf16.mxu1 %v12046_v39 }
0x172f   : > { %11843 = vmatprep.mubr.msk.f32.mxu1 %vm1164_vm1, %v9372_v4 }
0x1730   : > { %11844 = vmatmul.mubr.msk.f32.gmra.mrb[134].mxu1 %vm1164_vm1, %v9373_v36 }
0x1731   : > { %12049 = vmatpush3.bf16.msra.mxu1 %v12046_v39 }
0x1732   : > { %12051 = vmatprep.subr.bf16.mxu1 %v12050_v47 }
0x1735   : > { %12053 = vmatpush3.bf16.msra.mxu1 %v12050_v47 }
0x1736   : > { %12055 = vmatprep.subr.bf16.mxu1 %v12054_v16 }
0x1739   : > { %12057 = vmatpush3.bf16.msra.mxu1 %v12054_v16 }
0x17f7   : > { %v11836_v22 = vpop.f32.mrb[128].mxu1 }
0x17f8   : > { %v9483_v60 = vadd.f32 %v11836_v22, %v10700_v35  ;;  %v9477_v34 = vpop.f32.mrb[129].mxu1 }
0x17f9   : > { %v14035_v1 = vadd.f32 %v10700_v35, %v9477_v34 }
0x17fa   : > { %v14037_v59 = vmul.f32 0.70710677, %v9483_v60  ;;  %v14072_v0 = vmul.f32 0.5, %v9483_v60 }
0x17fb   : > { %v14040_v31 = vmul.f32 0.70710677, %v14035_v1  ;;  %v11839_v50 = vpop.f32.mrb[130].mxu1 }
0x17fc   : > { %v9533_v7 = vand.u32 2147483647, %v14037_v59  ;;  %v14043_v48 = vadd.f32 %v11839_v50, %v10700_v35  ;;  %v9487_v45 = vpop.f32.mrb[131].mxu1  ;;  %vm9693_vm13 = vcmp.ge.f32.partialorder %v14037_v59, 0.0 }
0x17fd   : > { %v9532_v52 = vand.u32 2147483647, %v14040_v31  ;;  %v14046_v32 = vadd.f32 %v10700_v35, %v9487_v45  ;;  %vm9692_vm14 = vcmp.ge.f32.partialorder %v14040_v31, 0.0 }
0x17fe   : > { %v9541_v23 = vmul.f32 0.3275911, %v9533_v7  ;;  %v14049_v46 = vmul.f32 0.70710677, %v14043_v48  ;;  %v9645_v30 = vsub.f32 0.0, %v9533_v7 }
0x17ff   : > { %v9540_v21 = vmul.f32 0.3275911, %v9532_v52  ;;  %v14052_v27 = vmul.f32 0.70710677, %v14046_v32  ;;  %v11842_v49 = vpop.f32.mrb[132].mxu1  ;;  %v9644_v37 = vsub.f32 0.0, %v9532_v52 }
0x1800   : > { %v9549_v15 = vadd.f32 1.0, %v9541_v23  ;;  %v9535_v9 = vand.u32 2147483647, %v14049_v46  ;;  %v9497_v2 = vpop.f32.mrb[133].mxu1  ;;  %v14056_v20 = vadd.f32 %v11842_v49, %v10700_v35  ;;  %v9653_v38 = vmul.f32 %v9645_v30, %v9533_v7 }
0x1801   : > { %v9548_v26 = vadd.f32 1.0, %v9540_v21  ;;  %v9534_v54 = vand.u32 2147483647, %v14052_v27  ;;  %v14058_v61 = vadd.f32 %v10700_v35, %v9497_v2  ;;  %v9652_v14 = vmul.f32 %v9644_v37, %v9532_v52 }
0x1802   : > { %12318 = vrcp.f32 %v9549_v15  ;;  %v9543_v53 = vmul.f32 0.3275911, %v9535_v9  ;;  %v9647_v6 = vsub.f32 0.0, %v9535_v9  ;;  %v14061_v44 = vmul.f32 0.70710677, %v14056_v20 }
0x1803   : > { %12320 = vrcp.f32 %v9548_v26  ;;  %v9542_v42 = vmul.f32 0.3275911, %v9534_v54  ;;  %v11845_v41 = vpop.f32.mrb[134].mxu1  ;;  %v14064_v8 = vmul.f32 0.70710677, %v14058_v61  ;;  %v9646_v58 = vsub.f32 0.0, %v9534_v54 }
0x1804   : > { %v9551_v40 = vadd.f32 1.0, %v9543_v53  ;;  %v9507_v3 = vpop.f32.mrb[135].mxu1  ;;  %v9537_v4 = vand.u32 2147483647, %v14061_v44  ;;  %v14067_v36 = vadd.f32 %v11845_v41, %v10700_v35  ;;  %v9655_v10 = vmul.f32 %v9647_v6, %v9535_v9 }
0x1805   : > { %v9550_v17 = vadd.f32 1.0, %v9542_v42  ;;  %v9536_v43 = vand.u32 2147483647, %v14064_v8  ;;  %v14070_v62 = vadd.f32 %v10700_v35, %v9507_v3  ;;  %v9662_v63 = vmul.f32 1.442695, %v9653_v38 }
0x1806   : > { %12322 = vrcp.f32 %v9551_v40  ;;  %v9545_v29 = vmul.f32 0.3275911, %v9537_v4  ;;  %v14075_v39 = vmul.f32 0.70710677, %v14067_v36  ;;  %v9660_v5 = vmul.f32 1.442695, %v9652_v14 }
0x1807   : > { %12324 = vrcp.f32 %v9550_v17  ;;  %v9544_v56 = vmul.f32 0.3275911, %v9536_v43  ;;  %v14078_v47 = vmul.f32 0.70710677, %v14070_v62  ;;  %v9654_v16 = vmul.f32 %v9646_v58, %v9534_v54 }
0x1808   : > { %v9553_v13 = vadd.f32 1.0, %v9545_v29  ;;  %v9539_v19 = vand.u32 2147483647, %v14075_v39  ;;  %v9649_v22 = vsub.f32 0.0, %v9537_v4  ;;  %v9666_v7 = vmul.f32 1.442695, %v9655_v10 }
0x1809   : > { %v9552_v60 = vadd.f32 1.0, %v9544_v56  ;;  %v9538_v34 = vand.u32 2147483647, %v14078_v47  ;;  %v9648_v23 = vsub.f32 0.0, %v9536_v43  ;;  %v9664_v30 = vmul.f32 1.442695, %v9654_v16 }
0x180a   : > { %12326 = vrcp.f32 %v9553_v13  ;;  %v9547_v45 = vmul.f32 0.3275911, %v9539_v19  ;;  %v9651_v21 = vsub.f32 0.0, %v9539_v19  ;;  %v9657_v42 = vmul.f32 %v9649_v22, %v9537_v4 }
0x180b   : > { %12328 = vrcp.f32 %v9552_v60  ;;  %v9546_v26 = vmul.f32 0.3275911, %v9538_v34  ;;  %v9656_v6 = vmul.f32 %v9648_v23, %v9536_v43  ;;  %v9650_v10 = vsub.f32 0.0, %v9538_v34 }
0x180c   : > { %v14080_v28 = vpop.eup %12318  ;;  %12330 = vpow2.f32 %v9662_v63  ;;  %v9555_v49 = vadd.f32 1.0, %v9547_v45  ;;  %v9659_v38 = vmul.f32 %v9651_v21, %v9539_v19  ;;  %v9670_v4 = vmul.f32 1.442695, %v9657_v42 }
0x180d   : > { %v14083_v57 = vpop.eup %12320  ;;  %v9573_v35 = vmul.f32 1.0614054, %v14080_v28  ;;  %v9554_v40 = vadd.f32 1.0, %v9546_v26  ;;  %v14099_v56 = vmul.f32 0.5, %v14035_v1  ;;  %v9668_v22 = vmul.f32 1.442695, %v9656_v6 }
0x180e   : > { %v9572_v50 = vmul.f32 1.0614054, %v14083_v57  ;;  %12332 = vrcp.f32 %v9555_v49  ;;  %vm9695_vm15 = vcmp.ge.f32.partialorder %v14049_v46, 0.0  ;;  %vm9694_vm2 = vcmp.ge.f32.partialorder %v14052_v27, 0.0 }
0x180f   : > { %v9581_v52 = vadd.f32 -1.4531521, %v9573_v35  ;;  %12334 = vrcp.f32 %v9554_v40  ;;  %v9658_v35 = vmul.f32 %v9650_v10, %v9538_v34  ;;  %v9519_v46 = vmul.f32 0.5, %v14043_v48 }
0x1810   : > { %v14088_v15 = vpop.eup %12322  ;;  %v9580_v9 = vadd.f32 -1.4531521, %v9572_v50  ;;  %12336 = vpow2.f32 %v9660_v5  ;;  %v9674_v5 = vmul.f32 1.442695, %v9659_v38  ;;  %vm9697_vm3 = vcmp.ge.f32.partialorder %v14061_v44, 0.0 }
0x1811   : > { %v14090_v54 = vpop.eup %12324  ;;  %v9589_v2 = vmul.f32 %v14080_v28, %v9581_v52  ;;  %v9575_v53 = vmul.f32 1.0614054, %v14088_v15  ;;  %12338 = vpow2.f32 %v9666_v7  ;;  %v9672_v26 = vmul.f32 1.442695, %v9658_v35 }
0x1812   : > { %v9588_v41 = vmul.f32 %v14083_v57, %v9580_v9  ;;  %v9574_v37 = vmul.f32 1.0614054, %v14090_v54  ;;  %12340 = vpow2.f32 %v9664_v30  ;;  %vm9696_vm4 = vcmp.ge.f32.partialorder %v14064_v8, 0.0 }
0x1813   : > { %v9597_v3 = vadd.f32 1.4214138, %v9589_v2  ;;  %v9583_v17 = vadd.f32 -1.4531521, %v9575_v53  ;;  %12342 = vpow2.f32 %v9670_v4  ;;  %vm9699_vm5 = vcmp.ge.f32.partialorder %v14075_v39, 0.0 }
0x1814   : > { %v9596_v14 = vadd.f32 1.4214138, %v9588_v41  ;;  %v9582_v58 = vadd.f32 -1.4531521, %v9574_v37  ;;  %v14103_v60 = vpop.eup %12326  ;;  %12344 = vpow2.f32 %v9668_v22  ;;  %vm9698_vm6 = vcmp.ge.f32.partialorder %v14078_v47, 0.0 }
0x1815   : > { %v9605_v29 = vmul.f32 %v14080_v28, %v9597_v3  ;;  %v9591_v63 = vmul.f32 %v14088_v15, %v9583_v17  ;;  %v14105_v52 = vpop.eup %12328  ;;  %v9577_v21 = vmul.f32 1.0614054, %v14103_v60  ;;  %12346 = vpow2.f32 %v9674_v5 }
0x1816   : > { %v9604_v16 = vmul.f32 %v14083_v57, %v9596_v14  ;;  %v9590_v13 = vmul.f32 %v14090_v54, %v9582_v58  ;;  %v12331_v34 = vpop.eup %12330  ;;  %v9576_v49 = vmul.f32 1.0614054, %v14105_v52  ;;  %12348 = vpow2.f32 %v9672_v26 }
0x1817   : > { %v9613_v43 = vadd.f32 -0.28449672, %v9605_v29  ;;  %v9599_v19 = vadd.f32 1.4214138, %v9591_v63  ;;  %v9585_v30 = vadd.f32 -1.4531521, %v9577_v21 }
0x1818   : > { %v9612_v50 = vadd.f32 -0.28449672, %v9604_v16  ;;  %v9598_v45 = vadd.f32 1.4214138, %v9590_v13  ;;  %v14113_v42 = vpop.eup %12332  ;;  %v9584_v40 = vadd.f32 -1.4531521, %v9576_v49 }
0x1819   : > { %v9621_v1 = vmul.f32 %v14080_v28, %v9613_v43  ;;  %v9607_v23 = vmul.f32 %v14088_v15, %v9599_v19  ;;  %v9593_v6 = vmul.f32 %v14103_v60, %v9585_v30  ;;  %v9579_v38 = vmul.f32 1.0614054, %v14113_v42  ;;  %v14121_v14 = vpop.eup %12334 }
0x181a   : > { %v9620_v9 = vmul.f32 %v14083_v57, %v9612_v50  ;;  %v9606_v7 = vmul.f32 %v14090_v54, %v9598_v45  ;;  %v9592_v29 = vmul.f32 %v14105_v52, %v9584_v40  ;;  %v12337_v63 = vpop.eup %12336  ;;  %v9578_v22 = vmul.f32 1.0614054, %v14121_v14 }
0x181b   : > { %v9629_v2 = vadd.f32 0.2548296, %v9621_v1  ;;  %v9615_v53 = vadd.f32 -0.28449672, %v9607_v23  ;;  %v9601_v16 = vadd.f32 1.4214138, %v9593_v6  ;;  %v12339_v50 = vpop.eup %12338 }
0x181c   : > { %v9628_v41 = vadd.f32 0.2548296, %v9620_v9  ;;  %v9614_v37 = vadd.f32 -0.28449672, %v9606_v7  ;;  %v9587_v13 = vadd.f32 -1.4531521, %v9579_v38  ;;  %v12341_v23 = vpop.eup %12340 }
0x181d   : > { %v9637_v3 = vmul.f32 %v14080_v28, %v9629_v2  ;;  %v9623_v17 = vmul.f32 %v14088_v15, %v9615_v53  ;;  %v9600_v19 = vadd.f32 1.4214138, %v9592_v29  ;;  %v9609_v5 = vmul.f32 %v14103_v60, %v9601_v16  ;;  %v12343_v49 = vpop.eup %12342 }
0x181e   : > { %v9636_v58 = vmul.f32 %v14083_v57, %v9628_v41  ;;  %v9622_v10 = vmul.f32 %v14090_v54, %v9614_v37  ;;  %v9595_v1 = vmul.f32 %v14113_v42, %v9587_v13  ;;  %v9586_v7 = vadd.f32 -1.4531521, %v9578_v22 }
0x181f   : > { %v9677_v4 = vmul.f32 %v12331_v34, %v9637_v3  ;;  %v9631_v28 = vadd.f32 0.2548296, %v9623_v17  ;;  %v9608_v9 = vmul.f32 %v14105_v52, %v9600_v19  ;;  %v9617_v53 = vadd.f32 -0.28449672, %v9609_v5  ;;  %v12345_v3 = vpop.eup %12344 }
0x1820   : > { %v9676_v35 = vmul.f32 %v12337_v63, %v9636_v58  ;;  %v9630_v43 = vadd.f32 0.2548296, %v9622_v10  ;;  %v9603_v30 = vadd.f32 1.4214138, %v9595_v1  ;;  %v9594_v40 = vmul.f32 %v14121_v14, %v9586_v7  ;;  %v12347_v58 = vpop.eup %12346 }
0x1821   : > { %v9685_v45 = vsub.f32 1.0, %v9677_v4  ;;  %v9639_v57 = vmul.f32 %v14088_v15, %v9631_v28  ;;  %v9616_v37 = vadd.f32 -0.28449672, %v9608_v9 }
0x1822   : > { %v9684_v21 = vsub.f32 1.0, %v9676_v35  ;;  %v9638_v34 = vmul.f32 %v14090_v54, %v9630_v43  ;;  %v9625_v54 = vmul.f32 %v14103_v60, %v9617_v53  ;;  %v9611_v38 = vmul.f32 %v14113_v42, %v9603_v30  ;;  %v12349_v43 = vpop.eup %12348 }
0x1823   : > { %v9701_v26 = vsub.f32 0.0, %v9685_v45  ;;  %v9679_v2 = vmul.f32 %v12339_v50, %v9639_v57  ;;  %v9624_v4 = vmul.f32 %v14105_v52, %v9616_v37  ;;  %v9602_v50 = vadd.f32 1.4214138, %v9594_v40 }
0x1824   : > { %v9700_v41 = vsub.f32 0.0, %v9684_v21  ;;  %v9678_v15 = vmul.f32 %v12341_v23, %v9638_v34  ;;  %v9633_v13 = vadd.f32 0.2548296, %v9625_v54  ;;  %v9619_v35 = vadd.f32 -0.28449672, %v9611_v38 }
0x1825   : > { %v9709_v17 = vsel %vm9693_vm13, %v9685_v45, %v9701_v26  ;;  %v9687_v6 = vsub.f32 1.0, %v9679_v2  ;;  %v9632_v22 = vadd.f32 0.2548296, %v9624_v4  ;;  %v9518_v34 = vmul.f32 0.5, %v14046_v32 }
0x1826   : > { %v9717_v10 = vadd.f32 1.0, %v9709_v17  ;;  %v9708_v29 = vsel %vm9692_vm14, %v9684_v21, %v9700_v41  ;;  %v9686_v63 = vsub.f32 1.0, %v9678_v15  ;;  %v9641_v31 = vmul.f32 %v14103_v60, %v9633_v13 }
0x1827   : > { %v9716_v28 = vadd.f32 1.0, %v9708_v29  ;;  %v9703_v16 = vsub.f32 0.0, %v9687_v6  ;;  %v9627_v5 = vmul.f32 %v14113_v42, %v9619_v35  ;;  %v9640_v21 = vmul.f32 %v14105_v52, %v9632_v22  ;;  %v9896_v35 = vld [vmem:[%s14030_s4 + $0x10] sm:$0xff]  ;;  %v10726_v22 = vld [vmem:[%s13380_s7 + $0x1] ss:$0 sm:$0xff] }
0x1828   : > { %v9725_v59 = vmul.f32 %v9717_v10, %v14072_v0  ;;  %v9702_v19 = vsub.f32 0.0, %v9686_v63  ;;  %v9610_v0 = vmul.f32 %v14121_v14, %v9602_v50  ;;  %v9681_v7 = vmul.f32 %v12343_v49, %v9641_v31 }
0x1829   : > { %v9724_v45 = vmul.f32 %v9716_v28, %v14099_v56  ;;  %v9711_v57 = vsel %vm9695_vm15, %v9687_v6, %v9703_v16  ;;  %v9635_v56 = vadd.f32 0.2548296, %v9627_v5  ;;  %v9680_v60 = vmul.f32 %v12345_v3, %v9640_v21 }
0x182a   : > { %v9719_v1 = vadd.f32 1.0, %v9711_v57  ;;  %v9710_v23 = vsel %vm9694_vm2, %v9686_v63, %v9702_v19  ;;  %v9618_v26 = vadd.f32 -0.28449672, %v9610_v0  ;;  %v9689_v27 = vsub.f32 1.0, %v9681_v7 }
0x182b   : > { %v9718_v9 = vadd.f32 1.0, %v9710_v23  ;;  %11862 = vmatprep.mubr.msk.f32.mxu1 %vm5369_vm7, %v9724_v45  ;;  %v9643_v53 = vmul.f32 %v14113_v42, %v9635_v56  ;;  %v9688_v30 = vsub.f32 1.0, %v9680_v60  ;;  %v9520_v6 = vmul.f32 0.5, %v14058_v61 }
0x182c   : > { %11863 = vmatmul.mubr.msk.f32.vlgmr.msra.gmra.mrb[136].mxu1 %vm5369_vm7, %v9725_v59  ;;  %v9727_v52 = vmul.f32 %v9719_v1, %v9519_v46  ;;  %v9626_v41 = vmul.f32 %v14121_v14, %v9618_v26  ;;  %v9705_v32 = vsub.f32 0.0, %v9689_v27  ;;  %v9523_v16 = vmul.f32 0.5, %v14067_v36 }
0x182d   : > { %v9726_v2 = vmul.f32 %v9718_v9, %v9518_v34  ;;  %v9683_v15 = vmul.f32 %v12347_v58, %v9643_v53  ;;  %v9704_v49 = vsub.f32 0.0, %v9688_v30  ;;  %v9521_v58 = vmul.f32 0.5, %v14056_v20 }
0x182e   : > { %v9634_v48 = vadd.f32 0.2548296, %v9626_v41  ;;  %v9713_v37 = vsel %vm9697_vm3, %v9689_v27, %v9705_v32  ;;  %v9522_v20 = vmul.f32 0.5, %v14070_v62 }
0x182f   : > { %11865 = vmatprep.mubr.msk.f32.mxu1 %vm5369_vm7, %v9726_v2  ;;  %v9691_v40 = vsub.f32 1.0, %v9683_v15  ;;  %v9721_v3 = vadd.f32 1.0, %v9713_v37  ;;  %v9712_v42 = vsel %vm9696_vm4, %v9688_v30, %v9704_v49 }
0x1830   : > { %11866 = vmatmul.mubr.msk.f32.gmra.mrb[138].mxu1 %vm5369_vm7, %v9727_v52  ;;  %v9642_v17 = vmul.f32 %v14121_v14, %v9634_v48  ;;  %v9720_v54 = vadd.f32 1.0, %v9712_v42 }
0x1831   : > { %v9707_v38 = vsub.f32 0.0, %v9691_v40  ;;  %v9729_v29 = vmul.f32 %v9721_v3, %v9521_v58 }
0x1832   : > { %v9682_v10 = vmul.f32 %v12349_v43, %v9642_v17  ;;  %v9728_v44 = vmul.f32 %v9720_v54, %v9520_v6  ;;  %v9897_v43 = vld [vmem:[%s14030_s4 + $0x18] sm:$0xff] }
0x1833   : > { %v9715_v8 = vsel %vm9699_vm5, %v9691_v40, %v9707_v38  ;;  %v12062_v59 = vpack.c.bf16 %v9897_v43, %v9896_v35 }
0x1834   : > { %v9690_v63 = vsub.f32 1.0, %v9682_v10  ;;  %11868 = vmatprep.mubr.msk.f32.mxu1 %vm5369_vm7, %v9728_v44  ;;  %v9723_v61 = vadd.f32 1.0, %v9715_v8 }
0x1835   : > { %11869 = vmatmul.mubr.msk.f32.gmra.mrb[140].mxu1 %vm5369_vm7, %v9729_v29  ;;  %12063 = vmatprep.subr.bf16.mxu0 %v12062_v59 }
0x1836   : > { %v9706_v4 = vsub.f32 0.0, %v9690_v63  ;;  %v9731_v13 = vmul.f32 %v9723_v61, %v9523_v16  ;;  %12065 = vmatpush3.bf16.msra.mxu0 %v12062_v59 }
0x1838   : > { %v9714_v14 = vsel %vm9698_vm6, %v9690_v63, %v9706_v4 }
0x1839   : > { %v9722_v28 = vadd.f32 1.0, %v9714_v14 }
0x183b   : > { %v9730_v39 = vmul.f32 %v9722_v28, %v9522_v20 }
0x183d   : > { %11871 = vmatprep.mubr.msk.f32.mxu1 %vm5369_vm7, %v9730_v39 }
0x183e   : > { %11872 = vmatmul.mubr.msk.f32.gmra.mrb[142].mxu1 %vm5369_vm7, %v9731_v13 }
0x18ff   : > { %v11864_v47 = vpop.f32.mrb[136].mxu1 }
0x1900   : > { %v9871_v19 = vadd.f32 %v11864_v47, %v13910_v11  ;;  %v9831_v50 = vpop.f32.mrb[137].mxu1 }
0x1901   : > { %v9870_v62 = vadd.f32 %v9831_v50, %v13912_v24 }
0x1902   : > { %v9887_v57 = vadd.f32 %v10726_v22, %v9871_v19 }
0x1903   : > { %v9886_v45 = vadd.f32 %v10726_v22, %v9870_v62  ;;  %v11867_v36 = vpop.f32.mrb[138].mxu1 }
0x1904   : > { %v9873_v31 = vadd.f32 %v11867_v36, %v13920_v12  ;;  %v9841_v5 = vpop.f32.mrb[139].mxu1 }
0x1905   : > { %v9872_v1 = vadd.f32 %v9841_v5, %v13922_v55  ;;  %11882 = vmatprep.mubr.msk.f32.mxu0 %vm1164_vm1, %v9886_v45 }
0x1906   : > { %11883 = vmatmul.mubr.msk.f32.vlgmr.msra.gmra.mrb[136].mxu0 %vm1164_vm1, %v9887_v57  ;;  %v9889_v21 = vadd.f32 %v10726_v22, %v9873_v31 }
0x1907   : > { %v9888_v23 = vadd.f32 %v10726_v22, %v9872_v1 }
0x1908   : > { %v11870_v11 = vpop.f32.mrb[140].mxu1 }
0x1909   : > { %11885 = vmatprep.mubr.msk.f32.mxu0 %vm1164_vm1, %v9888_v23  ;;  %v9875_v24 = vadd.f32 %v11870_v11, %v13930_v18  ;;  %v9851_v0 = vpop.f32.mrb[141].mxu1  ;;  %v10727_v18 = vld [vmem:[%s1009_s28] ss:$0 sm:$0xff] }
0x190a   : > { %11886 = vmatmul.mubr.msk.f32.gmra.mrb[138].mxu0 %vm1164_vm1, %v9889_v21  ;;  %v9874_v12 = vadd.f32 %v9851_v0, %v13932_v25 }
0x190b   : > { %v9891_v55 = vadd.f32 %v10726_v22, %v9875_v24 }
0x190c   : > { %v9890_v34 = vadd.f32 %v10726_v22, %v9874_v12 }
0x190e   : > { %11888 = vmatprep.mubr.msk.f32.mxu0 %vm1164_vm1, %v9890_v34 }
0x190f   : > { %11889 = vmatmul.mubr.msk.f32.gmra.mrb[140].mxu0 %vm1164_vm1, %v9891_v55 }
0x1911   : > { %v11873_v9 = vpop.f32.mrb[142].mxu1 }
0x1912   : > { %v9877_v7 = vadd.f32 %v11873_v9, %v13940_v51  ;;  %v9861_v56 = vpop.f32.mrb[143].mxu1 }
0x1913   : > { %v9876_v46 = vadd.f32 %v9861_v56, %v13942_v33 }
0x1914   : > { %v9893_v26 = vadd.f32 %v10726_v22, %v9877_v7 }
0x1915   : > { %v9892_v60 = vadd.f32 %v10726_v22, %v9876_v46 }
0x1917   : > { %11891 = vmatprep.mubr.msk.f32.mxu0 %vm1164_vm1, %v9892_v60 }
0x1918   : > { %11892 = vmatmul.mubr.msk.f32.gmra.mrb[142].mxu0 %vm1164_vm1, %v9893_v26 }
0x19d9   : > { %v11884_v25 = vpop.f32.mrb[136].mxu0 }
0x19da   : > { %v10001_v51 = vadd.f32 %v11884_v25, %v10727_v18  ;;  %v9995_v2 = vpop.f32.mrb[137].mxu0 }
0x19db   : > { %v9996_v27 = vadd.f32 %v10727_v18, %v9995_v2 }
0x19dc   : > { %10035 = vst.msk [vmem:[%s1014_s5 + $0x8] sm:$0xff] %vm1032_vm0, %v10001_v51 }
0x19dd   : > { %10034 = vst.msk [vmem:[%s1014_s5] sm:$0xff] %vm1032_vm0, %v9996_v27  ;;  %v11887_v33 = vpop.f32.mrb[138].mxu0 }
0x19de   : > { %v10011_v53 = vadd.f32 %v11887_v33, %v10727_v18  ;;  %v10005_v52 = vpop.f32.mrb[139].mxu0 }
0x19df   : > { %v10006_v30 = vadd.f32 %v10727_v18, %v10005_v52 }
0x19e0   : > { %10037 = vst.msk [vmem:[%s1014_s5 + $0x18] sm:$0xff] %vm1032_vm0, %v10011_v53 }
0x19e1   : > { %10036 = vst.msk [vmem:[%s1014_s5 + $0x10] sm:$0xff] %vm1032_vm0, %v10006_v30 }
0x19e2   : > { %v11890_v41 = vpop.f32.mrb[140].mxu0 }
0x19e3   : > { %v10021_v32 = vadd.f32 %v11890_v41, %v10727_v18  ;;  %v10015_v15 = vpop.f32.mrb[141].mxu0 }
0x19e4   : > { %v10016_v49 = vadd.f32 %v10727_v18, %v10015_v15 }
0x19e5   : > { %10039 = vst.msk [vmem:[%s1014_s5 + $0x28] sm:$0xff] %vm1032_vm0, %v10021_v32 }
0x19e6   : > { %10038 = vst.msk [vmem:[%s1014_s5 + $0x20] sm:$0xff] %vm1032_vm0, %v10016_v49 }
0x19eb   : > { %v11893_v48 = vpop.f32.mrb[142].mxu0 }
0x19ec   : > { %v10031_v37 = vadd.f32 %v11893_v48, %v10727_v18  ;;  %v10025_v40 = vpop.f32.mrb[143].mxu0 }
0x19ed   : > { %v10026_v3 = vadd.f32 %v10727_v18, %v10025_v40 }
0x19ee   : > { %10041 = vst.msk [vmem:[%s1014_s5 + $0x38] sm:$0xff] %vm1032_vm0, %v10031_v37 }
0x19ef   : > { %10040 = vst.msk [vmem:[%s1014_s5 + $0x30] sm:$0xff] %vm1032_vm0, %v10026_v3 }
0x19f0 PF: > { %s31_s2 = sadd.s32 1, %s12356_s2  }
0x19f1   : > { %p28_p4 = scmp.ge.s32.totalorder %s31_s2, 4  }
0x19f3   :  { %30 = sbr.rel (!%p28_p4) target bundleno = 14 (0xe), region = 224 }

</bundles_post_ra>
